<compile_context>
chip_gen: v5e
topology: v5e:2x2
jax: 0.10.0
libtpu: 0.0.40
codegen_flags: <defaults>
</compile_context>

<pallas_src>
import jax
import jax.numpy as jnp
from jax.experimental import pallas as pl
from jax.experimental.pallas import tpu as pltpu

NEG_SLOPE = 0.01  # nn.LeakyReLU default negative_slope


def _leaky_relu(h):
    # 2 VPU ops (mul + max); identical to where(h>0, h, a*h) for 0 < a < 1.
    return jnp.maximum(h, NEG_SLOPE * h)


def _round_up(v, m):
    return (v + m - 1) // m * m


def expr_decoder_kernel(
    x_ref,                      # (row_tile, d_in_p)             compute dtype
    w1c_ref, b1c_ref,           # (d_in_p, 2*dm_p), (1, 2*dm_p)  fused layer-1
    w2_ref, b2_ref,             # (dm_p, dm_p), (1, dm_p)        fc branch layer-2
    zw2_ref, zb2_ref,           # (dm_p, dm_p), (1, dm_p)        zero_logit layer-2
    w3_ref, b3_ref,             # (1, dm_p), (1, 1)              fc head
    zw3_ref, zb3_ref,           # (1, dm_p), (1, 1)              zero_logit head
    pred_ref, zprob_ref,        # (1, row_tile) each             lane-dense tokens
):
    dm = w2_ref.shape[0]
    cdt = x_ref.dtype

    x = x_ref[...]

    # Fused layer 1: both branches share x -> one MXU pass with 2*d_model lanes.
    h1 = jnp.dot(x, w1c_ref[...], preferred_element_type=jnp.float32)
    h1 = _leaky_relu(h1 + b1c_ref[...])

    h1a = h1[:, :dm].astype(cdt)   # fc branch
    h1b = h1[:, dm:].astype(cdt)   # zero_logit branch

    h2a = _leaky_relu(
        jnp.dot(h1a, w2_ref[...], preferred_element_type=jnp.float32) + b2_ref[...])
    h2b = _leaky_relu(
        jnp.dot(h1b, zw2_ref[...], preferred_element_type=jnp.float32) + zb2_ref[...])

    # d_model -> 1 heads as VPU multiply + lane (XLU) reduction, stored lane-dense
    # (tokens on the lane axis of the (1, row_tile) output block).
    pred = jnp.sum(h2a * w3_ref[...], axis=-1)[None, :] + b3_ref[...]
    zlog = jnp.sum(h2b * zw3_ref[...], axis=-1)[None, :] + zb3_ref[...]

    pred_ref[...] = pred.astype(pred_ref.dtype)
    zprob_ref[...] = jax.nn.sigmoid(zlog).astype(zprob_ref.dtype)


def expr_decoder_forward(x, params, *, row_tile=None, compute_dtype=jnp.bfloat16):
    """x: (batch, seq_len, d_model). Returns dict(pred, zero_probs) of (batch, seq_len)."""
    B, S, D = x.shape
    (w1, b1, w2, b2, w3, b3, zw1, zb1, zw2, zb2, zw3, zb3) = params
    d_in, d_model = w1.shape
    assert d_in == D

    d_in_p = _round_up(d_in, 128)
    dm_p = _round_up(d_model, 128)
    N = B * S

    f32 = jnp.float32
    item_c = jnp.dtype(compute_dtype).itemsize

    # ---------------- parameter packing (zero padding => math is exact) -------------
    def pad2(a, r, c):
        if a.shape == (r, c):
            return a
        return jnp.pad(a, ((0, r - a.shape[0]), (0, c - a.shape[1])))

    # Fused layer-1 weights of both branches: (d_in_p, 2*dm_p).  Matmul operands in
    # compute_dtype (bf16 default), biases / head / elementwise path in f32.
    w1c = jnp.concatenate(
        [pad2(w1, d_in_p, dm_p), pad2(zw1, d_in_p, dm_p)], axis=1).astype(compute_dtype)
    b1c = jnp.concatenate([pad2(b1, 1, dm_p), pad2(zb1, 1, dm_p)], axis=1).astype(f32)
    w2p = pad2(w2, dm_p, dm_p).astype(compute_dtype)
    zw2p = pad2(zw2, dm_p, dm_p).astype(compute_dtype)
    b2p = pad2(b2, 1, dm_p).astype(f32)
    zb2p = pad2(zb2, 1, dm_p).astype(f32)
    w3r = pad2(w3.T, 1, dm_p).astype(f32)
    zw3r = pad2(zw3.T, 1, dm_p).astype(f32)
    b3p = b3.reshape(1, 1).astype(f32)
    zb3p = zb3.reshape(1, 1).astype(f32)

    weights = (w1c, b1c, w2p, b2p, zw2p, zb2p, w3r, b3p, zw3r, zb3p)
    w_bytes = sum(int(w.size) * jnp.dtype(w.dtype).itemsize for w in weights)

    # ---------------- VMEM budgeting & row-tile selection ---------------------------
    try:
        phys_vmem = int(pltpu.get_tpu_info().vmem_capacity_bytes)
    except Exception:
        phys_vmem = 64 * 1024 * 1024          # conservative (v7x per-core VMEM)
    vmem_cap = phys_vmem * 3 // 4             # headroom for Mosaic internal scratch

    def working_set(rt):
        return (2 * rt * d_in_p * item_c      # x tile (double-buffered)
                + w_bytes                     # weights (single-buffered, resident)
                + rt * 2 * dm_p * 4           # h1 (f32)
                + 2 * rt * dm_p * item_c      # h1a / h1b casts
                + 2 * rt * dm_p * 4           # h2a / h2b (f32)
                + 2 * 2 * 8 * rt * 4)         # outputs: 2 arrays x 2 bufs, 8-sublane pad

    if row_tile is None:
        row_tile = 1024 if N >= 2048 else max(128, _round_up(pl.cdiv(N, 2), 128))
    row_tile = max(128, _round_up(row_tile, 128))
    while row_tile > 128 and working_set(row_tile) * 3 // 2 > vmem_cap:
        row_tile -= 128
    if N > 128:
        # Guarantee >= 2 grid steps so v7x's two TensorCores both get work.
        row_tile = min(row_tile, max(128, _round_up(pl.cdiv(N, 2), 128)))

    n_pad = _round_up(N, row_tile)
    grid = (n_pad // row_tile,)
    vmem_limit = int(min(vmem_cap,
                         max(working_set(row_tile) * 3 // 2, 32 * 1024 * 1024)))

    # ---------------- activations: pad only when necessary --------------------------
    x2d = x.reshape(N, D).astype(compute_dtype)
    if n_pad != N or d_in_p != D:
        # Padded rows/features hit zero weight rows, so the result is exact.
        x2d = jnp.pad(x2d, ((0, n_pad - N), (0, d_in_p - D)))

    # ---------------- specs / cost / compile -----------------------------------------
    x_spec = pl.BlockSpec((row_tile, d_in_p), lambda i: (i, 0))
    out_spec = pl.BlockSpec((1, row_tile), lambda i: (0, i))
    out_shape = (jax.ShapeDtypeStruct((1, n_pad), f32),
                 jax.ShapeDtypeStruct((1, n_pad), f32))

    flops = 2 * n_pad * (d_in_p * 2 * dm_p + 2 * dm_p * dm_p + 2 * dm_p)
    bytes_accessed = n_pad * d_in_p * item_c + w_bytes + 2 * n_pad * 4
    cost = pl.CostEstimate(flops=int(flops), transcendentals=int(n_pad),
                           bytes_accessed=int(bytes_accessed))

    cparams = pltpu.CompilerParams(dimension_semantics=("parallel",),
                                   vmem_limit_bytes=vmem_limit)

    def build(single_buffer_weights):
        def rep(arr):
            # Whole (small) parameter block, identical at every grid step.
            if single_buffer_weights:
                return pl.BlockSpec(arr.shape, lambda i: (0, 0),
                                    pipeline_mode=pl.Buffered(1))
            return pl.BlockSpec(arr.shape, lambda i: (0, 0))

        return pl.pallas_call(
            expr_decoder_kernel,
            grid=grid,
            in_specs=[x_spec] + [rep(w) for w in weights],
            out_specs=(out_spec, out_spec),
            out_shape=out_shape,
            compiler_params=cparams,
            cost_estimate=cost,
        )

    try:
        pred_pad, zprob_pad = build(True)(x2d, *weights)
    except Exception:
        # Fallback: if this jax version rejects single-buffering (pl.Buffered(1)),
        # fall back to default double-buffered weight blocks (costs VMEM only).
        pred_pad, zprob_pad = build(False)(x2d, *weights)

    return dict(
        pred=pred_pad[0, :N].reshape(B, S),
        zero_probs=zprob_pad[0, :N].reshape(B, S),
    )


def init_params(key, d_model, use_batch_labels=False):
    """Deterministic synthetic parameters matching nn.Linear shapes
    (stored transposed: (in_features, out_features))."""
    d_in = d_model * 2 if use_batch_labels else d_model
    shapes = [
        (d_in, d_model), (1, d_model),      # fc Linear 1
        (d_model, d_model), (1, d_model),   # fc Linear 2
        (d_model, 1), (1, 1),               # fc Linear 3
        (d_in, d_model), (1, d_model),      # zero_logit Linear 1
        (d_model, d_model), (1, d_model),   # zero_logit Linear 2
        (d_model, 1), (1, 1),               # zero_logit Linear 3
    ]
    keys = jax.random.split(key, len(shapes))
    return tuple(0.1 * jax.random.normal(k, s, dtype=jnp.float32)
                 for k, s in zip(keys, shapes))


def reference_forward(x, params):
    """Pure-JAX (f32) reference of the PyTorch forward pass."""
    (w1, b1, w2, b2, w3, b3, zw1, zb1, zw2, zb2, zw3, zb3) = params

    def mlp3(h, wa, ba, wb, bb, wc, bc):
        h = _leaky_relu(h @ wa + ba)
        h = _leaky_relu(h @ wb + bb)
        return h @ wc + bc

    pred = mlp3(x, w1, b1, w2, b2, w3, b3)[..., 0]
    zlog = mlp3(x, zw1, zb1, zw2, zb2, zw3, zb3)[..., 0]
    return dict(pred=pred, zero_probs=jax.nn.sigmoid(zlog))


if __name__ == "__main__":
    batch, seq_len, d_model = 2, 8, 32

    key = jax.random.PRNGKey(0)
    kx, kp = jax.random.split(key)
    x = jax.random.normal(kx, (batch, seq_len, d_model), dtype=jnp.float32)
    params = init_params(kp, d_model, use_batch_labels=False)

    ref = reference_forward(x, params)

    # f32 compute path: kernel math must match the f32 reference tightly.
    out_f32 = expr_decoder_forward(x, params, compute_dtype=jnp.float32)
    jax.block_until_ready(out_f32)
    assert jnp.allclose(out_f32["pred"], ref["pred"], atol=1e-4, rtol=1e-4)
    assert jnp.allclose(out_f32["zero_probs"], ref["zero_probs"], atol=1e-4, rtol=1e-4)

    # Default bf16 matmul operands (f32 accumulation): expected quantization error.
    out = expr_decoder_forward(x, params)
    jax.block_until_ready(out)
    assert out["pred"].shape == (batch, seq_len)
    assert out["zero_probs"].shape == (batch, seq_len)
    assert jnp.allclose(out["pred"], ref["pred"], atol=5e-2, rtol=5e-2)
    assert jnp.allclose(out["zero_probs"], ref["zero_probs"], atol=5e-2, rtol=5e-2)

    print("KERNEL_OK")
</pallas_src>

<mosaic_0001>
module attributes {stable_mosaic.version = 11 : i64} {
  func.func @expr_decoder_kernel(%arg0: i32, %arg1: memref<128x128xf32, #tpu.memory_space<vmem>>, %arg2: memref<128x256xf32, #tpu.memory_space<vmem>>, %arg3: memref<1x256xf32, #tpu.memory_space<vmem>>, %arg4: memref<128x128xf32, #tpu.memory_space<vmem>>, %arg5: memref<1x128xf32, #tpu.memory_space<vmem>>, %arg6: memref<128x128xf32, #tpu.memory_space<vmem>>, %arg7: memref<1x128xf32, #tpu.memory_space<vmem>>, %arg8: memref<1x128xf32, #tpu.memory_space<vmem>>, %arg9: memref<1x1xf32, #tpu.memory_space<vmem>>, %arg10: memref<1x128xf32, #tpu.memory_space<vmem>>, %arg11: memref<1x1xf32, #tpu.memory_space<vmem>>, %arg12: memref<1x128xf32, #tpu.memory_space<vmem>>, %arg13: memref<1x128xf32, #tpu.memory_space<vmem>>) attributes {dimension_semantics = [#tpu.dimension_semantics<parallel>], iteration_bounds = array<i64: 1>, scalar_prefetch = 0 : i64, scratch_operands = 0 : i64, tpu.core_type = #tpu.core_type<tc>, window_params = [{transform_indices = @transform_0, window_bounds = array<i64: 128, 128>}, {pipeline_mode = #tpu.pipeline_mode<synchronous>, transform_indices = @transform_1, window_bounds = array<i64: 128, 256>}, {pipeline_mode = #tpu.pipeline_mode<synchronous>, transform_indices = @transform_2, window_bounds = array<i64: 1, 256>}, {pipeline_mode = #tpu.pipeline_mode<synchronous>, transform_indices = @transform_3, window_bounds = array<i64: 128, 128>}, {pipeline_mode = #tpu.pipeline_mode<synchronous>, transform_indices = @transform_4, window_bounds = array<i64: 1, 128>}, {pipeline_mode = #tpu.pipeline_mode<synchronous>, transform_indices = @transform_5, window_bounds = array<i64: 128, 128>}, {pipeline_mode = #tpu.pipeline_mode<synchronous>, transform_indices = @transform_6, window_bounds = array<i64: 1, 128>}, {pipeline_mode = #tpu.pipeline_mode<synchronous>, transform_indices = @transform_7, window_bounds = array<i64: 1, 128>}, {pipeline_mode = #tpu.pipeline_mode<synchronous>, transform_indices = @transform_8, window_bounds = array<i64: 1, 1>}, {pipeline_mode = #tpu.pipeline_mode<synchronous>, transform_indices = @transform_9, window_bounds = array<i64: 1, 128>}, {pipeline_mode = #tpu.pipeline_mode<synchronous>, transform_indices = @transform_10, window_bounds = array<i64: 1, 1>}, {transform_indices = @transform_11, window_bounds = array<i64: 1, 128>}, {transform_indices = @transform_12, window_bounds = array<i64: 1, 128>}]} {
    %c0 = arith.constant 0 : index
    %c0_0 = arith.constant 0 : index
    %0 = vector.load %arg1[%c0, %c0_0] : memref<128x128xf32, #tpu.memory_space<vmem>>, vector<128x128xf32>
    %c0_1 = arith.constant 0 : index
    %c0_2 = arith.constant 0 : index
    %1 = vector.load %arg2[%c0_1, %c0_2] : memref<128x256xf32, #tpu.memory_space<vmem>>, vector<128x256xf32>
    %cst = arith.constant dense<0.000000e+00> : vector<128x256xf32>
    %2 = tpu.matmul %0, %1, %cst {dimension_numbers = #tpu.dot_dimension_numbers<[1], [0], [0], [1], [0, 0, 1, 1], [], []>} : vector<128x128xf32>, vector<128x256xf32>, vector<128x256xf32> -> vector<128x256xf32>
    %c0_3 = arith.constant 0 : index
    %c0_4 = arith.constant 0 : index
    %3 = vector.load %arg3[%c0_3, %c0_4] : memref<1x256xf32, #tpu.memory_space<vmem>>, vector<1x256xf32>
    %4 = vector.broadcast %3 : vector<1x256xf32> to vector<128x256xf32>
    %5 = arith.addf %2, %4 : vector<128x256xf32>
    %cst_5 = arith.constant 0.00999999977 : f32
    %6 = vector.broadcast %cst_5 : f32 to vector<128x256xf32>
    %7 = arith.mulf %6, %5 : vector<128x256xf32>
    %8 = arith.maximumf %5, %7 : vector<128x256xf32>
    %9 = vector.extract_strided_slice %8 {offsets = [0, 0], sizes = [128, 128], strides = [1, 1]} : vector<128x256xf32> to vector<128x128xf32>
    %10 = vector.extract_strided_slice %8 {offsets = [0, 128], sizes = [128, 128], strides = [1, 1]} : vector<128x256xf32> to vector<128x128xf32>
    %c0_6 = arith.constant 0 : index
    %c0_7 = arith.constant 0 : index
    %11 = vector.load %arg4[%c0_6, %c0_7] : memref<128x128xf32, #tpu.memory_space<vmem>>, vector<128x128xf32>
    %cst_8 = arith.constant dense<0.000000e+00> : vector<128x128xf32>
    %12 = tpu.matmul %9, %11, %cst_8 {dimension_numbers = #tpu.dot_dimension_numbers<[1], [0], [0], [1], [0, 0, 1, 1], [], []>} : vector<128x128xf32>, vector<128x128xf32>, vector<128x128xf32> -> vector<128x128xf32>
    %c0_9 = arith.constant 0 : index
    %c0_10 = arith.constant 0 : index
    %13 = vector.load %arg5[%c0_9, %c0_10] : memref<1x128xf32, #tpu.memory_space<vmem>>, vector<1x128xf32>
    %14 = vector.broadcast %13 : vector<1x128xf32> to vector<128x128xf32>
    %15 = arith.addf %12, %14 : vector<128x128xf32>
    %cst_11 = arith.constant 0.00999999977 : f32
    %16 = vector.broadcast %cst_11 : f32 to vector<128x128xf32>
    %17 = arith.mulf %16, %15 : vector<128x128xf32>
    %18 = arith.maximumf %15, %17 : vector<128x128xf32>
    %c0_12 = arith.constant 0 : index
    %c0_13 = arith.constant 0 : index
    %19 = vector.load %arg6[%c0_12, %c0_13] : memref<128x128xf32, #tpu.memory_space<vmem>>, vector<128x128xf32>
    %cst_14 = arith.constant dense<0.000000e+00> : vector<128x128xf32>
    %20 = tpu.matmul %10, %19, %cst_14 {dimension_numbers = #tpu.dot_dimension_numbers<[1], [0], [0], [1], [0, 0, 1, 1], [], []>} : vector<128x128xf32>, vector<128x128xf32>, vector<128x128xf32> -> vector<128x128xf32>
    %c0_15 = arith.constant 0 : index
    %c0_16 = arith.constant 0 : index
    %21 = vector.load %arg7[%c0_15, %c0_16] : memref<1x128xf32, #tpu.memory_space<vmem>>, vector<1x128xf32>
    %22 = vector.broadcast %21 : vector<1x128xf32> to vector<128x128xf32>
    %23 = arith.addf %20, %22 : vector<128x128xf32>
    %cst_17 = arith.constant 0.00999999977 : f32
    %24 = vector.broadcast %cst_17 : f32 to vector<128x128xf32>
    %25 = arith.mulf %24, %23 : vector<128x128xf32>
    %26 = arith.maximumf %23, %25 : vector<128x128xf32>
    %c0_18 = arith.constant 0 : index
    %c0_19 = arith.constant 0 : index
    %27 = vector.load %arg8[%c0_18, %c0_19] : memref<1x128xf32, #tpu.memory_space<vmem>>, vector<1x128xf32>
    %28 = vector.broadcast %27 : vector<1x128xf32> to vector<128x128xf32>
    %29 = arith.mulf %18, %28 : vector<128x128xf32>
    %cst_20 = arith.constant dense<0.000000e+00> : vector<128xf32>
    %30 = vector.multi_reduction <add>, %29, %cst_20 [1] : vector<128x128xf32> to vector<128xf32>
    %31 = vector.shape_cast %30 : vector<128xf32> to vector<1x128xf32>
    %c0_21 = arith.constant 0 : index
    %c0_22 = arith.constant 0 : index
    %32 = vector.load %arg9[%c0_21, %c0_22] : memref<1x1xf32, #tpu.memory_space<vmem>>, vector<1x1xf32>
    %33 = vector.broadcast %32 : vector<1x1xf32> to vector<1x128xf32>
    %34 = arith.addf %31, %33 : vector<1x128xf32>
    %c0_23 = arith.constant 0 : index
    %c0_24 = arith.constant 0 : index
    %35 = vector.load %arg10[%c0_23, %c0_24] : memref<1x128xf32, #tpu.memory_space<vmem>>, vector<1x128xf32>
    %36 = vector.broadcast %35 : vector<1x128xf32> to vector<128x128xf32>
    %37 = arith.mulf %26, %36 : vector<128x128xf32>
    %cst_25 = arith.constant dense<0.000000e+00> : vector<128xf32>
    %38 = vector.multi_reduction <add>, %37, %cst_25 [1] : vector<128x128xf32> to vector<128xf32>
    %39 = vector.shape_cast %38 : vector<128xf32> to vector<1x128xf32>
    %c0_26 = arith.constant 0 : index
    %c0_27 = arith.constant 0 : index
    %40 = vector.load %arg11[%c0_26, %c0_27] : memref<1x1xf32, #tpu.memory_space<vmem>>, vector<1x1xf32>
    %41 = vector.broadcast %40 : vector<1x1xf32> to vector<1x128xf32>
    %42 = arith.addf %39, %41 : vector<1x128xf32>
    %c0_28 = arith.constant 0 : index
    %c0_29 = arith.constant 0 : index
    %43 = vector.load %arg12[%c0_28, %c0_29] : memref<1x128xf32, #tpu.memory_space<vmem>>, vector<1x128xf32>
    tpu.vector_store %arg12[%c0_28, %c0_29], %34 {strides = array<i32>} : memref<1x128xf32, #tpu.memory_space<vmem>>, vector<1x128xf32>,
    %44 = arith.negf %42 : vector<1x128xf32>
    %45 = math.exp %44 : vector<1x128xf32>
    %cst_30 = arith.constant 1.000000e+00 : f32
    %46 = vector.broadcast %cst_30 : f32 to vector<1x128xf32>
    %47 = arith.addf %46, %45 : vector<1x128xf32>
    %48 = arith.divf %46, %47 : vector<1x128xf32>
    %c0_31 = arith.constant 0 : index
    %c0_32 = arith.constant 0 : index
    %49 = vector.load %arg13[%c0_31, %c0_32] : memref<1x128xf32, #tpu.memory_space<vmem>>, vector<1x128xf32>
    tpu.vector_store %arg13[%c0_31, %c0_32], %48 {strides = array<i32>} : memref<1x128xf32, #tpu.memory_space<vmem>>, vector<1x128xf32>,
    return
  }
  func.func @transform_0(%arg0: i32) -> (i32, i32) {
    %c0_i32 = arith.constant 0 : i32
    %c0_i32_0 = arith.constant 0 : i32
    return %arg0, %c0_i32 : i32, i32
  }
  func.func @transform_1(%arg0: i32) -> (i32, i32) {
    %c0_i32 = arith.constant 0 : i32
    %c0_i32_0 = arith.constant 0 : i32
    %c0_i32_1 = arith.constant 0 : i32
    return %c0_i32, %c0_i32_0 : i32, i32
  }
  func.func @transform_2(%arg0: i32) -> (i32, i32) {
    %c0_i32 = arith.constant 0 : i32
    %c0_i32_0 = arith.constant 0 : i32
    %c0_i32_1 = arith.constant 0 : i32
    return %c0_i32, %c0_i32_0 : i32, i32
  }
  func.func @transform_3(%arg0: i32) -> (i32, i32) {
    %c0_i32 = arith.constant 0 : i32
    %c0_i32_0 = arith.constant 0 : i32
    %c0_i32_1 = arith.constant 0 : i32
    return %c0_i32, %c0_i32_0 : i32, i32
  }
  func.func @transform_4(%arg0: i32) -> (i32, i32) {
    %c0_i32 = arith.constant 0 : i32
    %c0_i32_0 = arith.constant 0 : i32
    %c0_i32_1 = arith.constant 0 : i32
    return %c0_i32, %c0_i32_0 : i32, i32
  }
  func.func @transform_5(%arg0: i32) -> (i32, i32) {
    %c0_i32 = arith.constant 0 : i32
    %c0_i32_0 = arith.constant 0 : i32
    %c0_i32_1 = arith.constant 0 : i32
    return %c0_i32, %c0_i32_0 : i32, i32
  }
  func.func @transform_6(%arg0: i32) -> (i32, i32) {
    %c0_i32 = arith.constant 0 : i32
    %c0_i32_0 = arith.constant 0 : i32
    %c0_i32_1 = arith.constant 0 : i32
    return %c0_i32, %c0_i32_0 : i32, i32
  }
  func.func @transform_7(%arg0: i32) -> (i32, i32) {
    %c0_i32 = arith.constant 0 : i32
    %c0_i32_0 = arith.constant 0 : i32
    %c0_i32_1 = arith.constant 0 : i32
    return %c0_i32, %c0_i32_0 : i32, i32
  }
  func.func @transform_8(%arg0: i32) -> (i32, i32) {
    %c0_i32 = arith.constant 0 : i32
    %c0_i32_0 = arith.constant 0 : i32
    %c0_i32_1 = arith.constant 0 : i32
    return %c0_i32, %c0_i32_0 : i32, i32
  }
  func.func @transform_9(%arg0: i32) -> (i32, i32) {
    %c0_i32 = arith.constant 0 : i32
    %c0_i32_0 = arith.constant 0 : i32
    %c0_i32_1 = arith.constant 0 : i32
    return %c0_i32, %c0_i32_0 : i32, i32
  }
  func.func @transform_10(%arg0: i32) -> (i32, i32) {
    %c0_i32 = arith.constant 0 : i32
    %c0_i32_0 = arith.constant 0 : i32
    %c0_i32_1 = arith.constant 0 : i32
    return %c0_i32, %c0_i32_0 : i32, i32
  }
  func.func @transform_11(%arg0: i32) -> (i32, i32) {
    %c0_i32 = arith.constant 0 : i32
    %c0_i32_0 = arith.constant 0 : i32
    return %c0_i32, %arg0 : i32, i32
  }
  func.func @transform_12(%arg0: i32) -> (i32, i32) {
    %c0_i32 = arith.constant 0 : i32
    %c0_i32_0 = arith.constant 0 : i32
    return %c0_i32, %arg0 : i32, i32
  }
}

module attributes {stable_mosaic.version = 11 : i64} {
  func.func @expr_decoder_kernel(%arg0: i32, %arg1: memref<128x128xf32, #tpu.memory_space<vmem>>, %arg2: memref<128x256xf32, #tpu.memory_space<vmem>>, %arg3: memref<1x256xf32, #tpu.memory_space<vmem>>, %arg4: memref<128x128xf32, #tpu.memory_space<vmem>>, %arg5: memref<1x128xf32, #tpu.memory_space<vmem>>, %arg6: memref<128x128xf32, #tpu.memory_space<vmem>>, %arg7: memref<1x128xf32, #tpu.memory_space<vmem>>, %arg8: memref<1x128xf32, #tpu.memory_space<vmem>>, %arg9: memref<1x1xf32, #tpu.memory_space<vmem>>, %arg10: memref<1x128xf32, #tpu.memory_space<vmem>>, %arg11: memref<1x1xf32, #tpu.memory_space<vmem>>, %arg12: memref<1x128xf32, #tpu.memory_space<vmem>>, %arg13: memref<1x128xf32, #tpu.memory_space<vmem>>) attributes {dimension_semantics = [#tpu.dimension_semantics<parallel>], iteration_bounds = array<i64: 1>, scalar_prefetch = 0 : i64, scratch_operands = 0 : i64, tpu.core_type = #tpu.core_type<tc>, window_params = [{transform_indices = @transform_0, window_bounds = array<i64: 128, 128>}, {pipeline_mode = #tpu.pipeline_mode<synchronous>, transform_indices = @transform_1, window_bounds = array<i64: 128, 256>}, {pipeline_mode = #tpu.pipeline_mode<synchronous>, transform_indices = @transform_2, window_bounds = array<i64: 1, 256>}, {pipeline_mode = #tpu.pipeline_mode<synchronous>, transform_indices = @transform_3, window_bounds = array<i64: 128, 128>}, {pipeline_mode = #tpu.pipeline_mode<synchronous>, transform_indices = @transform_4, window_bounds = array<i64: 1, 128>}, {pipeline_mode = #tpu.pipeline_mode<synchronous>, transform_indices = @transform_5, window_bounds = array<i64: 128, 128>}, {pipeline_mode = #tpu.pipeline_mode<synchronous>, transform_indices = @transform_6, window_bounds = array<i64: 1, 128>}, {pipeline_mode = #tpu.pipeline_mode<synchronous>, transform_indices = @transform_7, window_bounds = array<i64: 1, 128>}, {pipeline_mode = #tpu.pipeline_mode<synchronous>, transform_indices = @transform_8, window_bounds = array<i64: 1, 1>}, {pipeline_mode = #tpu.pipeline_mode<synchronous>, transform_indices = @transform_9, window_bounds = array<i64: 1, 128>}, {pipeline_mode = #tpu.pipeline_mode<synchronous>, transform_indices = @transform_10, window_bounds = array<i64: 1, 1>}, {transform_indices = @transform_11, window_bounds = array<i64: 1, 128>}, {transform_indices = @transform_12, window_bounds = array<i64: 1, 128>}]} {
    %c0 = arith.constant 0 : index
    %c0_0 = arith.constant 0 : index
    %0 = vector.load %arg1[%c0, %c0_0] : memref<128x128xf32, #tpu.memory_space<vmem>>, vector<128x128xf32>
    %c0_1 = arith.constant 0 : index
    %c0_2 = arith.constant 0 : index
    %1 = vector.load %arg2[%c0_1, %c0_2] : memref<128x256xf32, #tpu.memory_space<vmem>>, vector<128x256xf32>
    %cst = arith.constant dense<0.000000e+00> : vector<128x256xf32>
    %2 = tpu.matmul %0, %1, %cst {dimension_numbers = #tpu.dot_dimension_numbers<[1], [0], [0], [1], [0, 0, 1, 1], [], []>} : vector<128x128xf32>, vector<128x256xf32>, vector<128x256xf32> -> vector<128x256xf32>
    %c0_3 = arith.constant 0 : index
    %c0_4 = arith.constant 0 : index
    %3 = vector.load %arg3[%c0_3, %c0_4] : memref<1x256xf32, #tpu.memory_space<vmem>>, vector<1x256xf32>
    %4 = vector.broadcast %3 : vector<1x256xf32> to vector<128x256xf32>
    %5 = arith.addf %2, %4 : vector<128x256xf32>
    %cst_5 = arith.constant 0.00999999977 : f32
    %6 = vector.broadcast %cst_5 : f32 to vector<128x256xf32>
    %7 = arith.mulf %6, %5 : vector<128x256xf32>
    %8 = arith.maximumf %5, %7 : vector<128x256xf32>
    %9 = vector.extract_strided_slice %8 {offsets = [0, 0], sizes = [128, 128], strides = [1, 1]} : vector<128x256xf32> to vector<128x128xf32>
    %10 = vector.extract_strided_slice %8 {offsets = [0, 128], sizes = [128, 128], strides = [1, 1]} : vector<128x256xf32> to vector<128x128xf32>
    %c0_6 = arith.constant 0 : index
    %c0_7 = arith.constant 0 : index
    %11 = vector.load %arg4[%c0_6, %c0_7] : memref<128x128xf32, #tpu.memory_space<vmem>>, vector<128x128xf32>
    %cst_8 = arith.constant dense<0.000000e+00> : vector<128x128xf32>
    %12 = tpu.matmul %9, %11, %cst_8 {dimension_numbers = #tpu.dot_dimension_numbers<[1], [0], [0], [1], [0, 0, 1, 1], [], []>} : vector<128x128xf32>, vector<128x128xf32>, vector<128x128xf32> -> vector<128x128xf32>
    %c0_9 = arith.constant 0 : index
    %c0_10 = arith.constant 0 : index
    %13 = vector.load %arg5[%c0_9, %c0_10] : memref<1x128xf32, #tpu.memory_space<vmem>>, vector<1x128xf32>
    %14 = vector.broadcast %13 : vector<1x128xf32> to vector<128x128xf32>
    %15 = arith.addf %12, %14 : vector<128x128xf32>
    %cst_11 = arith.constant 0.00999999977 : f32
    %16 = vector.broadcast %cst_11 : f32 to vector<128x128xf32>
    %17 = arith.mulf %16, %15 : vector<128x128xf32>
    %18 = arith.maximumf %15, %17 : vector<128x128xf32>
    %c0_12 = arith.constant 0 : index
    %c0_13 = arith.constant 0 : index
    %19 = vector.load %arg6[%c0_12, %c0_13] : memref<128x128xf32, #tpu.memory_space<vmem>>, vector<128x128xf32>
    %cst_14 = arith.constant dense<0.000000e+00> : vector<128x128xf32>
    %20 = tpu.matmul %10, %19, %cst_14 {dimension_numbers = #tpu.dot_dimension_numbers<[1], [0], [0], [1], [0, 0, 1, 1], [], []>} : vector<128x128xf32>, vector<128x128xf32>, vector<128x128xf32> -> vector<128x128xf32>
    %c0_15 = arith.constant 0 : index
    %c0_16 = arith.constant 0 : index
    %21 = vector.load %arg7[%c0_15, %c0_16] : memref<1x128xf32, #tpu.memory_space<vmem>>, vector<1x128xf32>
    %22 = vector.broadcast %21 : vector<1x128xf32> to vector<128x128xf32>
    %23 = arith.addf %20, %22 : vector<128x128xf32>
    %cst_17 = arith.constant 0.00999999977 : f32
    %24 = vector.broadcast %cst_17 : f32 to vector<128x128xf32>
    %25 = arith.mulf %24, %23 : vector<128x128xf32>
    %26 = arith.maximumf %23, %25 : vector<128x128xf32>
    %c0_18 = arith.constant 0 : index
    %c0_19 = arith.constant 0 : index
    %27 = vector.load %arg8[%c0_18, %c0_19] : memref<1x128xf32, #tpu.memory_space<vmem>>, vector<1x128xf32>
    %28 = vector.broadcast %27 : vector<1x128xf32> to vector<128x128xf32>
    %29 = arith.mulf %18, %28 : vector<128x128xf32>
    %cst_20 = arith.constant dense<0.000000e+00> : vector<128xf32>
    %30 = vector.multi_reduction <add>, %29, %cst_20 [1] : vector<128x128xf32> to vector<128xf32>
    %31 = vector.shape_cast %30 : vector<128xf32> to vector<1x128xf32>
    %c0_21 = arith.constant 0 : index
    %c0_22 = arith.constant 0 : index
    %32 = vector.load %arg9[%c0_21, %c0_22] : memref<1x1xf32, #tpu.memory_space<vmem>>, vector<1x1xf32>
    %33 = vector.broadcast %32 : vector<1x1xf32> to vector<1x128xf32>
    %34 = arith.addf %31, %33 : vector<1x128xf32>
    %c0_23 = arith.constant 0 : index
    %c0_24 = arith.constant 0 : index
    %35 = vector.load %arg10[%c0_23, %c0_24] : memref<1x128xf32, #tpu.memory_space<vmem>>, vector<1x128xf32>
    %36 = vector.broadcast %35 : vector<1x128xf32> to vector<128x128xf32>
    %37 = arith.mulf %26, %36 : vector<128x128xf32>
    %cst_25 = arith.constant dense<0.000000e+00> : vector<128xf32>
    %38 = vector.multi_reduction <add>, %37, %cst_25 [1] : vector<128x128xf32> to vector<128xf32>
    %39 = vector.shape_cast %38 : vector<128xf32> to vector<1x128xf32>
    %c0_26 = arith.constant 0 : index
    %c0_27 = arith.constant 0 : index
    %40 = vector.load %arg11[%c0_26, %c0_27] : memref<1x1xf32, #tpu.memory_space<vmem>>, vector<1x1xf32>
    %41 = vector.broadcast %40 : vector<1x1xf32> to vector<1x128xf32>
    %42 = arith.addf %39, %41 : vector<1x128xf32>
    %c0_28 = arith.constant 0 : index
    %c0_29 = arith.constant 0 : index
    %43 = vector.load %arg12[%c0_28, %c0_29] : memref<1x128xf32, #tpu.memory_space<vmem>>, vector<1x128xf32>
    tpu.vector_store %arg12[%c0_28, %c0_29], %34 {strides = array<i32>} : memref<1x128xf32, #tpu.memory_space<vmem>>, vector<1x128xf32>,
    %44 = arith.negf %42 : vector<1x128xf32>
    %45 = math.exp %44 : vector<1x128xf32>
    %cst_30 = arith.constant 1.000000e+00 : f32
    %46 = vector.broadcast %cst_30 : f32 to vector<1x128xf32>
    %47 = arith.addf %46, %45 : vector<1x128xf32>
    %48 = arith.divf %46, %47 : vector<1x128xf32>
    %c0_31 = arith.constant 0 : index
    %c0_32 = arith.constant 0 : index
    %49 = vector.load %arg13[%c0_31, %c0_32] : memref<1x128xf32, #tpu.memory_space<vmem>>, vector<1x128xf32>
    tpu.vector_store %arg13[%c0_31, %c0_32], %48 {strides = array<i32>} : memref<1x128xf32, #tpu.memory_space<vmem>>, vector<1x128xf32>,
    return
  }
  func.func @transform_0(%arg0: i32) -> (i32, i32) {
    %c0_i32 = arith.constant 0 : i32
    %c0_i32_0 = arith.constant 0 : i32
    return %arg0, %c0_i32 : i32, i32
  }
  func.func @transform_1(%arg0: i32) -> (i32, i32) {
    %c0_i32 = arith.constant 0 : i32
    %c0_i32_0 = arith.constant 0 : i32
    %c0_i32_1 = arith.constant 0 : i32
    return %c0_i32, %c0_i32_0 : i32, i32
  }
  func.func @transform_2(%arg0: i32) -> (i32, i32) {
    %c0_i32 = arith.constant 0 : i32
    %c0_i32_0 = arith.constant 0 : i32
    %c0_i32_1 = arith.constant 0 : i32
    return %c0_i32, %c0_i32_0 : i32, i32
  }
  func.func @transform_3(%arg0: i32) -> (i32, i32) {
    %c0_i32 = arith.constant 0 : i32
    %c0_i32_0 = arith.constant 0 : i32
    %c0_i32_1 = arith.constant 0 : i32
    return %c0_i32, %c0_i32_0 : i32, i32
  }
  func.func @transform_4(%arg0: i32) -> (i32, i32) {
    %c0_i32 = arith.constant 0 : i32
    %c0_i32_0 = arith.constant 0 : i32
    %c0_i32_1 = arith.constant 0 : i32
    return %c0_i32, %c0_i32_0 : i32, i32
  }
  func.func @transform_5(%arg0: i32) -> (i32, i32) {
    %c0_i32 = arith.constant 0 : i32
    %c0_i32_0 = arith.constant 0 : i32
    %c0_i32_1 = arith.constant 0 : i32
    return %c0_i32, %c0_i32_0 : i32, i32
  }
  func.func @transform_6(%arg0: i32) -> (i32, i32) {
    %c0_i32 = arith.constant 0 : i32
    %c0_i32_0 = arith.constant 0 : i32
    %c0_i32_1 = arith.constant 0 : i32
    return %c0_i32, %c0_i32_0 : i32, i32
  }
  func.func @transform_7(%arg0: i32) -> (i32, i32) {
    %c0_i32 = arith.constant 0 : i32
    %c0_i32_0 = arith.constant 0 : i32
    %c0_i32_1 = arith.constant 0 : i32
    return %c0_i32, %c0_i32_0 : i32, i32
  }
  func.func @transform_8(%arg0: i32) -> (i32, i32) {
    %c0_i32 = arith.constant 0 : i32
    %c0_i32_0 = arith.constant 0 : i32
    %c0_i32_1 = arith.constant 0 : i32
    return %c0_i32, %c0_i32_0 : i32, i32
  }
  func.func @transform_9(%arg0: i32) -> (i32, i32) {
    %c0_i32 = arith.constant 0 : i32
    %c0_i32_0 = arith.constant 0 : i32
    %c0_i32_1 = arith.constant 0 : i32
    return %c0_i32, %c0_i32_0 : i32, i32
  }
  func.func @transform_10(%arg0: i32) -> (i32, i32) {
    %c0_i32 = arith.constant 0 : i32
    %c0_i32_0 = arith.constant 0 : i32
    %c0_i32_1 = arith.constant 0 : i32
    return %c0_i32, %c0_i32_0 : i32, i32
  }
  func.func @transform_11(%arg0: i32) -> (i32, i32) {
    %c0_i32 = arith.constant 0 : i32
    %c0_i32_0 = arith.constant 0 : i32
    return %c0_i32, %arg0 : i32, i32
  }
  func.func @transform_12(%arg0: i32) -> (i32, i32) {
    %c0_i32 = arith.constant 0 : i32
    %c0_i32_0 = arith.constant 0 : i32
    return %c0_i32, %arg0 : i32, i32
  }
}

</mosaic_0001>

<bundles_post_ra>
// kernel: tpu_custom_call.1
= control target key start
LH: loop header
LB: loop body
LE: loop exit
PB: predicated region body
PF: predicated region fallthrough
CT: control target
= control target key end

     0   :  { %s2225_s0 = inlined_call_operand.hbm [shape: f32[128,128], index: 0, kind: input, shape index: {}]   ;;  %s2226_s1 = inlined_call_operand.hbm [shape: f32[128,256], index: 1, kind: input, shape index: {}]   ;;  %s2227_s2 = inlined_call_operand.vmem [shape: f32[1,256], index: 2, kind: input, shape index: {}]   ;;  %s2228_s3 = inlined_call_operand.hbm [shape: f32[128,128], index: 3, kind: input, shape index: {}]   ;;  %s2229_s4 = inlined_call_operand.vmem [shape: f32[1,128], index: 4, kind: input, shape index: {}]   ;;  %s2230_s5 = inlined_call_operand.hbm [shape: f32[128,128], index: 5, kind: input, shape index: {}]   ;;  %s2231_s6 = inlined_call_operand.vmem [shape: f32[1,128], index: 6, kind: input, shape index: {}]   ;;  %s2232_s7 = inlined_call_operand.vmem [shape: f32[1,128], index: 7, kind: input, shape index: {}]   ;;  %s2233_s8 = inlined_call_operand.<no memory space> [shape: f32[1,1], index: 8, kind: input, shape index: {}]   ;;  %s2234_s9 = inlined_call_operand.vmem [shape: f32[1,128], index: 9, kind: input, shape index: {}]   ;;  %s2235_s11 = inlined_call_operand.hbm [shape: f32[1,128], index: 11, kind: output, shape index: {0}]   ;;  %s2236_s12 = inlined_call_operand.hbm [shape: f32[1,128], index: 12, kind: output, shape index: {1}]   ;;  %s2237_s10 = inlined_call_operand.<no memory space> [shape: f32[1,1], index: 10, kind: input, shape index: {}]  }
   0x1   :  { %v18_v0 = vstv %s2233_s8  ;;  %v20_v1 = vstv %s2237_s10 }
   0x2   :  { %19 = vst [vmem:[#allocation2] sm:$0x1] %v18_v0 }
   0x3   :  { %21 = vst [vmem:[#allocation3] sm:$0x1] %v20_v1 }
   0x4   :  { %22 = vsyncpa [#allocation5], 0 }
   0x5   :  { %23 = vsyncpa [#allocation8], 0 }
   0x6   :  { %24 = vsyncpa [#allocation11], 0 }
   0x7   :  { %25 = vsyncpa [#allocation6], 0  ;;  %s44_s27 = sshll.u32 %s2226_s1, 4  ;;  %s45_s27 = int_to_ptr.hbm [resolvable:$true] %s44_s27 }
   0x8   :  { %26 = vsyncpa [#allocation14], 0  ;;  %s1461_s28 = smov [#allocation7]   ;;  %s31_s13 = sshll.u32 %s2225_s0, 4  ;;  %s32_s13 = int_to_ptr.hbm [resolvable:$true] %s31_s13 }
   0x9   :  { %s46_s29 = sshll.u32 %s1461_s28, 4  ;;  %s1462_s10 = smov 256   ;;  %s47_s29 = int_to_ptr.vmem [resolvable:$true] %s46_s29 }
   0xa   :  { %s1463_s14 = smov 16   ;;  %s1464_s15 = smov [#allocation4]  }
   0xb   :  { %52 = dma.hbm_to_vmem [thread:$0]  %s45_s27, 4096, %s47_s29, [#allocation8], %s1462_s10, %s1462_s10, %s1463_s14  }
   0xc   :  { %s33_s16 = sshll.u32 %s1464_s15, 4  ;;  %s1465_s17 = smov 128   ;;  %s34_s16 = int_to_ptr.vmem [resolvable:$true] %s33_s16 }
   0xd   :  { %s1466_s18 = smov 8   ;;  %s59_s20 = sshll.u32 %s2228_s3, 4  ;;  %s60_s20 = int_to_ptr.hbm [resolvable:$true] %s59_s20 }
   0xe   :  { %39 = dma.hbm_to_vmem [thread:$0]  %s32_s13, 2048, %s34_s16, [#allocation5], %s1465_s17, %s1465_s17, %s1466_s18  }
   0xf   :  { %s1467_s21 = smov [#allocation9]   ;;  %s74_s24 = sshll.u32 %s2230_s5, 4  ;;  %s75_s24 = int_to_ptr.hbm [resolvable:$true] %s74_s24 }
  0x10   :  { %s61_s22 = sshll.u32 %s1467_s21, 4  ;;  %s1468_s25 = smov [#allocation10]   ;;  %s62_s22 = int_to_ptr.vmem [resolvable:$true] %s61_s22 }
  0x11   :  { %67 = dma.hbm_to_vmem [thread:$0]  %s60_s20, 2048, %s62_s22, [#allocation8], %s1465_s17, %s1465_s17, %s1466_s18  }
  0x12   :  { %s76_s26 = sshll.u32 %s1468_s25, 4  ;;  %s77_s26 = int_to_ptr.vmem [resolvable:$true] %s76_s26 }
  0x13   :  { %82 = dma.hbm_to_vmem [thread:$0]  %s75_s24, 2048, %s77_s26, [#allocation11], %s1465_s17, %s1465_s17, %s1466_s18  }
  0x14   :  { %1451 = dma.done.wait [#allocation5], 2048  }
  0x15   :  { %1452 = vsyncadd [#allocation5], 4294965248 }
  0x16   :  { %1453 = dma.done.wait [#allocation8], 6144  }
  0x17   :  { %1454 = vsyncadd [#allocation8], 4294961152 }
  0x18   :  { %1455 = dma.done.wait [#allocation11], 2048  }
  0x19   :  { %1456 = vsyncadd [#allocation11], 4294965248  ;;  %v155_v2 = vld [vmem:[#allocation7 + $0xf0] sm:$0xff]  ;;  %v156_v3 = vld [vmem:[#allocation7 + $0xf8] sm:$0xff]  ;;  %vm762_vm12 = vcmask 130112   ;;  %vm766_vm13 = vcmask 195712  }
  0x1a   :  { %v153_v4 = vld [vmem:[#allocation7 + $0xe0] sm:$0xff]  ;;  %163 = vmatpush.msra.mxu0 %v155_v2  ;;  %228 = vmatpush.msra.mxu1 %v156_v3  ;;  %v154_v5 = vld [vmem:[#allocation7 + $0xe8] sm:$0xff]  ;;  %v151_v6 = vld [vmem:[#allocation7 + $0xd0] sm:$0xff]  ;;  %s1193_s14 = sshll.u32 %s2236_s12, 4  ;;  %s1471_s12 = smov [#allocation12]   ;;  %s1194_s14 = int_to_ptr.hbm [resolvable:$true] %s1193_s14 }
  0x1b   :  { %v152_v7 = vld [vmem:[#allocation7 + $0xd8] sm:$0xff]  ;;  %v149_v8 = vld [vmem:[#allocation7 + $0xc0] sm:$0xff]  ;;  %v150_v9 = vld [vmem:[#allocation7 + $0xc8] sm:$0xff]  ;;  %s1180_s15 = sshll.u32 %s1471_s12, 4  ;;  %s1182_s18 = sshll.u32 %s2235_s11, 4  ;;  %s1181_s15 = int_to_ptr.vmem [resolvable:$true] %s1180_s15  ;;  %s1183_s18 = int_to_ptr.hbm [resolvable:$true] %s1182_s18 }
  0x1c   :  { %164 = vmatpush.msra.mxu0 %v153_v4  ;;  %229 = vmatpush.msra.mxu1 %v154_v5  ;;  %v147_v10 = vld [vmem:[#allocation7 + $0xb0] sm:$0xff]  ;;  %v148_v11 = vld [vmem:[#allocation7 + $0xb8] sm:$0xff]  ;;  %v145_v12 = vld [vmem:[#allocation7 + $0xa0] sm:$0xff] }
  0x1d   :  { %v146_v13 = vld [vmem:[#allocation7 + $0xa8] sm:$0xff]  ;;  %v143_v14 = vld [vmem:[#allocation7 + $0x90] sm:$0xff]  ;;  %v144_v15 = vld [vmem:[#allocation7 + $0x98] sm:$0xff] }
  0x1e   :  { %165 = vmatpush.msra.mxu0 %v151_v6  ;;  %230 = vmatpush.msra.mxu1 %v152_v7  ;;  %v141_v16 = vld [vmem:[#allocation7 + $0x80] sm:$0xff]  ;;  %v142_v17 = vld [vmem:[#allocation7 + $0x88] sm:$0xff]  ;;  %v139_v18 = vld [vmem:[#allocation7 + $0x70] sm:$0xff] }
  0x1f   :  { %v140_v19 = vld [vmem:[#allocation7 + $0x78] sm:$0xff]  ;;  %v137_v20 = vld [vmem:[#allocation7 + $0x60] sm:$0xff]  ;;  %v138_v21 = vld [vmem:[#allocation7 + $0x68] sm:$0xff] }
  0x20   :  { %166 = vmatpush.msra.mxu0 %v149_v8  ;;  %231 = vmatpush.msra.mxu1 %v150_v9  ;;  %v135_v22 = vld [vmem:[#allocation7 + $0x50] sm:$0xff]  ;;  %v136_v23 = vld [vmem:[#allocation7 + $0x58] sm:$0xff]  ;;  %v133_v24 = vld [vmem:[#allocation7 + $0x40] sm:$0xff] }
  0x21   :  { %v134_v25 = vld [vmem:[#allocation7 + $0x48] sm:$0xff]  ;;  %v131_v26 = vld [vmem:[#allocation7 + $0x30] sm:$0xff]  ;;  %v132_v27 = vld [vmem:[#allocation7 + $0x38] sm:$0xff] }
  0x22   :  { %167 = vmatpush.msra.mxu0 %v147_v10  ;;  %232 = vmatpush.msra.mxu1 %v148_v11  ;;  %v129_v28 = vld [vmem:[#allocation7 + $0x20] sm:$0xff]  ;;  %v130_v29 = vld [vmem:[#allocation7 + $0x28] sm:$0xff]  ;;  %v127_v30 = vld [vmem:[#allocation7 + $0x10] sm:$0xff] }
  0x23   :  { %v128_v31 = vld [vmem:[#allocation7 + $0x18] sm:$0xff]  ;;  %v125_v32 = vld [vmem:[#allocation7] sm:$0xff]  ;;  %v126_v33 = vld [vmem:[#allocation7 + $0x8] sm:$0xff] }
  0x24   :  { %168 = vmatpush.msra.mxu0 %v145_v12  ;;  %233 = vmatpush.msra.mxu1 %v146_v13  ;;  %v109_v34 = vld [vmem:[#allocation4] sm:$0xff]  ;;  %v110_v35 = vld [vmem:[#allocation4 + $0x8] sm:$0xff]  ;;  %v111_v36 = vld [vmem:[#allocation4 + $0x10] sm:$0xff] }
  0x25   :  { %v112_v37 = vld [vmem:[#allocation4 + $0x18] sm:$0xff]  ;;  %v113_v38 = vld [vmem:[#allocation4 + $0x20] sm:$0xff]  ;;  %v114_v39 = vld [vmem:[#allocation4 + $0x28] sm:$0xff] }
  0x26   :  { %169 = vmatpush.msra.mxu0 %v143_v14  ;;  %234 = vmatpush.msra.mxu1 %v144_v15  ;;  %v115_v40 = vld [vmem:[#allocation4 + $0x30] sm:$0xff]  ;;  %v116_v41 = vld [vmem:[#allocation4 + $0x38] sm:$0xff]  ;;  %v117_v42 = vld [vmem:[#allocation4 + $0x40] sm:$0xff] }
  0x27   :  { %v372_v43 = vld [vmem:[#allocation9 + $0x78] sm:$0xff]  ;;  %v371_v45 = vld [vmem:[#allocation9 + $0x70] sm:$0xff]  ;;  %v118_v47 = vld [vmem:[#allocation4 + $0x48] sm:$0xff] }
  0x28   :  { %170 = vmatpush.msra.mxu0 %v141_v16  ;;  %235 = vmatpush.msra.mxu1 %v142_v17  ;;  %v489_v44 = vld [vmem:[#allocation10 + $0x78] sm:$0xff]  ;;  %v488_v46 = vld [vmem:[#allocation10 + $0x70] sm:$0xff]  ;;  %v370_v48 = vld [vmem:[#allocation9 + $0x68] sm:$0xff] }
  0x29   :  { %377 = vmatpush.msra.mxu2 %v372_v43  ;;  %494 = vmatpush.msra.mxu3 %v489_v44  ;;  %v487_v49 = vld [vmem:[#allocation10 + $0x68] sm:$0xff]  ;;  %v369_v50 = vld [vmem:[#allocation9 + $0x60] sm:$0xff]  ;;  %v368_v52 = vld [vmem:[#allocation9 + $0x58] sm:$0xff] }
  0x2a   :  { %171 = vmatpush.msra.mxu0 %v139_v18  ;;  %236 = vmatpush.msra.mxu1 %v140_v19  ;;  %v486_v51 = vld [vmem:[#allocation10 + $0x60] sm:$0xff]  ;;  %v485_v53 = vld [vmem:[#allocation10 + $0x58] sm:$0xff]  ;;  %v367_v54 = vld [vmem:[#allocation9 + $0x50] sm:$0xff] }
  0x2b   :  { %378 = vmatpush.msra.mxu2 %v371_v45  ;;  %495 = vmatpush.msra.mxu3 %v488_v46  ;;  %v484_v55 = vld [vmem:[#allocation10 + $0x50] sm:$0xff]  ;;  %v366_v57 = vld [vmem:[#allocation9 + $0x48] sm:$0xff]  ;;  %v365_v59 = vld [vmem:[#allocation9 + $0x40] sm:$0xff] }
  0x2c   :  { %172 = vmatpush.msra.mxu0 %v137_v20  ;;  %237 = vmatpush.msra.mxu1 %v138_v21  ;;  %v119_v56 = vld [vmem:[#allocation4 + $0x50] sm:$0xff]  ;;  %v483_v58 = vld [vmem:[#allocation10 + $0x48] sm:$0xff]  ;;  %v482_v60 = vld [vmem:[#allocation10 + $0x40] sm:$0xff] }
  0x2d   :  { %379 = vmatpush.msra.mxu2 %v370_v48  ;;  %496 = vmatpush.msra.mxu3 %v487_v49  ;;  %v364_v61 = vld [vmem:[#allocation9 + $0x38] sm:$0xff]  ;;  %v363_v63 = vld [vmem:[#allocation9 + $0x30] sm:$0xff]  ;;  %v362_v2 = vld [vmem:[#allocation9 + $0x28] sm:$0xff] }
  0x2e   :  { %173 = vmatpush.msra.mxu0 %v135_v22  ;;  %238 = vmatpush.msra.mxu1 %v136_v23  ;;  %v481_v62 = vld [vmem:[#allocation10 + $0x38] sm:$0xff]  ;;  %v480_v0 = vld [vmem:[#allocation10 + $0x30] sm:$0xff]  ;;  %v479_v3 = vld [vmem:[#allocation10 + $0x28] sm:$0xff] }
  0x2f   :  { %380 = vmatpush.msra.mxu2 %v369_v50  ;;  %497 = vmatpush.msra.mxu3 %v486_v51  ;;  %v120_v1 = vld [vmem:[#allocation4 + $0x58] sm:$0xff]  ;;  %v361_v4 = vld [vmem:[#allocation9 + $0x20] sm:$0xff]  ;;  %v359_v9 = vld [vmem:[#allocation9 + $0x10] sm:$0xff] }
  0x30   :  { %174 = vmatpush.msra.mxu0 %v133_v24  ;;  %239 = vmatpush.msra.mxu1 %v134_v25  ;;  %v478_v5 = vld [vmem:[#allocation10 + $0x20] sm:$0xff]  ;;  %v360_v6 = vld [vmem:[#allocation9 + $0x18] sm:$0xff]  ;;  %v476_v10 = vld [vmem:[#allocation10 + $0x10] sm:$0xff] }
  0x31   :  { %381 = vmatpush.msra.mxu2 %v368_v52  ;;  %498 = vmatpush.msra.mxu3 %v485_v53  ;;  %v477_v7 = vld [vmem:[#allocation10 + $0x18] sm:$0xff]  ;;  %v121_v8 = vld [vmem:[#allocation4 + $0x60] sm:$0xff]  ;;  %v358_v11 = vld [vmem:[#allocation9 + $0x8] sm:$0xff] }
  0x32   :  { %175 = vmatpush.msra.mxu0 %v131_v26  ;;  %240 = vmatpush.msra.mxu1 %v132_v27  ;;  %v475_v12 = vld [vmem:[#allocation10 + $0x8] sm:$0xff]  ;;  %v357_v13 = vld [vmem:[#allocation9] sm:$0xff]  ;;  %v123_v16 = vld [vmem:[#allocation4 + $0x70] sm:$0xff] }
  0x33   :  { %382 = vmatpush.msra.mxu2 %v367_v54  ;;  %499 = vmatpush.msra.mxu3 %v484_v55  ;;  %v474_v14 = vld [vmem:[#allocation10] sm:$0xff]  ;;  %v122_v15 = vld [vmem:[#allocation4 + $0x68] sm:$0xff]  ;;  %v124_v17 = vld [vmem:[#allocation4 + $0x78] sm:$0xff] }
  0x34   :  { %176 = vmatpush.msra.mxu0 %v129_v28  ;;  %241 = vmatpush.msra.mxu1 %v130_v29  ;;  %v157_v18 = vld [vmem:[%s2227_s2] sm:$0x3] }
  0x35   :  { %383 = vmatpush.msra.mxu2 %v366_v57  ;;  %500 = vmatpush.msra.mxu3 %v483_v58  ;;  %v1558_v19 = vperm.slane %v157_v18, 0  ;;  %v1560_v20 = vperm.slane %v157_v18, 1 }
  0x36   :  { %177 = vmatpush.msra.mxu0 %v127_v30  ;;  %242 = vmatpush.msra.mxu1 %v128_v31 }
  0x37   :  { %384 = vmatpush.msra.mxu2 %v365_v59  ;;  %501 = vmatpush.msra.mxu3 %v482_v60 }
  0x38   :  { %178 = vmatpush.msra.mxu0 %v125_v32  ;;  %243 = vmatpush.msra.mxu1 %v126_v33 }
  0x39   :  { %179 = vmatmul.f32.vlgmr.msra.gmra.mxu0 %v109_v34  ;;  %244 = vmatmul.f32.vlgmr.msra.gmra.mxu1 %v109_v34 }
  0x3a   :  { %385 = vmatpush.msra.mxu2 %v364_v61  ;;  %502 = vmatpush.msra.mxu3 %v481_v62 }
  0x3c   :  { %386 = vmatpush.msra.mxu2 %v363_v63  ;;  %503 = vmatpush.msra.mxu3 %v480_v0 }
  0x3e   :  { %387 = vmatpush.msra.mxu2 %v362_v2  ;;  %504 = vmatpush.msra.mxu3 %v479_v3 }
  0x40   :  { %388 = vmatpush.msra.mxu2 %v361_v4  ;;  %505 = vmatpush.msra.mxu3 %v478_v5 }
  0x41   :  { %182 = vmatmul.f32.gmra.mxu0 %v110_v35  ;;  %247 = vmatmul.f32.gmra.mxu1 %v110_v35 }
  0x42   :  { %389 = vmatpush.msra.mxu2 %v360_v6  ;;  %506 = vmatpush.msra.mxu3 %v477_v7 }
  0x44   :  { %390 = vmatpush.msra.mxu2 %v359_v9  ;;  %507 = vmatpush.msra.mxu3 %v476_v10 }
  0x46   :  { %391 = vmatpush.msra.mxu2 %v358_v11  ;;  %508 = vmatpush.msra.mxu3 %v475_v12 }
  0x48   :  { %392 = vmatpush.msra.mxu2 %v357_v13  ;;  %509 = vmatpush.msra.mxu3 %v474_v14 }
  0x49   :  { %185 = vmatmul.f32.gmra.mxu0 %v111_v36  ;;  %250 = vmatmul.f32.gmra.mxu1 %v111_v36 }
  0x51   :  { %188 = vmatmul.f32.gmra.mxu0 %v112_v37  ;;  %253 = vmatmul.f32.gmra.mxu1 %v112_v37 }
  0x59   :  { %191 = vmatmul.f32.gmra.mxu0 %v113_v38  ;;  %256 = vmatmul.f32.gmra.mxu1 %v113_v38 }
  0x61   :  { %194 = vmatmul.f32.gmra.mxu0 %v114_v39  ;;  %259 = vmatmul.f32.gmra.mxu1 %v114_v39 }
  0x69   :  { %197 = vmatmul.f32.gmra.mxu0 %v115_v40  ;;  %262 = vmatmul.f32.gmra.mxu1 %v115_v40 }
  0x71   :  { %200 = vmatmul.f32.gmra.mxu0 %v116_v41  ;;  %265 = vmatmul.f32.gmra.mxu1 %v116_v41 }
  0x79   :  { %203 = vmatmul.f32.gmra.mxu0 %v117_v42  ;;  %268 = vmatmul.f32.gmra.mxu1 %v117_v42 }
  0x81   :  { %206 = vmatmul.f32.gmra.mxu0 %v118_v47  ;;  %271 = vmatmul.f32.gmra.mxu1 %v118_v47 }
  0x89   :  { %209 = vmatmul.f32.gmra.mxu0 %v119_v56  ;;  %274 = vmatmul.f32.gmra.mxu1 %v119_v56 }
  0x91   :  { %212 = vmatmul.f32.gmra.mxu0 %v120_v1  ;;  %277 = vmatmul.f32.gmra.mxu1 %v120_v1 }
  0x99   :  { %215 = vmatmul.f32.gmra.mxu0 %v121_v8  ;;  %280 = vmatmul.f32.gmra.mxu1 %v121_v8 }
  0xa1   :  { %218 = vmatmul.f32.gmra.mxu0 %v122_v15  ;;  %283 = vmatmul.f32.gmra.mxu1 %v122_v15 }
  0xa9   :  { %221 = vmatmul.f32.gmra.mxu0 %v123_v16  ;;  %286 = vmatmul.f32.gmra.mxu1 %v123_v16 }
  0xb1   :  { %289 = vmatmul.f32.gmra.mxu1 %v124_v17  ;;  %224 = vmatmul.f32.gmra.mxu0 %v124_v17 }
  0xb6   :  { %v180_v21 = vpop.f32.mrf.mxu0  ;;  %v245_v22 = vpop.f32.mrf.mxu1 }
  0xb7   :  { %v181_v23 = vadd.f32 %v180_v21, %v1558_v19  ;;  %v246_v24 = vadd.f32 %v245_v22, %v1560_v20 }
  0xb9   :  { %v293_v25 = vmul.f32 0.01, %v181_v23  ;;  %v294_v26 = vmul.f32 0.01, %v246_v24 }
  0xbb   :  { %v325_v27 = vmax.f32 %v181_v23, %v293_v25  ;;  %v326_v28 = vmax.f32 %v246_v24, %v294_v26 }
  0xbd   :  { %393 = vmatmul.f32.vlgmr.msra.gmra.mxu2 %v325_v27  ;;  %510 = vmatmul.f32.vlgmr.msra.gmra.mxu3 %v326_v28 }
  0xbe   :  { %v183_v29 = vpop.f32.mrf.mxu0  ;;  %v248_v30 = vpop.f32.mrf.mxu1 }
  0xbf   :  { %v184_v31 = vadd.f32 %v183_v29, %v1558_v19  ;;  %v249_v32 = vadd.f32 %v248_v30, %v1560_v20 }
  0xc1   :  { %v295_v33 = vmul.f32 0.01, %v184_v31  ;;  %v296_v34 = vmul.f32 0.01, %v249_v32 }
  0xc3   :  { %v327_v35 = vmax.f32 %v184_v31, %v295_v33  ;;  %v328_v36 = vmax.f32 %v249_v32, %v296_v34 }
  0xc5   :  { %396 = vmatmul.f32.gmra.mxu2 %v327_v35  ;;  %513 = vmatmul.f32.gmra.mxu3 %v328_v36 }
  0xc6   :  { %v186_v37 = vpop.f32.mrf.mxu0  ;;  %v251_v38 = vpop.f32.mrf.mxu1 }
  0xc7   :  { %v187_v39 = vadd.f32 %v186_v37, %v1558_v19  ;;  %v252_v40 = vadd.f32 %v251_v38, %v1560_v20 }
  0xc9   :  { %v297_v41 = vmul.f32 0.01, %v187_v39  ;;  %v298_v42 = vmul.f32 0.01, %v252_v40 }
  0xcb   :  { %v329_v43 = vmax.f32 %v187_v39, %v297_v41  ;;  %v330_v44 = vmax.f32 %v252_v40, %v298_v42  ;;  %v1469_v41 = vmov 0  }
  0xcc   :  { %1237 = vset.pattern.permute.xlu1 %v1469_v41  ;;  %1238 = vset.pattern.permute.xlu0 %v1469_v41 }
  0xcd   :  { %399 = vmatmul.f32.gmra.mxu2 %v329_v43  ;;  %516 = vmatmul.f32.gmra.mxu3 %v330_v44 }
  0xce   :  { %v189_v45 = vpop.f32.mrf.mxu0  ;;  %v254_v46 = vpop.f32.mrf.mxu1 }
  0xcf   :  { %v190_v47 = vadd.f32 %v189_v45, %v1558_v19  ;;  %v255_v48 = vadd.f32 %v254_v46, %v1560_v20  ;;  %v718_v46 = vld [vmem:[#allocation3] sm:$0x1] }
  0xd0   :  { %721 = vperm.xlu1 %1237, %v718_v46  }
  0xd1   :  { %v299_v49 = vmul.f32 0.01, %v190_v47  ;;  %v300_v50 = vmul.f32 0.01, %v255_v48 }
  0xd3   :  { %v331_v51 = vmax.f32 %v190_v47, %v299_v49  ;;  %v332_v52 = vmax.f32 %v255_v48, %v300_v50 }
  0xd5   :  { %402 = vmatmul.f32.gmra.mxu2 %v331_v51  ;;  %519 = vmatmul.f32.gmra.mxu3 %v332_v52 }
  0xd6   :  { %v192_v53 = vpop.f32.mrf.mxu0  ;;  %v257_v54 = vpop.f32.mrf.mxu1 }
  0xd7   :  { %v193_v55 = vadd.f32 %v192_v53, %v1558_v19  ;;  %v258_v56 = vadd.f32 %v257_v54, %v1560_v20 }
  0xd9   :  { %v301_v57 = vmul.f32 0.01, %v193_v55  ;;  %v302_v58 = vmul.f32 0.01, %v258_v56 }
  0xdb   :  { %v333_v59 = vmax.f32 %v193_v55, %v301_v57  ;;  %v334_v60 = vmax.f32 %v258_v56, %v302_v58 }
  0xdd   :  { %405 = vmatmul.f32.gmra.mxu2 %v333_v59  ;;  %522 = vmatmul.f32.gmra.mxu3 %v334_v60 }
  0xde   :  { %v195_v61 = vpop.f32.mrf.mxu0  ;;  %v260_v62 = vpop.f32.mrf.mxu1 }
  0xdf   :  { %v196_v63 = vadd.f32 %v195_v61, %v1558_v19  ;;  %v261_v0 = vadd.f32 %v260_v62, %v1560_v20 }
  0xe1   :  { %v303_v1 = vmul.f32 0.01, %v196_v63  ;;  %v304_v2 = vmul.f32 0.01, %v261_v0 }
  0xe3   :  { %v335_v3 = vmax.f32 %v196_v63, %v303_v1  ;;  %v336_v4 = vmax.f32 %v261_v0, %v304_v2 }
  0xe5   :  { %408 = vmatmul.f32.gmra.mxu2 %v335_v3  ;;  %525 = vmatmul.f32.gmra.mxu3 %v336_v4 }
  0xe6   :  { %v198_v5 = vpop.f32.mrf.mxu0  ;;  %v263_v6 = vpop.f32.mrf.mxu1 }
  0xe7   :  { %v199_v7 = vadd.f32 %v198_v5, %v1558_v19  ;;  %v264_v8 = vadd.f32 %v263_v6, %v1560_v20 }
  0xe9   :  { %v305_v9 = vmul.f32 0.01, %v199_v7  ;;  %v306_v10 = vmul.f32 0.01, %v264_v8 }
  0xeb   :  { %v337_v11 = vmax.f32 %v199_v7, %v305_v9  ;;  %v338_v12 = vmax.f32 %v264_v8, %v306_v10 }
  0xed   :  { %411 = vmatmul.f32.gmra.mxu2 %v337_v11  ;;  %528 = vmatmul.f32.gmra.mxu3 %v338_v12 }
  0xee   :  { %v201_v13 = vpop.f32.mrf.mxu0  ;;  %v266_v14 = vpop.f32.mrf.mxu1 }
  0xef   :  { %v202_v15 = vadd.f32 %v201_v13, %v1558_v19  ;;  %v267_v16 = vadd.f32 %v266_v14, %v1560_v20 }
  0xf1   :  { %v307_v17 = vmul.f32 0.01, %v202_v15  ;;  %v308_v18 = vmul.f32 0.01, %v267_v16 }
  0xf3   :  { %v339_v21 = vmax.f32 %v202_v15, %v307_v17  ;;  %v340_v22 = vmax.f32 %v267_v16, %v308_v18 }
  0xf5   :  { %414 = vmatmul.f32.gmra.mxu2 %v339_v21  ;;  %531 = vmatmul.f32.gmra.mxu3 %v340_v22 }
  0xf6   :  { %v204_v23 = vpop.f32.mrf.mxu0  ;;  %v269_v24 = vpop.f32.mrf.mxu1 }
  0xf7   :  { %v205_v25 = vadd.f32 %v204_v23, %v1558_v19  ;;  %v270_v26 = vadd.f32 %v269_v24, %v1560_v20 }
  0xf9   :  { %v309_v27 = vmul.f32 0.01, %v205_v25  ;;  %v310_v28 = vmul.f32 0.01, %v270_v26 }
  0xfb   :  { %v341_v29 = vmax.f32 %v205_v25, %v309_v27  ;;  %v342_v30 = vmax.f32 %v270_v26, %v310_v28  ;;  %v1597_v27 = vld [vmem:[%s2229_s4] ss:$0 sm:$0xff] }
  0xfc   :  { %v1602_v28 = vld [vmem:[%s2231_s6] ss:$0 sm:$0xff]  ;;  %s1470_s6 = smov [#allocation13]  }
  0xfd   :  { %417 = vmatmul.f32.gmra.mxu2 %v341_v29  ;;  %534 = vmatmul.f32.gmra.mxu3 %v342_v30 }
  0xfe   :  { %v207_v31 = vpop.f32.mrf.mxu0  ;;  %v272_v32 = vpop.f32.mrf.mxu1 }
  0xff   :  { %v208_v33 = vadd.f32 %v207_v31, %v1558_v19  ;;  %v273_v34 = vadd.f32 %v272_v32, %v1560_v20  ;;  %v1609_v31 = vld [vmem:[%s2234_s9] ss:$0 sm:$0xff] }
 0x101   :  { %v311_v35 = vmul.f32 0.01, %v208_v33  ;;  %v312_v36 = vmul.f32 0.01, %v273_v34 }
 0x103   :  { %v343_v37 = vmax.f32 %v208_v33, %v311_v35  ;;  %v344_v38 = vmax.f32 %v273_v34, %v312_v36  ;;  %v1614_v34 = vld [vmem:[%s2232_s7] ss:$0 sm:$0xff]  ;;  %s1191_s7 = sshll.u32 %s1470_s6, 4  ;;  %s1192_s7 = int_to_ptr.vmem [resolvable:$true] %s1191_s7 }
 0x105   :  { %420 = vmatmul.f32.gmra.mxu2 %v343_v37  ;;  %537 = vmatmul.f32.gmra.mxu3 %v344_v38 }
 0x106   :  { %v210_v39 = vpop.f32.mrf.mxu0  ;;  %v275_v40 = vpop.f32.mrf.mxu1 }
 0x107   :  { %v211_v42 = vadd.f32 %v210_v39, %v1558_v19  ;;  %v276_v43 = vadd.f32 %v275_v40, %v1560_v20 }
 0x109   :  { %v313_v44 = vmul.f32 0.01, %v211_v42  ;;  %v314_v45 = vmul.f32 0.01, %v276_v43 }
 0x10b   :  { %v345_v47 = vmax.f32 %v211_v42, %v313_v44  ;;  %v346_v48 = vmax.f32 %v276_v43, %v314_v45 }
 0x10d   :  { %423 = vmatmul.f32.gmra.mxu2 %v345_v47  ;;  %540 = vmatmul.f32.gmra.mxu3 %v346_v48 }
 0x10e   :  { %v213_v49 = vpop.f32.mrf.mxu0  ;;  %v278_v50 = vpop.f32.mrf.mxu1 }
 0x10f   :  { %v214_v51 = vadd.f32 %v213_v49, %v1558_v19  ;;  %v279_v52 = vadd.f32 %v278_v50, %v1560_v20 }
 0x111   :  { %v315_v53 = vmul.f32 0.01, %v214_v51  ;;  %v316_v54 = vmul.f32 0.01, %v279_v52 }
 0x113   :  { %v347_v55 = vmax.f32 %v214_v51, %v315_v53  ;;  %v348_v56 = vmax.f32 %v279_v52, %v316_v54 }
 0x115   :  { %426 = vmatmul.f32.gmra.mxu2 %v347_v55  ;;  %543 = vmatmul.f32.gmra.mxu3 %v348_v56 }
 0x116   :  { %v216_v57 = vpop.f32.mrf.mxu0  ;;  %v281_v58 = vpop.f32.mrf.mxu1 }
 0x117   :  { %v217_v59 = vadd.f32 %v216_v57, %v1558_v19  ;;  %v282_v60 = vadd.f32 %v281_v58, %v1560_v20 }
 0x119   :  { %v317_v61 = vmul.f32 0.01, %v217_v59  ;;  %v318_v62 = vmul.f32 0.01, %v282_v60 }
 0x11b   :  { %v349_v63 = vmax.f32 %v217_v59, %v317_v61  ;;  %v350_v0 = vmax.f32 %v282_v60, %v318_v62 }
 0x11d   :  { %429 = vmatmul.f32.gmra.mxu2 %v349_v63  ;;  %546 = vmatmul.f32.gmra.mxu3 %v350_v0 }
 0x11e   :  { %v219_v1 = vpop.f32.mrf.mxu0  ;;  %v284_v2 = vpop.f32.mrf.mxu1 }
 0x11f   :  { %v220_v3 = vadd.f32 %v219_v1, %v1558_v19  ;;  %v285_v4 = vadd.f32 %v284_v2, %v1560_v20 }
 0x121   :  { %v319_v5 = vmul.f32 0.01, %v220_v3  ;;  %v320_v6 = vmul.f32 0.01, %v285_v4 }
 0x123   :  { %v351_v7 = vmax.f32 %v220_v3, %v319_v5  ;;  %v352_v8 = vmax.f32 %v285_v4, %v320_v6 }
 0x125   :  { %432 = vmatmul.f32.gmra.mxu2 %v351_v7  ;;  %549 = vmatmul.f32.gmra.mxu3 %v352_v8 }
 0x126   :  { %v222_v9 = vpop.f32.mrf.mxu0  ;;  %v287_v10 = vpop.f32.mrf.mxu1 }
 0x127   :  { %v223_v11 = vadd.f32 %v222_v9, %v1558_v19  ;;  %v288_v12 = vadd.f32 %v287_v10, %v1560_v20 }
 0x129   :  { %v321_v13 = vmul.f32 0.01, %v223_v11  ;;  %v322_v14 = vmul.f32 0.01, %v288_v12 }
 0x12b   :  { %v353_v15 = vmax.f32 %v223_v11, %v321_v13  ;;  %v354_v16 = vmax.f32 %v288_v12, %v322_v14 }
 0x12d   :  { %435 = vmatmul.f32.gmra.mxu2 %v353_v15  ;;  %552 = vmatmul.f32.gmra.mxu3 %v354_v16 }
 0x12e   :  { %v290_v17 = vpop.f32.mrf.mxu1  ;;  %v225_v18 = vpop.f32.mrf.mxu0 }
 0x12f   :  { %v291_v21 = vadd.f32 %v290_v17, %v1560_v20  ;;  %v226_v22 = vadd.f32 %v225_v18, %v1558_v19 }
 0x131   :  { %v324_v23 = vmul.f32 0.01, %v291_v21  ;;  %v323_v24 = vmul.f32 0.01, %v226_v22 }
 0x133   :  { %v356_v25 = vmax.f32 %v291_v21, %v324_v23  ;;  %v355_v26 = vmax.f32 %v226_v22, %v323_v24 }
 0x135   :  { %555 = vmatmul.f32.gmra.mxu3 %v356_v25  ;;  %438 = vmatmul.f32.gmra.mxu2 %v355_v26 }
 0x140   :  { %v394_v29 = vpop.f32.mrf.mxu2  ;;  %v511_v20 = vpop.f32.mrf.mxu3 }
 0x141   :  { %v395_v19 = vadd.f32 %v1597_v27, %v394_v29  ;;  %v512_v30 = vadd.f32 %v1602_v28, %v511_v20 }
 0x143   :  { %v442_v32 = vmul.f32 0.01, %v395_v19  ;;  %v559_v33 = vmul.f32 0.01, %v512_v30 }
 0x145   :  { %v575_v35 = vmax.f32 %v512_v30, %v559_v33  ;;  %v458_v36 = vmax.f32 %v395_v19, %v442_v32 }
 0x147   :  { %v670_v37 = vmul.f32 %v1609_v31, %v575_v35  ;;  %v595_v38 = vmul.f32 %v1614_v34, %v458_v36 }
 0x148   :  { %v397_v39 = vpop.f32.mrf.mxu2  ;;  %v514_v40 = vpop.f32.mrf.mxu3 }
 0x149   :  { %v398_v41 = vadd.f32 %v1597_v27, %v397_v39  ;;  %686 = vadd.xlane.f32.xlu2 %v670_v37  ;;  %611 = vadd.xlane.f32.xlu0 %v595_v38  ;;  %v515_v42 = vadd.f32 %v1602_v28, %v514_v40 }
 0x14b   :  { %v443_v43 = vmul.f32 0.01, %v398_v41  ;;  %v560_v45 = vmul.f32 0.01, %v515_v42 }
 0x14d   :  { %v459_v44 = vmax.f32 %v398_v41, %v443_v43  ;;  %v576_v51 = vmax.f32 %v515_v42, %v560_v45 }
 0x14f   :  { %v596_v46 = vmul.f32 %v1614_v34, %v459_v44  ;;  %v671_v56 = vmul.f32 %v1609_v31, %v576_v51 }
 0x150   :  { %v400_v47 = vpop.f32.mrf.mxu2  ;;  %v517_v48 = vpop.f32.mrf.mxu3 }
 0x151   :  { %v401_v49 = vadd.f32 %v1597_v27, %v400_v47  ;;  %v518_v50 = vadd.f32 %v1602_v28, %v517_v48  ;;  %613 = vadd.xlane.f32.xlu0 %v596_v46 }
 0x153   :  { %v444_v52 = vmul.f32 0.01, %v401_v49  ;;  %v561_v53 = vmul.f32 0.01, %v518_v50 }
 0x155   :  { %v460_v54 = vmax.f32 %v401_v49, %v444_v52  ;;  %v577_v55 = vmax.f32 %v518_v50, %v561_v53 }
 0x157   :  { %v672_v57 = vmul.f32 %v1609_v31, %v577_v55  ;;  %v597_v58 = vmul.f32 %v1614_v34, %v460_v54 }
 0x158   :  { %v403_v59 = vpop.f32.mrf.mxu2  ;;  %v520_v60 = vpop.f32.mrf.mxu3 }
 0x159   :  { %v404_v61 = vadd.f32 %v1597_v27, %v403_v59  ;;  %v521_v62 = vadd.f32 %v1602_v28, %v520_v60  ;;  %690 = vadd.xlane.f32.xlu2 %v672_v57  ;;  %615 = vadd.xlane.f32.xlu1 %v597_v58 }
 0x15a   :  { %688 = vadd.xlane.f32.xlu0 %v671_v56 }
 0x15b   :  { %v445_v63 = vmul.f32 0.01, %v404_v61  ;;  %v562_v0 = vmul.f32 0.01, %v521_v62 }
 0x15d   :  { %v461_v1 = vmax.f32 %v404_v61, %v445_v63  ;;  %v578_v2 = vmax.f32 %v521_v62, %v562_v0 }
 0x15f   :  { %v598_v3 = vmul.f32 %v1614_v34, %v461_v1  ;;  %v673_v4 = vmul.f32 %v1609_v31, %v578_v2 }
 0x160   :  { %v406_v5 = vpop.f32.mrf.mxu2  ;;  %v523_v6 = vpop.f32.mrf.mxu3 }
 0x161   :  { %v407_v7 = vadd.f32 %v1597_v27, %v406_v5  ;;  %v524_v8 = vadd.f32 %v1602_v28, %v523_v6  ;;  %617 = vadd.xlane.f32.xlu1 %v598_v3 }
 0x162   :  { %692 = vadd.xlane.f32.xlu0 %v673_v4 }
 0x163   :  { %v446_v9 = vmul.f32 0.01, %v407_v7  ;;  %v563_v11 = vmul.f32 0.01, %v524_v8 }
 0x165   :  { %v462_v10 = vmax.f32 %v407_v7, %v446_v9  ;;  %v579_v15 = vmax.f32 %v524_v8, %v563_v11 }
 0x167   :  { %v599_v12 = vmul.f32 %v1614_v34, %v462_v10  ;;  %v674_v22 = vmul.f32 %v1609_v31, %v579_v15 }
 0x168   :  { %v409_v13 = vpop.f32.mrf.mxu2  ;;  %v526_v14 = vpop.f32.mrf.mxu3 }
 0x169   :  { %v527_v16 = vadd.f32 %v1602_v28, %v526_v14  ;;  %619 = vadd.xlane.f32.xlu2 %v599_v12  ;;  %v410_v17 = vadd.f32 %v1597_v27, %v409_v13 }
 0x16b   :  { %v564_v18 = vmul.f32 0.01, %v527_v16  ;;  %v447_v23 = vmul.f32 0.01, %v410_v17 }
 0x16d   :  { %v580_v21 = vmax.f32 %v527_v16, %v564_v18  ;;  %v463_v19 = vmax.f32 %v410_v17, %v447_v23 }
 0x16f   :  { %v675_v24 = vmul.f32 %v1609_v31, %v580_v21  ;;  %v600_v35 = vmul.f32 %v1614_v34, %v463_v19 }
 0x170   :  { %v412_v25 = vpop.f32.mrf.mxu2  ;;  %v529_v26 = vpop.f32.mrf.mxu3 }
 0x171   :  { %v413_v29 = vadd.f32 %v1597_v27, %v412_v25  ;;  %694 = vadd.xlane.f32.xlu2 %v674_v22  ;;  %696 = vadd.xlane.f32.xlu0 %v675_v24  ;;  %v530_v20 = vadd.f32 %v1602_v28, %v529_v26 }
 0x173   :  { %v448_v30 = vmul.f32 0.01, %v413_v29  ;;  %v565_v33 = vmul.f32 0.01, %v530_v20 }
 0x175   :  { %v464_v32 = vmax.f32 %v413_v29, %v448_v30  ;;  %v581_v40 = vmax.f32 %v530_v20, %v565_v33 }
 0x177   :  { %v601_v36 = vmul.f32 %v1614_v34, %v464_v32  ;;  %v676_v43 = vmul.f32 %v1609_v31, %v581_v40 }
 0x178   :  { %v415_v37 = vpop.f32.mrf.mxu2  ;;  %v532_v38 = vpop.f32.mrf.mxu3 }
 0x179   :  { %v416_v39 = vadd.f32 %v1597_v27, %v415_v37  ;;  %621 = vadd.xlane.f32.xlu2 %v600_v35  ;;  %623 = vadd.xlane.f32.xlu0 %v601_v36  ;;  %v533_v25 = vadd.f32 %v1602_v28, %v532_v38 }
 0x17b   :  { %v449_v41 = vmul.f32 0.01, %v416_v39  ;;  %v566_v33 = vmul.f32 0.01, %v533_v25 }
 0x17d   :  { %v465_v42 = vmax.f32 %v416_v39, %v449_v41 }
 0x17f   :  { %v602_v44 = vmul.f32 %v1614_v34, %v465_v42 }
 0x180   :  { %v418_v45 = vpop.f32.mrf.mxu2  ;;  %v535_v46 = vpop.f32.mrf.mxu3 }
 0x181   :  { %v419_v47 = vadd.f32 %v1597_v27, %v418_v45  ;;  %698 = vadd.xlane.f32.xlu2 %v676_v43  ;;  %625 = vadd.xlane.f32.xlu1 %v602_v44  ;;  %v536_v13 = vadd.f32 %v1602_v28, %v535_v46  ;;  %v582_v43 = vmax.f32 %v533_v25, %v566_v33 }
 0x183   :  { %v450_v48 = vmul.f32 0.01, %v419_v47  ;;  %v567_v18 = vmul.f32 0.01, %v536_v13 }
 0x185   :  { %v466_v49 = vmax.f32 %v419_v47, %v450_v48  ;;  %v583_v20 = vmax.f32 %v536_v13, %v567_v18  ;;  %v722_v48 = vpop.permute.xlu1 %721 }
 0x187   :  { %v603_v50 = vmul.f32 %v1614_v34, %v466_v49  ;;  %v678_v39 = vmul.f32 %v1609_v31, %v583_v20  ;;  %v677_v49 = vmul.f32 %v1609_v31, %v582_v43  ;;  %v757_v20 = vlaneseq }
 0x188   :  { %v421_v51 = vpop.f32.mrf.mxu2  ;;  %v538_v52 = vpop.f32.mrf.mxu3 }
 0x189   :  { %v422_v53 = vadd.f32 %v1597_v27, %v421_v51  ;;  %627 = vadd.xlane.f32.xlu2 %v603_v50  ;;  %v539_v2 = vadd.f32 %v1602_v28, %v538_v52 }
 0x18b   :  { %v451_v54 = vmul.f32 0.01, %v422_v53  ;;  %v568_v5 = vmul.f32 0.01, %v539_v2 }
 0x18d   :  { %v467_v55 = vmax.f32 %v422_v53, %v451_v54  ;;  %v584_v10 = vmax.f32 %v539_v2, %v568_v5  ;;  %v1670_v54 = vperm.slane %v722_v48, 0 }
 0x18f   :  { %v604_v56 = vmul.f32 %v1614_v34, %v467_v55  ;;  %v679_v16 = vmul.f32 %v1609_v31, %v584_v10 }
 0x190   :  { %v424_v57 = vpop.f32.mrf.mxu2  ;;  %v541_v58 = vpop.f32.mrf.mxu3 }
 0x191   :  { %v425_v59 = vadd.f32 %v1597_v27, %v424_v57  ;;  %629 = vadd.xlane.f32.xlu0 %v604_v56  ;;  %v542_v19 = vadd.f32 %v1602_v28, %v541_v58 }
 0x193   :  { %v452_v60 = vmul.f32 0.01, %v425_v59  ;;  %v569_v37 = vmul.f32 0.01, %v542_v19 }
 0x195   :  { %v468_v61 = vmax.f32 %v425_v59, %v452_v60  ;;  %v585_v44 = vmax.f32 %v542_v19, %v569_v37 }
 0x197   :  { %v605_v62 = vmul.f32 %v1614_v34, %v468_v61  ;;  %v680_v51 = vmul.f32 %v1609_v31, %v585_v44 }
 0x198   :  { %v427_v63 = vpop.f32.mrf.mxu2  ;;  %v544_v0 = vpop.f32.mrf.mxu3 }
 0x199   :  { %v428_v1 = vadd.f32 %v1597_v27, %v427_v63  ;;  %631 = vadd.xlane.f32.xlu1 %v605_v62  ;;  %v545_v12 = vadd.f32 %v1602_v28, %v544_v0 }
 0x19b   :  { %v453_v3 = vmul.f32 0.01, %v428_v1  ;;  %v570_v15 = vmul.f32 0.01, %v545_v12 }
 0x19d   :  { %v469_v4 = vmax.f32 %v428_v1, %v453_v3  ;;  %v586_v26 = vmax.f32 %v545_v12, %v570_v15 }
 0x19f   :  { %v606_v6 = vmul.f32 %v1614_v34, %v469_v4  ;;  %v681_v35 = vmul.f32 %v1609_v31, %v586_v26 }
 0x1a0   :  { %v430_v7 = vpop.f32.mrf.mxu2  ;;  %v547_v8 = vpop.f32.mrf.mxu3 }
 0x1a1   :  { %v431_v9 = vadd.f32 %v1597_v27, %v430_v7  ;;  %633 = vadd.xlane.f32.xlu2 %v606_v6  ;;  %v548_v45 = vadd.f32 %v1602_v28, %v547_v8 }
 0x1a3   :  { %v454_v11 = vmul.f32 0.01, %v431_v9  ;;  %v571_v50 = vmul.f32 0.01, %v548_v45 }
 0x1a5   :  { %v470_v14 = vmax.f32 %v431_v9, %v454_v11  ;;  %v587_v56 = vmax.f32 %v548_v45, %v571_v50 }
 0x1a7   :  { %v607_v17 = vmul.f32 %v1614_v34, %v470_v14  ;;  %v682_v1 = vmul.f32 %v1609_v31, %v587_v56 }
 0x1a8   :  { %v433_v21 = vpop.f32.mrf.mxu2  ;;  %v550_v22 = vpop.f32.mrf.mxu3 }
 0x1a9   :  { %v434_v23 = vadd.f32 %v1597_v27, %v433_v21  ;;  %704 = vadd.xlane.f32.xlu2 %v679_v16  ;;  %635 = vadd.xlane.f32.xlu0 %v607_v17  ;;  %v551_v24 = vadd.f32 %v1602_v28, %v550_v22 }
 0x1ab   :  { %v455_v29 = vmul.f32 0.01, %v434_v23  ;;  %v572_v32 = vmul.f32 0.01, %v551_v24 }
 0x1ad   :  { %v471_v30 = vmax.f32 %v434_v23, %v455_v29  ;;  %v588_v42 = vmax.f32 %v551_v24, %v572_v32 }
 0x1af   :  { %v608_v36 = vmul.f32 %v1614_v34, %v471_v30  ;;  %v683_v47 = vmul.f32 %v1609_v31, %v588_v42  ;;  %v1691_v42 = vand.u32 127, %v757_v20 }
 0x1b0   :  { %v436_v40 = vpop.f32.mrf.mxu2  ;;  %v553_v41 = vpop.f32.mrf.mxu3 }
 0x1b1   :  { %708 = vadd.xlane.f32.xlu2 %v681_v35  ;;  %637 = vadd.xlane.f32.xlu1 %v608_v36  ;;  %v437_v38 = vadd.f32 %v1597_v27, %v436_v40  ;;  %v554_v57 = vadd.f32 %v1602_v28, %v553_v41  ;;  %v643_v41 = vld [vmem:[#allocation2] sm:$0x1]  ;;  %v1709_v56 = vadd.s32 4294967288, %v1691_v42 }
 0x1b2   :  { %702 = vadd.xlane.f32.xlu0 %v678_v39 }
 0x1b3   :  { %v456_v46 = vmul.f32 0.01, %v437_v38  ;;  %v573_v0 = vmul.f32 0.01, %v554_v57 }
 0x1b5   :  { %v472_v53 = vmax.f32 %v437_v38, %v456_v46  ;;  %v589_v4 = vmax.f32 %v554_v57, %v573_v0 }
 0x1b7   :  { %v609_v62 = vmul.f32 %v1614_v34, %v472_v53  ;;  %v684_v10 = vmul.f32 %v1609_v31, %v589_v4  ;;  %v1706_v53 = vadd.s32 4294967280, %v1691_v42 }
 0x1b8   :  { %v556_v52 = vpop.f32.mrf.mxu3  ;;  %v439_v3 = vpop.f32.mrf.mxu2 }
 0x1b9   :  { %712 = vadd.xlane.f32.xlu2 %v683_v47  ;;  %700 = vadd.xlane.f32.xlu1 %v677_v49  ;;  %v557_v55 = vadd.f32 %v1602_v28, %v556_v52  ;;  %v440_v28 = vadd.f32 %v1597_v27, %v439_v3 }
 0x1ba   :  { %706 = vadd.xlane.f32.xlu0 %v680_v51 }
 0x1bb   :  { %v574_v61 = vmul.f32 0.01, %v557_v55  ;;  %v457_v9 = vmul.f32 0.01, %v440_v28 }
 0x1bc   :  { %v687_v58 = vpop.xlane.xlu2 %686  ;;  %v1674_v59 = vpop.xlane.xlu0 %611 }
 0x1bd   :  { %v725_v60 = vadd.f32 %v1670_v54, %v687_v58  ;;  %v590_v2 = vmax.f32 %v557_v55, %v574_v61  ;;  %v473_v11 = vmax.f32 %v440_v28, %v457_v9 }
 0x1bf   :  { %v1210_v63 = vmul.f32 -1.442695, %v725_v60  ;;  %v685_v6 = vmul.f32 %v1609_v31, %v590_v2  ;;  %v610_v17 = vmul.f32 %v1614_v34, %v473_v11 }
 0x1c1   :  { %1243 = vpow2.f32 %v1210_v63  ;;  %639 = vadd.xlane.f32.xlu2 %v609_v62 }
 0x1c2   :  { %710 = vadd.xlane.f32.xlu0 %v682_v1 }
 0x1c4   :  { %v1680_v5 = vpop.xlane.xlu0 %613 }
 0x1c7   :  { %v1244_v7 = vpop.eup %1243 }
 0x1c8   :  { %v870_v8 = vadd.f32 1.0, %v1244_v7 }
 0x1c9   :  { %716 = vadd.xlane.f32.xlu2 %v685_v6 }
 0x1ca   :  { %714 = vadd.xlane.f32.xlu0 %v684_v10  ;;  %1245 = vrcp.f32 %v870_v8  ;;  %vm891_vm0 = vweird.f32 %v870_v8  ;;  %v895_v19 = vand.u32 2147483647, %v870_v8  ;;  %v897_v32 = vand.u32 2147483648, %v870_v8 }
 0x1cc   :  { %v691_v12 = vpop.xlane.xlu2 %690  ;;  %vm1693_vm5 = vcmp.eq.f32.partialorder %v895_v19, 8.507059e+37  ;;  %v898_v46 = vor.u32 1.1754944e-38, %v897_v32  ;;  %v1725_v10 = vpop.xlane.xlu1 %615 }
 0x1cd   :  { %v727_v13 = vadd.f32 %v1670_v54, %v691_v12  ;;  %v689_v14 = vpop.xlane.xlu0 %688 }
 0x1ce   :  { %v726_v15 = vadd.f32 %v1670_v54, %v689_v14 }
 0x1cf   :  { %v1212_v27 = vmul.f32 -1.442695, %v727_v13 }
 0x1d0   :  { %v1211_v16 = vmul.f32 -1.442695, %v726_v15  ;;  %v1246_v18 = vpop.eup %1245 }
 0x1d1   :  { %1247 = vpow2.f32 %v1212_v27  ;;  %v887_v21 = vmul.f32 %v1246_v18, %v870_v8  ;;  %vm892_vm1 = vweird.f32 %v1246_v18 }
 0x1d2   :  { %1249 = vpow2.f32 %v1211_v16  ;;  %641 = vadd.xlane.f32.xlu0 %v610_v17  ;;  %vm1687_vm2 = vmor %vm891_vm0, %vm892_vm1 }
 0x1d3   :  { %v888_v24 = vsub.f32 1.0, %v887_v21 }
 0x1d4   :  { %v1730_v21 = vpop.xlane.xlu1 %617 }
 0x1d5   :  { %v889_v26 = vmul.f32 %v1246_v18, %v888_v24  ;;  %v693_v8 = vpop.xlane.xlu0 %692 }
 0x1d6   :  { %v728_v9 = vadd.f32 %v1670_v54, %v693_v8 }
 0x1d7   :  { %v1248_v31 = vpop.eup %1247  ;;  %v890_v34 = vadd.f32 %v1246_v18, %v889_v26 }
 0x1d8   :  { %v1250_v22 = vpop.eup %1249  ;;  %v872_v23 = vadd.f32 1.0, %v1248_v31  ;;  %v1213_v11 = vmul.f32 -1.442695, %v728_v9  ;;  %v1780_v9 = vadd.s32 4294967272, %v1691_v42 }
 0x1d9   :  { %v871_v25 = vadd.f32 1.0, %v1250_v22  ;;  %v894_v45 = vsel %vm1687_vm2, %v1246_v18, %v890_v34 }
 0x1da   :  { %1251 = vrcp.f32 %v872_v23  ;;  %v927_v36 = vand.u32 2147483648, %v872_v23  ;;  %vm921_vm3 = vweird.f32 %v872_v23  ;;  %v925_v40 = vand.u32 2147483647, %v872_v23 }
 0x1db   :  { %1253 = vrcp.f32 %v871_v25  ;;  %v912_v48 = vand.u32 2147483648, %v871_v25  ;;  %v910_v52 = vand.u32 2147483647, %v871_v25  ;;  %vm906_vm9 = vweird.f32 %v871_v25 }
 0x1dc   :  { %v1697_v44 = vpop.xlane.xlu2 %619  ;;  %v928_v50 = vor.u32 1.1754944e-38, %v927_v36  ;;  %vm926_vm8 = vcmp.eq.f32.partialorder %v925_v40, 8.507059e+37  ;;  %v899_v58 = vsel %vm1693_vm5, %v898_v46, %v894_v45  ;;  %1255 = vpow2.f32 %v1213_v11 }
 0x1dd   :  { %v913_v61 = vor.u32 1.1754944e-38, %v912_v48  ;;  %vm911_vm11 = vcmp.eq.f32.partialorder %v910_v52, 8.507059e+37  ;;  %v1142_v2 = vperm.slane %v899_v58, %v1691_v42 }
 0x1e0   :  { %v1252_v29 = vpop.eup %1251 }
 0x1e1   :  { %v1254_v30 = vpop.eup %1253  ;;  %v917_v33 = vmul.f32 %v1252_v29, %v872_v23  ;;  %vm922_vm4 = vweird.f32 %v1252_v29 }
 0x1e2   :  { %v902_v37 = vmul.f32 %v1254_v30, %v871_v25  ;;  %vm1701_vm6 = vmor %vm921_vm3, %vm922_vm4  ;;  %vm907_vm7 = vweird.f32 %v1254_v30  ;;  %v1256_v31 = vpop.eup %1255 }
 0x1e3   :  { %v918_v39 = vsub.f32 1.0, %v917_v33  ;;  %vm908_vm10 = vmor %vm906_vm9, %vm907_vm7  ;;  %v873_v24 = vadd.f32 1.0, %v1256_v31 }
 0x1e4   :  { %v903_v43 = vsub.f32 1.0, %v902_v37  ;;  %v695_v28 = vpop.xlane.xlu2 %694  ;;  %v697_v13 = vpop.xlane.xlu0 %696 }
 0x1e5   :  { %v919_v47 = vmul.f32 %v1252_v29, %v918_v39  ;;  %v729_v12 = vadd.f32 %v1670_v54, %v695_v28  ;;  %v730_v15 = vadd.f32 %v1670_v54, %v697_v13  ;;  %v940_v58 = vand.u32 2147483647, %v873_v24 }
 0x1e6   :  { %v904_v51 = vmul.f32 %v1254_v30, %v903_v43  ;;  %646 = vperm.xlu0 %1238, %v643_v41   ;;  %vm936_vm14 = vweird.f32 %v873_v24  ;;  %v1791_v13 = vadd.s32 4294967264, %v1691_v42 }
 0x1e7   :  { %v920_v55 = vadd.f32 %v1252_v29, %v919_v47  ;;  %v1214_v27 = vmul.f32 -1.442695, %v729_v12  ;;  %v1215_v17 = vmul.f32 -1.442695, %v730_v15  ;;  %vm1786_vm1 = vcmp.eq.f32.partialorder %v940_v58, 8.507059e+37 }
 0x1e8   :  { %v905_v57 = vadd.f32 %v1254_v30, %v904_v51 }
 0x1e9   :  { %v924_v60 = vsel %vm1701_vm6, %v1252_v29, %v920_v55  ;;  %1257 = vpow2.f32 %v1214_v27 }
 0x1ea   :  { %v929_v62 = vsel %vm926_vm8, %v928_v50, %v924_v60  ;;  %v909_v63 = vsel %vm908_vm10, %v1254_v30, %v905_v57  ;;  %1259 = vpow2.f32 %v1215_v17 }
 0x1eb   :  { %v1145_v0 = vperm.slane %v929_v62, %v1706_v53  ;;  %v914_v1 = vsel %vm911_vm11, %v913_v61, %v909_v63  ;;  %v942_v62 = vand.u32 2147483648, %v873_v24 }
 0x1ec   :  { %v1143_v3 = vperm.slane %v914_v1, %v1709_v56  ;;  %v1722_v7 = vpop.xlane.xlu2 %621  ;;  %v1732_v22 = vpop.xlane.xlu0 %623 }
 0x1ee   :  { %v1144_v4 = vsel %vm762_vm12, %v1143_v3, %v1142_v2 }
 0x1ef   :  { %v1720_v6 = vsel %vm766_vm13, %v1145_v0, %v1144_v4  ;;  %v1258_v25 = vpop.eup %1257 }
 0x1f0   :  { %v1260_v26 = vpop.eup %1259  ;;  %v1736_v29 = vadd.f32 1.0, %v1258_v25 }
 0x1f1   :  { %v1744_v32 = vadd.f32 1.0, %v1260_v26 }
 0x1f2   :  { %vm951_vm2 = vweird.f32 %v1736_v29  ;;  %v955_v27 = vand.u32 2147483647, %v1736_v29 }
 0x1f3   :  { %vm966_vm4 = vweird.f32 %v1744_v32 }
 0x1f4   :  { %v699_v14 = vpop.xlane.xlu2 %698  ;;  %v1738_v20 = vpop.xlane.xlu1 %625  ;;  %vm956_vm9 = vcmp.eq.f32.partialorder %v955_v27, 8.507059e+37 }
 0x1f5   :  { %v731_v16 = vadd.f32 %v1670_v54, %v699_v14  ;;  %v943_v14 = vor.u32 1.1754944e-38, %v942_v62 }
 0x1f7   :  { %v1216_v18 = vmul.f32 -1.442695, %v731_v16  ;;  %v957_v16 = vand.u32 2147483648, %v1736_v29 }
 0x1f9   :  { %1261 = vpow2.f32 %v1216_v18  ;;  %v958_v62 = vor.u32 1.1754944e-38, %v957_v16 }
 0x1fa   :  { %1263 = vrcp.f32 %v873_v24 }
 0x1fb   :  { %1265 = vrcp.f32 %v1736_v29 }
 0x1fc   :  { %v1734_v23 = vpop.xlane.xlu2 %627  ;;  %1267 = vrcp.f32 %v1744_v32 }
 0x1ff   :  { %v1262_v19 = vpop.eup %1261 }
 0x200   :  { %v1747_v33 = vadd.f32 1.0, %v1262_v19  ;;  %v1749_v35 = vpop.eup %1263 }
 0x201   :  { %v932_v37 = vmul.f32 %v1749_v35, %v873_v24  ;;  %v1758_v41 = vpop.eup %1265  ;;  %vm937_vm15 = vweird.f32 %v1749_v35 }
 0x202   :  { %1269 = vrcp.f32 %v1747_v33  ;;  %v1761_v45 = vpop.eup %1267  ;;  %v947_v47 = vmul.f32 %v1758_v41, %v1736_v29  ;;  %vm1782_vm0 = vmor %vm936_vm14, %vm937_vm15  ;;  %vm952_vm3 = vweird.f32 %v1758_v41  ;;  %vm981_vm11 = vweird.f32 %v1747_v33 }
 0x203   :  { %v933_v46 = vsub.f32 1.0, %v932_v37  ;;  %v962_v49 = vmul.f32 %v1761_v45, %v1744_v32  ;;  %vm967_vm5 = vweird.f32 %v1761_v45  ;;  %vm1817_vm6 = vmor %vm951_vm2, %vm952_vm3  ;;  %vm2241_vm15 = vcmask 261312  }
 0x204   :  { %v1740_v30 = vpop.xlane.xlu0 %629  ;;  %v948_v51 = vsub.f32 1.0, %v947_v47  ;;  %vm1829_vm7 = vmor %vm966_vm4, %vm967_vm5  ;;  %vm2239_vm2 = vcmask 392512   ;;  %vm2238_vm3 = vcmask 458112  }
 0x205   :  { %v934_v50 = vmul.f32 %v1749_v35, %v933_v46  ;;  %v963_v1 = vsub.f32 1.0, %v962_v49 }
 0x206   :  { %v949_v4 = vmul.f32 %v1758_v41, %v948_v51 }
 0x207   :  { %v935_v3 = vadd.f32 %v1749_v35, %v934_v50  ;;  %v964_v17 = vmul.f32 %v1761_v45, %v963_v1 }
 0x208   :  { %v1765_v48 = vpop.eup %1269  ;;  %v950_v31 = vadd.f32 %v1758_v41, %v949_v4 }
 0x209   :  { %v977_v52 = vmul.f32 %v1765_v48, %v1747_v33  ;;  %v939_v18 = vsel %vm1782_vm0, %v1749_v35, %v935_v3  ;;  %v972_v35 = vand.u32 2147483648, %v1744_v32  ;;  %v965_v49 = vadd.f32 %v1761_v45, %v964_v17 }
 0x20a   :  { %v944_v46 = vsel %vm1786_vm1, %v943_v14, %v939_v18  ;;  %vm982_vm8 = vweird.f32 %v1765_v48  ;;  %vm2240_vm1 = vcmask 326912  }
 0x20b   :  { %v978_v28 = vsub.f32 1.0, %v977_v52  ;;  %vm1845_vm14 = vmor %vm981_vm11, %vm982_vm8  ;;  %v1147_v11 = vperm.slane %v944_v46, %v1780_v9  ;;  %vm786_vm11 = vcmask 523712  }
 0x20c   :  { %v1753_v36 = vpop.xlane.xlu1 %631 }
 0x20d   :  { %v979_v24 = vmul.f32 %v1765_v48, %v978_v28 }
 0x20f   :  { %v980_v29 = vadd.f32 %v1765_v48, %v979_v24 }
 0x214   :  { %v1742_v34 = vpop.xlane.xlu2 %633 }
 0x21c   :  { %v705_v39 = vpop.xlane.xlu2 %704  ;;  %v1756_v40 = vpop.xlane.xlu0 %635 }
 0x21d   :  { %v734_v38 = vadd.f32 %v1670_v54, %v705_v39 }
 0x21f   :  { %v1219_v43 = vmul.f32 -1.442695, %v734_v38  ;;  %v970_v38 = vand.u32 2147483647, %v1744_v32  ;;  %v973_v32 = vor.u32 1.1754944e-38, %v972_v35 }
 0x221   :  { %1271 = vpow2.f32 %v1219_v43  ;;  %vm1836_vm10 = vcmp.eq.f32.partialorder %v970_v38, 8.507059e+37 }
 0x224   :  { %v709_v55 = vpop.xlane.xlu2 %708  ;;  %v1772_v57 = vpop.xlane.xlu1 %637 }
 0x225   :  { %v736_v60 = vadd.f32 %v1670_v54, %v709_v55  ;;  %v703_v61 = vpop.xlane.xlu0 %702  ;;  %v954_v55 = vsel %vm1817_vm6, %v1758_v41, %v950_v31  ;;  %v1909_v41 = vadd.s32 4294967240, %v1691_v42 }
 0x226   :  { %v733_v63 = vadd.f32 %v1670_v54, %v703_v61  ;;  %v959_v1 = vsel %vm956_vm9, %v958_v62, %v954_v55 }
 0x227   :  { %v1272_v0 = vpop.eup %1271  ;;  %v1221_v2 = vmul.f32 -1.442695, %v736_v60  ;;  %v1149_v16 = vperm.slane %v959_v1, %v1791_v13 }
 0x228   :  { %v1218_v8 = vmul.f32 -1.442695, %v733_v63  ;;  %v1794_v15 = vadd.f32 1.0, %v1272_v0  ;;  %v987_v63 = vand.u32 2147483648, %v1747_v33  ;;  %v985_v0 = vand.u32 2147483647, %v1747_v33 }
 0x229   :  { %1273 = vpow2.f32 %v1221_v2  ;;  %v969_v2 = vsel %vm1829_vm7, %v1761_v45, %v965_v49  ;;  %v1860_v45 = vadd.s32 4294967256, %v1691_v42 }
 0x22a   :  { %1275 = vpow2.f32 %v1218_v8  ;;  %v984_v8 = vsel %vm1845_vm14, %v1765_v48, %v980_v29  ;;  %v988_v12 = vor.u32 1.1754944e-38, %v987_v63  ;;  %v974_v17 = vsel %vm1836_vm10, %v973_v32, %v969_v2 }
 0x22b   :  { %1277 = vrcp.f32 %v1794_v15  ;;  %v1869_v48 = vadd.s32 4294967248, %v1691_v42  ;;  %vm986_vm0 = vcmp.eq.f32.partialorder %v985_v0, 8.507059e+37  ;;  %v1906_v63 = vadd.s32 4294967232, %v1691_v42 }
 0x22c   :  { %v713_v25 = vpop.xlane.xlu2 %712  ;;  %v701_v26 = vpop.xlane.xlu1 %700  ;;  %v989_v31 = vsel %vm986_vm0, %v988_v12, %v984_v8  ;;  %v1912_v0 = vadd.s32 4294967208, %v1691_v42  ;;  %vm1026_vm4 = vweird.f32 %v1794_v15 }
 0x22d   :  { %v738_v19 = vadd.f32 %v1670_v54, %v713_v25  ;;  %v732_v37 = vadd.f32 %v1670_v54, %v701_v26  ;;  %v707_v39 = vpop.xlane.xlu0 %706 }
 0x22e   :  { %v735_v43 = vadd.f32 %v1670_v54, %v707_v39  ;;  %v1151_v39 = vperm.slane %v974_v17, %v1860_v45 }
 0x22f   :  { %v1223_v50 = vmul.f32 -1.442695, %v738_v19  ;;  %v1217_v51 = vmul.f32 -1.442695, %v732_v37  ;;  %v1274_v52 = vpop.eup %1273  ;;  %v1148_v37 = vsel %vm2241_vm15, %v1147_v11, %v1720_v6 }
 0x230   :  { %v1220_v60 = vmul.f32 -1.442695, %v735_v43  ;;  %v1276_v61 = vpop.eup %1275  ;;  %v1856_v33 = vadd.f32 1.0, %v1274_v52  ;;  %v1150_v35 = vsel %vm2240_vm1, %v1149_v16, %v1148_v37  ;;  %v1153_v43 = vperm.slane %v989_v31, %v1869_v48 }
 0x231   :  { %1279 = vpow2.f32 %v1223_v50  ;;  %v1849_v4 = vadd.f32 1.0, %v1276_v61  ;;  %v1851_v28 = vpop.eup %1277  ;;  %v1032_v50 = vand.u32 2147483648, %v1794_v15  ;;  %v1152_v52 = vsel %vm2239_vm2, %v1151_v39, %v1150_v35 }
 0x232   :  { %1281 = vpow2.f32 %v1217_v51  ;;  %v1022_v24 = vmul.f32 %v1851_v28, %v1794_v15  ;;  %v1897_v29 = vsel %vm2238_vm3, %v1153_v43, %v1152_v52  ;;  %v1030_v61 = vand.u32 2147483647, %v1794_v15 }
 0x233   :  { %1283 = vpow2.f32 %v1220_v60  ;;  %v1900_v60 = vadd.s32 4294967224, %v1691_v42  ;;  %v1033_v2 = vor.u32 1.1754944e-38, %v1032_v50  ;;  %v1062_v3 = vand.u32 2147483648, %v1856_v33 }
 0x234   :  { %1285 = vrcp.f32 %v1849_v4  ;;  %v1863_v14 = vpop.xlane.xlu2 %639  ;;  %v1023_v47 = vsub.f32 1.0, %v1022_v24  ;;  %v1922_v16 = vadd.s32 4294967216, %v1691_v42  ;;  %vm1027_vm5 = vweird.f32 %v1851_v28 }
 0x235   :  { %v711_v27 = vpop.xlane.xlu0 %710  ;;  %1287 = vrcp.f32 %v1856_v33  ;;  %vm1925_vm6 = vcmp.eq.f32.partialorder %v1030_v61, 8.507059e+37  ;;  %v1933_v24 = vadd.s32 4294967192, %v1691_v42  ;;  %v1060_v37 = vand.u32 2147483647, %v1856_v33  ;;  %vm1952_vm8 = vmor %vm1026_vm4, %vm1027_vm5 }
 0x236   :  { %v737_v26 = vadd.f32 %v1670_v54, %v711_v27  ;;  %v1024_v62 = vmul.f32 %v1851_v28, %v1023_v47  ;;  %v1017_v27 = vand.u32 2147483648, %v1849_v4  ;;  %v1015_v39 = vand.u32 2147483647, %v1849_v4 }
 0x237   :  { %v1280_v18 = vpop.eup %1279  ;;  %v1941_v43 = vor.u32 1.1754944e-38, %v1062_v3  ;;  %vm1011_vm7 = vweird.f32 %v1849_v4  ;;  %vm1056_vm9 = vweird.f32 %v1856_v33  ;;  %vm1979_vm3 = vcmp.eq.f32.partialorder %v1060_v37, 8.507059e+37 }
 0x238   :  { %v1874_v25 = vadd.f32 1.0, %v1280_v18  ;;  %v1282_v19 = vpop.eup %1281  ;;  %v1222_v6 = vmul.f32 -1.442695, %v737_v26  ;;  %vm1960_vm10 = vcmp.eq.f32.partialorder %v1015_v39, 8.507059e+37 }
 0x239   :  { %v1284_v38 = vpop.eup %1283  ;;  %v1885_v49 = vadd.f32 1.0, %v1282_v19  ;;  %v1025_v19 = vadd.f32 %v1851_v28, %v1024_v62 }
 0x23a   :  { %1289 = vrcp.f32 %v1874_v25  ;;  %v1883_v46 = vpop.eup %1285  ;;  %v1888_v51 = vadd.f32 1.0, %v1284_v38 }
 0x23b   :  { %v1007_v55 = vmul.f32 %v1883_v46, %v1849_v4  ;;  %1291 = vrcp.f32 %v1885_v49  ;;  %v1894_v58 = vpop.eup %1287  ;;  %v1002_v15 = vand.u32 2147483648, %v1885_v49  ;;  %vm1012_vm0 = vweird.f32 %v1883_v46 }
 0x23c   :  { %1293 = vrcp.f32 %v1888_v51  ;;  %v717_v32 = vpop.xlane.xlu2 %716  ;;  %v1052_v11 = vmul.f32 %v1894_v58, %v1856_v33  ;;  %vm1057_vm4 = vweird.f32 %v1894_v58  ;;  %vm996_vm5 = vweird.f32 %v1885_v49  ;;  %vm1989_vm1 = vmor %vm1011_vm7, %vm1012_vm0 }
 0x23d   :  { %1295 = vpow2.f32 %v1222_v6  ;;  %v715_v8 = vpop.xlane.xlu0 %714  ;;  %v1008_v12 = vsub.f32 1.0, %v1007_v55  ;;  %v740_v31 = vadd.f32 %v1670_v54, %v717_v32  ;;  %v1018_v55 = vor.u32 1.1754944e-38, %v1017_v27 }
 0x23e   :  { %v739_v38 = vadd.f32 %v1670_v54, %v715_v8  ;;  %v1053_v6 = vsub.f32 1.0, %v1052_v11  ;;  %v1029_v11 = vsel %vm1952_vm8, %v1851_v28, %v1025_v19  ;;  %vm790_vm8 = vcmask 589312  }
 0x23f   :  { %v1225_v50 = vmul.f32 -1.442695, %v740_v31  ;;  %v1009_v52 = vmul.f32 %v1883_v46, %v1008_v12 }
 0x240   :  { %v1914_v1 = vpop.eup %1289  ;;  %v1224_v8 = vmul.f32 -1.442695, %v739_v38  ;;  %v1000_v38 = vand.u32 2147483647, %v1885_v49 }
 0x241   :  { %v1082_v18 = vmul.f32 %v1914_v1, %v1874_v25  ;;  %v1292_v26 = vpop.eup %1291  ;;  %1297 = vpow2.f32 %v1225_v50  ;;  %v1010_v28 = vadd.f32 %v1883_v46, %v1009_v52  ;;  %v1977_v50 = vsel %vm1925_vm6, %v1033_v2, %v1029_v11 }
 0x242   :  { %v1939_v35 = vpop.eup %1293  ;;  %v992_v47 = vmul.f32 %v1292_v26, %v1885_v49  ;;  %vm997_vm14 = vweird.f32 %v1292_v26  ;;  %1299 = vpow2.f32 %v1224_v8  ;;  %v1003_v52 = vor.u32 1.1754944e-38, %v1002_v15 }
 0x243   :  { %v1037_v61 = vmul.f32 %v1939_v35, %v1888_v51  ;;  %v1296_v62 = vpop.eup %1295  ;;  %v1083_v32 = vsub.f32 1.0, %v1082_v18  ;;  %vm998_vm2 = vmor %vm996_vm5, %vm997_vm14  ;;  %vm1086_vm6 = vweird.f32 %v1874_v25  ;;  %v1090_v2 = vand.u32 2147483647, %v1874_v25 }
 0x244   :  { %v993_v3 = vsub.f32 1.0, %v992_v47  ;;  %v1965_v31 = vadd.f32 1.0, %v1296_v62  ;;  %v1054_v47 = vmul.f32 %v1894_v58, %v1053_v6  ;;  %v1985_v62 = vadd.s32 4294967200, %v1691_v42 }
 0x245   :  { %v1038_v27 = vsub.f32 1.0, %v1037_v61  ;;  %v1084_v19 = vmul.f32 %v1914_v1, %v1083_v32  ;;  %vm1001_vm15 = vcmp.eq.f32.partialorder %v1000_v38, 8.507059e+37  ;;  %v1014_v32 = vsel %vm1989_vm1, %v1883_v46, %v1010_v28 }
 0x246   :  { %v994_v18 = vmul.f32 %v1292_v26, %v993_v3  ;;  %1301 = vrcp.f32 %v1965_v31  ;;  %v1055_v37 = vadd.f32 %v1894_v58, %v1054_v47  ;;  %vm794_vm14 = vcmask 654912  }
 0x247   :  { %v1039_v61 = vmul.f32 %v1939_v35, %v1038_v27  ;;  %v1298_v54 = vpop.eup %1297  ;;  %v1085_v11 = vadd.f32 %v1914_v1, %v1084_v19  ;;  %vm1087_vm7 = vweird.f32 %v1914_v1  ;;  %v1092_v15 = vand.u32 2147483648, %v1874_v25 }
 0x248   :  { %v995_v39 = vadd.f32 %v1292_v26, %v994_v18  ;;  %v1999_v8 = vadd.f32 1.0, %v1298_v54  ;;  %v1300_v4 = vpop.eup %1299  ;;  %v1159_v38 = vperm.slane %v1977_v50, %v1900_v60  ;;  %v1019_v28 = vsel %vm1960_vm10, %v1018_v55, %v1014_v32 }
 0x249   :  { %v1040_v18 = vadd.f32 %v1939_v35, %v1039_v61  ;;  %v2010_v46 = vadd.f32 1.0, %v1300_v4  ;;  %v1047_v19 = vand.u32 2147483648, %v1888_v51  ;;  %vm2242_vm1 = vcmask 720512  }
 0x24a   :  { %v999_v17 = vsel %vm998_vm2, %v1292_v26, %v995_v39  ;;  %vm1042_vm2 = vweird.f32 %v1939_v35  ;;  %1303 = vrcp.f32 %v1999_v8  ;;  %vm1041_vm10 = vweird.f32 %v1888_v51 }
 0x24b   :  { %v1004_v3 = vsel %vm1001_vm15, %v1003_v52, %v999_v17  ;;  %vm2018_vm15 = vmor %vm1056_vm9, %vm1057_vm4  ;;  %v2027_v52 = vpop.xlane.xlu0 %641  ;;  %v1045_v55 = vand.u32 2147483647, %v1888_v51  ;;  %1305 = vrcp.f32 %v2010_v46  ;;  %vm2043_vm0 = vcmp.eq.f32.partialorder %v1090_v2, 8.507059e+37 }
 0x24c   :  { %v1155_v26 = vperm.slane %v1004_v3, %v1909_v41  ;;  %v2005_v27 = vpop.eup %1301  ;;  %v1059_v50 = vsel %vm2018_vm15, %v1894_v58, %v1055_v37  ;;  %vm2036_vm9 = vmor %vm1086_vm6, %vm1087_vm7  ;;  %v1157_v54 = vperm.slane %v1019_v28, %v1906_v63  ;;  %v1093_v49 = vor.u32 1.1754944e-38, %v1092_v15 }
 0x24d   :  { %v1067_v39 = vmul.f32 %v2005_v27, %v1965_v31  ;;  %vm2049_vm4 = vmor %vm1041_vm10, %vm1042_vm2  ;;  %v1089_v61 = vsel %vm2036_vm9, %v1914_v1, %v1085_v11  ;;  %v1075_v17 = vand.u32 2147483647, %v1965_v31  ;;  %vm2243_vm5 = vcmask 786112  }
 0x24e   :  { %v1156_v51 = vsel %vm786_vm11, %v1155_v26, %v1897_v29  ;;  %v1044_v2 = vsel %vm2049_vm4, %v1939_v35, %v1040_v18  ;;  %v1064_v37 = vsel %vm1979_vm3, %v1941_v43, %v1059_v50  ;;  %v1048_v32 = vor.u32 1.1754944e-38, %v1047_v19 }
 0x24f   :  { %v1068_v25 = vsub.f32 1.0, %v1067_v39  ;;  %v1077_v3 = vand.u32 2147483648, %v1965_v31  ;;  %vm1046_vm6 = vcmp.eq.f32.partialorder %v1045_v55, 8.507059e+37  ;;  %v2071_v4 = vadd.s32 4294967184, %v1691_v42 }
 0x250   :  { %v2068_v29 = vpop.eup %1303  ;;  %v2075_v35 = vsel %vm2043_vm0, %v1093_v49, %v1089_v61  ;;  %v1158_v11 = vsel %vm790_vm8, %v1157_v54, %v1156_v51  ;;  %v1049_v15 = vsel %vm1046_vm6, %v1048_v32, %v1044_v2  ;;  %vm1072_vm3 = vweird.f32 %v2005_v27 }
 0x251   :  { %v1069_v1 = vmul.f32 %v2005_v27, %v1068_v25  ;;  %v1112_v6 = vmul.f32 %v2068_v29, %v1999_v8  ;;  %v2082_v26 = vpop.eup %1305  ;;  %vm1071_vm7 = vweird.f32 %v1965_v31  ;;  %vm2085_vm2 = vcmp.eq.f32.partialorder %v1075_v17, 8.507059e+37 }
 0x252   :  { %v2090_v47 = vadd.s32 4294967176, %v1691_v42  ;;  %v1163_v28 = vperm.slane %v1064_v37, %v1912_v0  ;;  %v1078_v19 = vor.u32 1.1754944e-38, %v1077_v3  ;;  %v1097_v39 = vmul.f32 %v2082_v26, %v2010_v46  ;;  %vm2098_vm15 = vmor %vm1071_vm7, %vm1072_vm3 }
 0x253   :  { %v1070_v43 = vadd.f32 %v2005_v27, %v1069_v1  ;;  %v1122_v33 = vand.u32 2147483648, %v1999_v8  ;;  %v1160_v55 = vsel %vm794_vm14, %v1159_v38, %v1158_v11  ;;  %v1161_v31 = vperm.slane %v1049_v15, %v1922_v16 }
 0x254   :  { %v1107_v58 = vand.u32 2147483648, %v2010_v46  ;;  %v1167_v61 = vperm.slane %v2075_v35, %v1933_v24  ;;  %v1113_v51 = vsub.f32 1.0, %v1112_v6  ;;  %v1105_v38 = vand.u32 2147483647, %v2010_v46 }
 0x255   :  { %v1074_v54 = vsel %vm2098_vm15, %v2005_v27, %v1070_v43  ;;  %v1120_v49 = vand.u32 2147483647, %v1999_v8  ;;  %vm806_vm9 = vcmask 851712   ;;  %v1162_v32 = vsel %vm2242_vm1, %v1161_v31, %v1160_v55 }
 0x256   :  { %v1098_v1 = vsub.f32 1.0, %v1097_v39  ;;  %vm1101_vm10 = vweird.f32 %v2010_v46  ;;  %vm1116_vm0 = vweird.f32 %v1999_v8  ;;  %v1123_v27 = vor.u32 1.1754944e-38, %v1122_v33 }
 0x257   :  { %v1108_v3 = vor.u32 1.1754944e-38, %v1107_v58  ;;  %vm1117_vm4 = vweird.f32 %v2068_v29  ;;  %vm810_vm6 = vcmask 917312   ;;  %vm1102_vm3 = vweird.f32 %v2082_v26 }
 0x258   :  { %v647_v50 = vpop.permute.xlu0 %646  ;;  %vm2130_vm7 = vcmp.eq.f32.partialorder %v1105_v38, 8.507059e+37  ;;  %vm2134_vm15 = vcmp.eq.f32.partialorder %v1120_v49, 8.507059e+37  ;;  %v1099_v39 = vmul.f32 %v2082_v26, %v1098_v1  ;;  %vm2288_vm1 = vcmask 261312  }
 0x259   :  { %v2103_v25 = vperm.slane %v647_v50, 0 }
 0x25b   :  { %v650_v2 = vadd.f32 %v2103_v25, %v1674_v59  ;;  %v651_v17 = vadd.f32 %v2103_v25, %v1680_v5  ;;  %v652_v37 = vadd.f32 %v2103_v25, %v1725_v10  ;;  %v653_v11 = vadd.f32 %v2103_v25, %v1730_v21 }
 0x25c   :  { %v1079_v59 = vsel %vm2085_vm2, %v1078_v19, %v1074_v54  ;;  %v1114_v5 = vmul.f32 %v2068_v29, %v1113_v51  ;;  %v654_v10 = vadd.f32 %v2103_v25, %v1697_v44  ;;  %v1164_v21 = vsel %vm2243_vm5, %v1163_v28, %v1162_v32 }
 0x25d   :  { %v655_v6 = vadd.f32 %v2103_v25, %v1722_v7  ;;  %v759_v18 = vperm.slane %v650_v2, %v1691_v42  ;;  %v761_v44 = vperm.slane %v651_v17, %v1709_v56  ;;  %v765_v19 = vperm.slane %v652_v37, %v1706_v53 }
 0x25e   :  { %vm814_vm2 = vcmask 982912   ;;  %v656_v50 = vadd.f32 %v2103_v25, %v1732_v22  ;;  %v657_v33 = vadd.f32 %v2103_v25, %v1738_v20  ;;  %v1165_v28 = vperm.slane %v1079_v59, %v1985_v62 }
 0x25f   :  { %v658_v7 = vadd.f32 %v2103_v25, %v1734_v23  ;;  %v659_v42 = vadd.f32 %v2103_v25, %v1740_v30  ;;  %v763_v53 = vsel %vm762_vm12, %v761_v44, %v759_v18  ;;  %v769_v56 = vperm.slane %v653_v11, %v1780_v9 }
 0x260   :  { %v660_v55 = vadd.f32 %v2103_v25, %v1753_v36  ;;  %v661_v22 = vadd.f32 %v2103_v25, %v1742_v34  ;;  %v767_v20 = vsel %vm766_vm13, %v765_v19, %v763_v53  ;;  %v773_v31 = vperm.slane %v654_v10, %v1791_v13  ;;  %vm1118_vm13 = vmor %vm1116_vm0, %vm1117_vm4 }
 0x261   :  { %v662_v23 = vadd.f32 %v2103_v25, %v1756_v40  ;;  %v663_v30 = vadd.f32 %v2103_v25, %v1772_v57  ;;  %v771_v12 = vsel %vm2288_vm1, %v769_v56, %v767_v20  ;;  %v777_v9 = vperm.slane %v655_v6, %v1860_v45  ;;  %vm1103_vm1 = vmor %vm1101_vm10, %vm1102_vm3 }
 0x262   :  { %vm2289_vm12 = vcmask 326912   ;;  %v781_v36 = vperm.slane %v656_v50, %v1869_v48  ;;  %v1100_v34 = vadd.f32 %v2082_v26, %v1099_v39  ;;  %v1115_v51 = vadd.f32 %v2068_v29, %v1114_v5 }
 0x263   :  { %v775_v58 = vsel %vm2289_vm12, %v773_v31, %v771_v12  ;;  %v664_v40 = vadd.f32 %v2103_v25, %v1863_v14  ;;  %vm2290_vm5 = vcmask 392512   ;;  %v785_v13 = vperm.slane %v657_v33, %v1909_v41 }
 0x264   :  { %v779_v57 = vsel %vm2290_vm5, %v777_v9, %v775_v58  ;;  %v789_v45 = vperm.slane %v658_v7, %v1906_v63  ;;  %vm2291_vm12 = vcmask 458112   ;;  %v1104_v54 = vsel %vm1103_vm1, %v2082_v26, %v1100_v34 }
 0x265   :  { %v783_v48 = vsel %vm2291_vm12, %v781_v36, %v779_v57  ;;  %v1119_v8 = vsel %vm1118_vm13, %v2068_v29, %v1115_v51  ;;  %v1166_v38 = vsel %vm806_vm9, %v1165_v28, %v1164_v21  ;;  %v793_v49 = vperm.slane %v659_v42, %v1900_v60 }
 0x266   :  { %v787_v14 = vsel %vm786_vm11, %v785_v13, %v783_v48  ;;  %v1109_v63 = vsel %vm2130_vm7, %v1108_v3, %v1104_v54  ;;  %v1124_v41 = vsel %vm2134_vm15, %v1123_v27, %v1119_v8  ;;  %v797_v29 = vperm.slane %v660_v55, %v1922_v16 }
 0x267   :  { %v791_v46 = vsel %vm790_vm8, %v789_v45, %v787_v14  ;;  %v1169_v26 = vperm.slane %v1109_v63, %v2071_v4  ;;  %v1171_v60 = vperm.slane %v1124_v41, %v2090_v47  ;;  %v665_v2 = vadd.f32 %v2103_v25, %v2027_v52 }
 0x268   :  { %v795_v17 = vsel %vm794_vm14, %v793_v49, %v791_v46  ;;  %v801_v37 = vperm.slane %v661_v22, %v1912_v0  ;;  %v1168_v32 = vsel %vm810_vm6, %v1167_v61, %v1166_v38  ;;  %vm2292_vm11 = vcmask 720512  }
 0x269   :  { %v799_v1 = vsel %vm2292_vm11, %v797_v29, %v795_v17  ;;  %v805_v16 = vperm.slane %v662_v23, %v1985_v62  ;;  %v1170_v27 = vsel %vm814_vm2, %v1169_v26, %v1168_v32  ;;  %vm2293_vm8 = vcmask 786112  }
 0x26a   :  { %v803_v3 = vsel %vm2293_vm8, %v801_v37, %v799_v1  ;;  %v809_v52 = vperm.slane %v663_v30, %v1933_v24  ;;  %vm2294_vm14 = vcmask 1048512   ;;  %v813_v62 = vperm.slane %v664_v40, %v2071_v4 }
 0x26b   :  { %v1172_v0 = vsel %vm2294_vm14, %v1171_v60, %v1170_v27  ;;  %v807_v35 = vsel %vm806_vm9, %v805_v16, %v803_v3  ;;  %v817_v61 = vperm.slane %v665_v2, %v2090_v47  ;;  %vm2295_vm5 = vmmov %vm2294_vm14 }
 0x26c   :  { %1174 = vst [vmem:[#allocation13] sm:$0x1] %v1172_v0  ;;  %v811_v25 = vsel %vm810_vm6, %v809_v52, %v807_v35 }
 0x26d   :  { %1196 = dma.vmem_to_hbm [thread:$0]  %s1192_s7, 16, %s1194_s14, [#allocation14]   ;;  %v815_v24 = vsel %vm814_vm2, %v813_v62, %v811_v25 }
 0x26e   :  { %v819_v11 = vsel %vm2295_vm5, %v817_v61, %v815_v24 }
 0x26f   :  { %821 = vst [vmem:[#allocation12] sm:$0x1] %v819_v11 }
 0x270   :  { %1185 = dma.vmem_to_hbm [thread:$0]  %s1181_s15, 16, %s1183_s18, [#allocation6]  }
 0x271   :  { %1457 = dma.done.wait [#allocation6], 16  }
 0x272   :  { %1458 = vsyncadd [#allocation6], 4294967280 }
 0x273   :  { %1459 = dma.done.wait [#allocation14], 16  }
 0x274   :  { %1460 = vsyncadd [#allocation14], 4294967280 }
 0x275   :  { %1205 = vsyncpa [#allocation5], 1 }
 0x276   :  { %1206 = vsyncpa [#allocation8], 1 }
 0x277   :  { %1207 = vsyncpa [#allocation11], 1 }
 0x278   :  { %1208 = vsyncpa [#allocation6], 1 }
 0x279   :  { %1209 = vsyncpa [#allocation14], 1 }

// kernel: tpu_custom_call.1
= control target key start
LH: loop header
LB: loop body
LE: loop exit
PB: predicated region body
PF: predicated region fallthrough
CT: control target
= control target key end

     0   :  { %s2225_s0 = inlined_call_operand.hbm [shape: f32[128,128], index: 0, kind: input, shape index: {}]   ;;  %s2226_s1 = inlined_call_operand.hbm [shape: f32[128,256], index: 1, kind: input, shape index: {}]   ;;  %s2227_s2 = inlined_call_operand.vmem [shape: f32[1,256], index: 2, kind: input, shape index: {}]   ;;  %s2228_s3 = inlined_call_operand.hbm [shape: f32[128,128], index: 3, kind: input, shape index: {}]   ;;  %s2229_s4 = inlined_call_operand.vmem [shape: f32[1,128], index: 4, kind: input, shape index: {}]   ;;  %s2230_s5 = inlined_call_operand.hbm [shape: f32[128,128], index: 5, kind: input, shape index: {}]   ;;  %s2231_s6 = inlined_call_operand.vmem [shape: f32[1,128], index: 6, kind: input, shape index: {}]   ;;  %s2232_s7 = inlined_call_operand.vmem [shape: f32[1,128], index: 7, kind: input, shape index: {}]   ;;  %s2233_s8 = inlined_call_operand.<no memory space> [shape: f32[1,1], index: 8, kind: input, shape index: {}]   ;;  %s2234_s9 = inlined_call_operand.vmem [shape: f32[1,128], index: 9, kind: input, shape index: {}]   ;;  %s2235_s11 = inlined_call_operand.hbm [shape: f32[1,128], index: 11, kind: output, shape index: {0}]   ;;  %s2236_s12 = inlined_call_operand.hbm [shape: f32[1,128], index: 12, kind: output, shape index: {1}]   ;;  %s2237_s10 = inlined_call_operand.<no memory space> [shape: f32[1,1], index: 10, kind: input, shape index: {}]  }
   0x1   :  { %v18_v0 = vstv %s2233_s8  ;;  %v20_v1 = vstv %s2237_s10 }
   0x2   :  { %19 = vst [vmem:[#allocation2] sm:$0x1] %v18_v0 }
   0x3   :  { %21 = vst [vmem:[#allocation3] sm:$0x1] %v20_v1 }
   0x4   :  { %22 = vsyncpa [#allocation5], 0 }
   0x5   :  { %23 = vsyncpa [#allocation8], 0 }
   0x6   :  { %24 = vsyncpa [#allocation11], 0 }
   0x7   :  { %25 = vsyncpa [#allocation6], 0  ;;  %s44_s27 = sshll.u32 %s2226_s1, 4  ;;  %s45_s27 = int_to_ptr.hbm [resolvable:$true] %s44_s27 }
   0x8   :  { %26 = vsyncpa [#allocation14], 0  ;;  %s1461_s28 = smov [#allocation7]   ;;  %s31_s13 = sshll.u32 %s2225_s0, 4  ;;  %s32_s13 = int_to_ptr.hbm [resolvable:$true] %s31_s13 }
   0x9   :  { %s46_s29 = sshll.u32 %s1461_s28, 4  ;;  %s1462_s10 = smov 256   ;;  %s47_s29 = int_to_ptr.vmem [resolvable:$true] %s46_s29 }
   0xa   :  { %s1463_s14 = smov 16   ;;  %s1464_s15 = smov [#allocation4]  }
   0xb   :  { %52 = dma.hbm_to_vmem [thread:$0]  %s45_s27, 4096, %s47_s29, [#allocation8], %s1462_s10, %s1462_s10, %s1463_s14  }
   0xc   :  { %s33_s16 = sshll.u32 %s1464_s15, 4  ;;  %s1465_s17 = smov 128   ;;  %s34_s16 = int_to_ptr.vmem [resolvable:$true] %s33_s16 }
   0xd   :  { %s1466_s18 = smov 8   ;;  %s59_s20 = sshll.u32 %s2228_s3, 4  ;;  %s60_s20 = int_to_ptr.hbm [resolvable:$true] %s59_s20 }
   0xe   :  { %39 = dma.hbm_to_vmem [thread:$0]  %s32_s13, 2048, %s34_s16, [#allocation5], %s1465_s17, %s1465_s17, %s1466_s18  }
   0xf   :  { %s1467_s21 = smov [#allocation9]   ;;  %s74_s24 = sshll.u32 %s2230_s5, 4  ;;  %s75_s24 = int_to_ptr.hbm [resolvable:$true] %s74_s24 }
  0x10   :  { %s61_s22 = sshll.u32 %s1467_s21, 4  ;;  %s1468_s25 = smov [#allocation10]   ;;  %s62_s22 = int_to_ptr.vmem [resolvable:$true] %s61_s22 }
  0x11   :  { %67 = dma.hbm_to_vmem [thread:$0]  %s60_s20, 2048, %s62_s22, [#allocation8], %s1465_s17, %s1465_s17, %s1466_s18  }
  0x12   :  { %s76_s26 = sshll.u32 %s1468_s25, 4  ;;  %s77_s26 = int_to_ptr.vmem [resolvable:$true] %s76_s26 }
  0x13   :  { %82 = dma.hbm_to_vmem [thread:$0]  %s75_s24, 2048, %s77_s26, [#allocation11], %s1465_s17, %s1465_s17, %s1466_s18  }
  0x14   :  { %1451 = dma.done.wait [#allocation5], 2048  }
  0x15   :  { %1452 = vsyncadd [#allocation5], 4294965248 }
  0x16   :  { %1453 = dma.done.wait [#allocation8], 6144  }
  0x17   :  { %1454 = vsyncadd [#allocation8], 4294961152 }
  0x18   :  { %1455 = dma.done.wait [#allocation11], 2048  }
  0x19   :  { %1456 = vsyncadd [#allocation11], 4294965248  ;;  %v155_v2 = vld [vmem:[#allocation7 + $0xf0] sm:$0xff]  ;;  %v156_v3 = vld [vmem:[#allocation7 + $0xf8] sm:$0xff]  ;;  %vm762_vm12 = vcmask 130112   ;;  %vm766_vm13 = vcmask 195712  }
  0x1a   :  { %v153_v4 = vld [vmem:[#allocation7 + $0xe0] sm:$0xff]  ;;  %163 = vmatpush.msra.mxu0 %v155_v2  ;;  %228 = vmatpush.msra.mxu1 %v156_v3  ;;  %v154_v5 = vld [vmem:[#allocation7 + $0xe8] sm:$0xff]  ;;  %v151_v6 = vld [vmem:[#allocation7 + $0xd0] sm:$0xff]  ;;  %s1193_s14 = sshll.u32 %s2236_s12, 4  ;;  %s1471_s12 = smov [#allocation12]   ;;  %s1194_s14 = int_to_ptr.hbm [resolvable:$true] %s1193_s14 }
  0x1b   :  { %v152_v7 = vld [vmem:[#allocation7 + $0xd8] sm:$0xff]  ;;  %v149_v8 = vld [vmem:[#allocation7 + $0xc0] sm:$0xff]  ;;  %v150_v9 = vld [vmem:[#allocation7 + $0xc8] sm:$0xff]  ;;  %s1180_s15 = sshll.u32 %s1471_s12, 4  ;;  %s1182_s18 = sshll.u32 %s2235_s11, 4  ;;  %s1181_s15 = int_to_ptr.vmem [resolvable:$true] %s1180_s15  ;;  %s1183_s18 = int_to_ptr.hbm [resolvable:$true] %s1182_s18 }
  0x1c   :  { %164 = vmatpush.msra.mxu0 %v153_v4  ;;  %229 = vmatpush.msra.mxu1 %v154_v5  ;;  %v147_v10 = vld [vmem:[#allocation7 + $0xb0] sm:$0xff]  ;;  %v148_v11 = vld [vmem:[#allocation7 + $0xb8] sm:$0xff]  ;;  %v145_v12 = vld [vmem:[#allocation7 + $0xa0] sm:$0xff] }
  0x1d   :  { %v146_v13 = vld [vmem:[#allocation7 + $0xa8] sm:$0xff]  ;;  %v143_v14 = vld [vmem:[#allocation7 + $0x90] sm:$0xff]  ;;  %v144_v15 = vld [vmem:[#allocation7 + $0x98] sm:$0xff] }
  0x1e   :  { %165 = vmatpush.msra.mxu0 %v151_v6  ;;  %230 = vmatpush.msra.mxu1 %v152_v7  ;;  %v141_v16 = vld [vmem:[#allocation7 + $0x80] sm:$0xff]  ;;  %v142_v17 = vld [vmem:[#allocation7 + $0x88] sm:$0xff]  ;;  %v139_v18 = vld [vmem:[#allocation7 + $0x70] sm:$0xff] }
  0x1f   :  { %v140_v19 = vld [vmem:[#allocation7 + $0x78] sm:$0xff]  ;;  %v137_v20 = vld [vmem:[#allocation7 + $0x60] sm:$0xff]  ;;  %v138_v21 = vld [vmem:[#allocation7 + $0x68] sm:$0xff] }
  0x20   :  { %166 = vmatpush.msra.mxu0 %v149_v8  ;;  %231 = vmatpush.msra.mxu1 %v150_v9  ;;  %v135_v22 = vld [vmem:[#allocation7 + $0x50] sm:$0xff]  ;;  %v136_v23 = vld [vmem:[#allocation7 + $0x58] sm:$0xff]  ;;  %v133_v24 = vld [vmem:[#allocation7 + $0x40] sm:$0xff] }
  0x21   :  { %v134_v25 = vld [vmem:[#allocation7 + $0x48] sm:$0xff]  ;;  %v131_v26 = vld [vmem:[#allocation7 + $0x30] sm:$0xff]  ;;  %v132_v27 = vld [vmem:[#allocation7 + $0x38] sm:$0xff] }
  0x22   :  { %167 = vmatpush.msra.mxu0 %v147_v10  ;;  %232 = vmatpush.msra.mxu1 %v148_v11  ;;  %v129_v28 = vld [vmem:[#allocation7 + $0x20] sm:$0xff]  ;;  %v130_v29 = vld [vmem:[#allocation7 + $0x28] sm:$0xff]  ;;  %v127_v30 = vld [vmem:[#allocation7 + $0x10] sm:$0xff] }
  0x23   :  { %v128_v31 = vld [vmem:[#allocation7 + $0x18] sm:$0xff]  ;;  %v125_v32 = vld [vmem:[#allocation7] sm:$0xff]  ;;  %v126_v33 = vld [vmem:[#allocation7 + $0x8] sm:$0xff] }
  0x24   :  { %168 = vmatpush.msra.mxu0 %v145_v12  ;;  %233 = vmatpush.msra.mxu1 %v146_v13  ;;  %v109_v34 = vld [vmem:[#allocation4] sm:$0xff]  ;;  %v110_v35 = vld [vmem:[#allocation4 + $0x8] sm:$0xff]  ;;  %v111_v36 = vld [vmem:[#allocation4 + $0x10] sm:$0xff] }
  0x25   :  { %v112_v37 = vld [vmem:[#allocation4 + $0x18] sm:$0xff]  ;;  %v113_v38 = vld [vmem:[#allocation4 + $0x20] sm:$0xff]  ;;  %v114_v39 = vld [vmem:[#allocation4 + $0x28] sm:$0xff] }
  0x26   :  { %169 = vmatpush.msra.mxu0 %v143_v14  ;;  %234 = vmatpush.msra.mxu1 %v144_v15  ;;  %v115_v40 = vld [vmem:[#allocation4 + $0x30] sm:$0xff]  ;;  %v116_v41 = vld [vmem:[#allocation4 + $0x38] sm:$0xff]  ;;  %v117_v42 = vld [vmem:[#allocation4 + $0x40] sm:$0xff] }
  0x27   :  { %v372_v43 = vld [vmem:[#allocation9 + $0x78] sm:$0xff]  ;;  %v371_v45 = vld [vmem:[#allocation9 + $0x70] sm:$0xff]  ;;  %v118_v47 = vld [vmem:[#allocation4 + $0x48] sm:$0xff] }
  0x28   :  { %170 = vmatpush.msra.mxu0 %v141_v16  ;;  %235 = vmatpush.msra.mxu1 %v142_v17  ;;  %v489_v44 = vld [vmem:[#allocation10 + $0x78] sm:$0xff]  ;;  %v488_v46 = vld [vmem:[#allocation10 + $0x70] sm:$0xff]  ;;  %v370_v48 = vld [vmem:[#allocation9 + $0x68] sm:$0xff] }
  0x29   :  { %377 = vmatpush.msra.mxu2 %v372_v43  ;;  %494 = vmatpush.msra.mxu3 %v489_v44  ;;  %v487_v49 = vld [vmem:[#allocation10 + $0x68] sm:$0xff]  ;;  %v369_v50 = vld [vmem:[#allocation9 + $0x60] sm:$0xff]  ;;  %v368_v52 = vld [vmem:[#allocation9 + $0x58] sm:$0xff] }
  0x2a   :  { %171 = vmatpush.msra.mxu0 %v139_v18  ;;  %236 = vmatpush.msra.mxu1 %v140_v19  ;;  %v486_v51 = vld [vmem:[#allocation10 + $0x60] sm:$0xff]  ;;  %v485_v53 = vld [vmem:[#allocation10 + $0x58] sm:$0xff]  ;;  %v367_v54 = vld [vmem:[#allocation9 + $0x50] sm:$0xff] }
  0x2b   :  { %378 = vmatpush.msra.mxu2 %v371_v45  ;;  %495 = vmatpush.msra.mxu3 %v488_v46  ;;  %v484_v55 = vld [vmem:[#allocation10 + $0x50] sm:$0xff]  ;;  %v366_v57 = vld [vmem:[#allocation9 + $0x48] sm:$0xff]  ;;  %v365_v59 = vld [vmem:[#allocation9 + $0x40] sm:$0xff] }
  0x2c   :  { %172 = vmatpush.msra.mxu0 %v137_v20  ;;  %237 = vmatpush.msra.mxu1 %v138_v21  ;;  %v119_v56 = vld [vmem:[#allocation4 + $0x50] sm:$0xff]  ;;  %v483_v58 = vld [vmem:[#allocation10 + $0x48] sm:$0xff]  ;;  %v482_v60 = vld [vmem:[#allocation10 + $0x40] sm:$0xff] }
  0x2d   :  { %379 = vmatpush.msra.mxu2 %v370_v48  ;;  %496 = vmatpush.msra.mxu3 %v487_v49  ;;  %v364_v61 = vld [vmem:[#allocation9 + $0x38] sm:$0xff]  ;;  %v363_v63 = vld [vmem:[#allocation9 + $0x30] sm:$0xff]  ;;  %v362_v2 = vld [vmem:[#allocation9 + $0x28] sm:$0xff] }
  0x2e   :  { %173 = vmatpush.msra.mxu0 %v135_v22  ;;  %238 = vmatpush.msra.mxu1 %v136_v23  ;;  %v481_v62 = vld [vmem:[#allocation10 + $0x38] sm:$0xff]  ;;  %v480_v0 = vld [vmem:[#allocation10 + $0x30] sm:$0xff]  ;;  %v479_v3 = vld [vmem:[#allocation10 + $0x28] sm:$0xff] }
  0x2f   :  { %380 = vmatpush.msra.mxu2 %v369_v50  ;;  %497 = vmatpush.msra.mxu3 %v486_v51  ;;  %v120_v1 = vld [vmem:[#allocation4 + $0x58] sm:$0xff]  ;;  %v361_v4 = vld [vmem:[#allocation9 + $0x20] sm:$0xff]  ;;  %v359_v9 = vld [vmem:[#allocation9 + $0x10] sm:$0xff] }
  0x30   :  { %174 = vmatpush.msra.mxu0 %v133_v24  ;;  %239 = vmatpush.msra.mxu1 %v134_v25  ;;  %v478_v5 = vld [vmem:[#allocation10 + $0x20] sm:$0xff]  ;;  %v360_v6 = vld [vmem:[#allocation9 + $0x18] sm:$0xff]  ;;  %v476_v10 = vld [vmem:[#allocation10 + $0x10] sm:$0xff] }
  0x31   :  { %381 = vmatpush.msra.mxu2 %v368_v52  ;;  %498 = vmatpush.msra.mxu3 %v485_v53  ;;  %v477_v7 = vld [vmem:[#allocation10 + $0x18] sm:$0xff]  ;;  %v121_v8 = vld [vmem:[#allocation4 + $0x60] sm:$0xff]  ;;  %v358_v11 = vld [vmem:[#allocation9 + $0x8] sm:$0xff] }
  0x32   :  { %175 = vmatpush.msra.mxu0 %v131_v26  ;;  %240 = vmatpush.msra.mxu1 %v132_v27  ;;  %v475_v12 = vld [vmem:[#allocation10 + $0x8] sm:$0xff]  ;;  %v357_v13 = vld [vmem:[#allocation9] sm:$0xff]  ;;  %v123_v16 = vld [vmem:[#allocation4 + $0x70] sm:$0xff] }
  0x33   :  { %382 = vmatpush.msra.mxu2 %v367_v54  ;;  %499 = vmatpush.msra.mxu3 %v484_v55  ;;  %v474_v14 = vld [vmem:[#allocation10] sm:$0xff]  ;;  %v122_v15 = vld [vmem:[#allocation4 + $0x68] sm:$0xff]  ;;  %v124_v17 = vld [vmem:[#allocation4 + $0x78] sm:$0xff] }
  0x34   :  { %176 = vmatpush.msra.mxu0 %v129_v28  ;;  %241 = vmatpush.msra.mxu1 %v130_v29  ;;  %v157_v18 = vld [vmem:[%s2227_s2] sm:$0x3] }
  0x35   :  { %383 = vmatpush.msra.mxu2 %v366_v57  ;;  %500 = vmatpush.msra.mxu3 %v483_v58  ;;  %v1558_v19 = vperm.slane %v157_v18, 0  ;;  %v1560_v20 = vperm.slane %v157_v18, 1 }
  0x36   :  { %177 = vmatpush.msra.mxu0 %v127_v30  ;;  %242 = vmatpush.msra.mxu1 %v128_v31 }
  0x37   :  { %384 = vmatpush.msra.mxu2 %v365_v59  ;;  %501 = vmatpush.msra.mxu3 %v482_v60 }
  0x38   :  { %178 = vmatpush.msra.mxu0 %v125_v32  ;;  %243 = vmatpush.msra.mxu1 %v126_v33 }
  0x39   :  { %179 = vmatmul.f32.vlgmr.msra.gmra.mxu0 %v109_v34  ;;  %244 = vmatmul.f32.vlgmr.msra.gmra.mxu1 %v109_v34 }
  0x3a   :  { %385 = vmatpush.msra.mxu2 %v364_v61  ;;  %502 = vmatpush.msra.mxu3 %v481_v62 }
  0x3c   :  { %386 = vmatpush.msra.mxu2 %v363_v63  ;;  %503 = vmatpush.msra.mxu3 %v480_v0 }
  0x3e   :  { %387 = vmatpush.msra.mxu2 %v362_v2  ;;  %504 = vmatpush.msra.mxu3 %v479_v3 }
  0x40   :  { %388 = vmatpush.msra.mxu2 %v361_v4  ;;  %505 = vmatpush.msra.mxu3 %v478_v5 }
  0x41   :  { %182 = vmatmul.f32.gmra.mxu0 %v110_v35  ;;  %247 = vmatmul.f32.gmra.mxu1 %v110_v35 }
  0x42   :  { %389 = vmatpush.msra.mxu2 %v360_v6  ;;  %506 = vmatpush.msra.mxu3 %v477_v7 }
  0x44   :  { %390 = vmatpush.msra.mxu2 %v359_v9  ;;  %507 = vmatpush.msra.mxu3 %v476_v10 }
  0x46   :  { %391 = vmatpush.msra.mxu2 %v358_v11  ;;  %508 = vmatpush.msra.mxu3 %v475_v12 }
  0x48   :  { %392 = vmatpush.msra.mxu2 %v357_v13  ;;  %509 = vmatpush.msra.mxu3 %v474_v14 }
  0x49   :  { %185 = vmatmul.f32.gmra.mxu0 %v111_v36  ;;  %250 = vmatmul.f32.gmra.mxu1 %v111_v36 }
  0x51   :  { %188 = vmatmul.f32.gmra.mxu0 %v112_v37  ;;  %253 = vmatmul.f32.gmra.mxu1 %v112_v37 }
  0x59   :  { %191 = vmatmul.f32.gmra.mxu0 %v113_v38  ;;  %256 = vmatmul.f32.gmra.mxu1 %v113_v38 }
  0x61   :  { %194 = vmatmul.f32.gmra.mxu0 %v114_v39  ;;  %259 = vmatmul.f32.gmra.mxu1 %v114_v39 }
  0x69   :  { %197 = vmatmul.f32.gmra.mxu0 %v115_v40  ;;  %262 = vmatmul.f32.gmra.mxu1 %v115_v40 }
  0x71   :  { %200 = vmatmul.f32.gmra.mxu0 %v116_v41  ;;  %265 = vmatmul.f32.gmra.mxu1 %v116_v41 }
  0x79   :  { %203 = vmatmul.f32.gmra.mxu0 %v117_v42  ;;  %268 = vmatmul.f32.gmra.mxu1 %v117_v42 }
  0x81   :  { %206 = vmatmul.f32.gmra.mxu0 %v118_v47  ;;  %271 = vmatmul.f32.gmra.mxu1 %v118_v47 }
  0x89   :  { %209 = vmatmul.f32.gmra.mxu0 %v119_v56  ;;  %274 = vmatmul.f32.gmra.mxu1 %v119_v56 }
  0x91   :  { %212 = vmatmul.f32.gmra.mxu0 %v120_v1  ;;  %277 = vmatmul.f32.gmra.mxu1 %v120_v1 }
  0x99   :  { %215 = vmatmul.f32.gmra.mxu0 %v121_v8  ;;  %280 = vmatmul.f32.gmra.mxu1 %v121_v8 }
  0xa1   :  { %218 = vmatmul.f32.gmra.mxu0 %v122_v15  ;;  %283 = vmatmul.f32.gmra.mxu1 %v122_v15 }
  0xa9   :  { %221 = vmatmul.f32.gmra.mxu0 %v123_v16  ;;  %286 = vmatmul.f32.gmra.mxu1 %v123_v16 }
  0xb1   :  { %289 = vmatmul.f32.gmra.mxu1 %v124_v17  ;;  %224 = vmatmul.f32.gmra.mxu0 %v124_v17 }
  0xb6   :  { %v180_v21 = vpop.f32.mrf.mxu0  ;;  %v245_v22 = vpop.f32.mrf.mxu1 }
  0xb7   :  { %v181_v23 = vadd.f32 %v180_v21, %v1558_v19  ;;  %v246_v24 = vadd.f32 %v245_v22, %v1560_v20 }
  0xb9   :  { %v293_v25 = vmul.f32 0.01, %v181_v23  ;;  %v294_v26 = vmul.f32 0.01, %v246_v24 }
  0xbb   :  { %v325_v27 = vmax.f32 %v181_v23, %v293_v25  ;;  %v326_v28 = vmax.f32 %v246_v24, %v294_v26 }
  0xbd   :  { %393 = vmatmul.f32.vlgmr.msra.gmra.mxu2 %v325_v27  ;;  %510 = vmatmul.f32.vlgmr.msra.gmra.mxu3 %v326_v28 }
  0xbe   :  { %v183_v29 = vpop.f32.mrf.mxu0  ;;  %v248_v30 = vpop.f32.mrf.mxu1 }
  0xbf   :  { %v184_v31 = vadd.f32 %v183_v29, %v1558_v19  ;;  %v249_v32 = vadd.f32 %v248_v30, %v1560_v20 }
  0xc1   :  { %v295_v33 = vmul.f32 0.01, %v184_v31  ;;  %v296_v34 = vmul.f32 0.01, %v249_v32 }
  0xc3   :  { %v327_v35 = vmax.f32 %v184_v31, %v295_v33  ;;  %v328_v36 = vmax.f32 %v249_v32, %v296_v34 }
  0xc5   :  { %396 = vmatmul.f32.gmra.mxu2 %v327_v35  ;;  %513 = vmatmul.f32.gmra.mxu3 %v328_v36 }
  0xc6   :  { %v186_v37 = vpop.f32.mrf.mxu0  ;;  %v251_v38 = vpop.f32.mrf.mxu1 }
  0xc7   :  { %v187_v39 = vadd.f32 %v186_v37, %v1558_v19  ;;  %v252_v40 = vadd.f32 %v251_v38, %v1560_v20 }
  0xc9   :  { %v297_v41 = vmul.f32 0.01, %v187_v39  ;;  %v298_v42 = vmul.f32 0.01, %v252_v40 }
  0xcb   :  { %v329_v43 = vmax.f32 %v187_v39, %v297_v41  ;;  %v330_v44 = vmax.f32 %v252_v40, %v298_v42  ;;  %v1469_v41 = vmov 0  }
  0xcc   :  { %1237 = vset.pattern.permute.xlu1 %v1469_v41  ;;  %1238 = vset.pattern.permute.xlu0 %v1469_v41 }
  0xcd   :  { %399 = vmatmul.f32.gmra.mxu2 %v329_v43  ;;  %516 = vmatmul.f32.gmra.mxu3 %v330_v44 }
  0xce   :  { %v189_v45 = vpop.f32.mrf.mxu0  ;;  %v254_v46 = vpop.f32.mrf.mxu1 }
  0xcf   :  { %v190_v47 = vadd.f32 %v189_v45, %v1558_v19  ;;  %v255_v48 = vadd.f32 %v254_v46, %v1560_v20  ;;  %v718_v46 = vld [vmem:[#allocation3] sm:$0x1] }
  0xd0   :  { %721 = vperm.xlu1 %1237, %v718_v46  }
  0xd1   :  { %v299_v49 = vmul.f32 0.01, %v190_v47  ;;  %v300_v50 = vmul.f32 0.01, %v255_v48 }
  0xd3   :  { %v331_v51 = vmax.f32 %v190_v47, %v299_v49  ;;  %v332_v52 = vmax.f32 %v255_v48, %v300_v50 }
  0xd5   :  { %402 = vmatmul.f32.gmra.mxu2 %v331_v51  ;;  %519 = vmatmul.f32.gmra.mxu3 %v332_v52 }
  0xd6   :  { %v192_v53 = vpop.f32.mrf.mxu0  ;;  %v257_v54 = vpop.f32.mrf.mxu1 }
  0xd7   :  { %v193_v55 = vadd.f32 %v192_v53, %v1558_v19  ;;  %v258_v56 = vadd.f32 %v257_v54, %v1560_v20 }
  0xd9   :  { %v301_v57 = vmul.f32 0.01, %v193_v55  ;;  %v302_v58 = vmul.f32 0.01, %v258_v56 }
  0xdb   :  { %v333_v59 = vmax.f32 %v193_v55, %v301_v57  ;;  %v334_v60 = vmax.f32 %v258_v56, %v302_v58 }
  0xdd   :  { %405 = vmatmul.f32.gmra.mxu2 %v333_v59  ;;  %522 = vmatmul.f32.gmra.mxu3 %v334_v60 }
  0xde   :  { %v195_v61 = vpop.f32.mrf.mxu0  ;;  %v260_v62 = vpop.f32.mrf.mxu1 }
  0xdf   :  { %v196_v63 = vadd.f32 %v195_v61, %v1558_v19  ;;  %v261_v0 = vadd.f32 %v260_v62, %v1560_v20 }
  0xe1   :  { %v303_v1 = vmul.f32 0.01, %v196_v63  ;;  %v304_v2 = vmul.f32 0.01, %v261_v0 }
  0xe3   :  { %v335_v3 = vmax.f32 %v196_v63, %v303_v1  ;;  %v336_v4 = vmax.f32 %v261_v0, %v304_v2 }
  0xe5   :  { %408 = vmatmul.f32.gmra.mxu2 %v335_v3  ;;  %525 = vmatmul.f32.gmra.mxu3 %v336_v4 }
  0xe6   :  { %v198_v5 = vpop.f32.mrf.mxu0  ;;  %v263_v6 = vpop.f32.mrf.mxu1 }
  0xe7   :  { %v199_v7 = vadd.f32 %v198_v5, %v1558_v19  ;;  %v264_v8 = vadd.f32 %v263_v6, %v1560_v20 }
  0xe9   :  { %v305_v9 = vmul.f32 0.01, %v199_v7  ;;  %v306_v10 = vmul.f32 0.01, %v264_v8 }
  0xeb   :  { %v337_v11 = vmax.f32 %v199_v7, %v305_v9  ;;  %v338_v12 = vmax.f32 %v264_v8, %v306_v10 }
  0xed   :  { %411 = vmatmul.f32.gmra.mxu2 %v337_v11  ;;  %528 = vmatmul.f32.gmra.mxu3 %v338_v12 }
  0xee   :  { %v201_v13 = vpop.f32.mrf.mxu0  ;;  %v266_v14 = vpop.f32.mrf.mxu1 }
  0xef   :  { %v202_v15 = vadd.f32 %v201_v13, %v1558_v19  ;;  %v267_v16 = vadd.f32 %v266_v14, %v1560_v20 }
  0xf1   :  { %v307_v17 = vmul.f32 0.01, %v202_v15  ;;  %v308_v18 = vmul.f32 0.01, %v267_v16 }
  0xf3   :  { %v339_v21 = vmax.f32 %v202_v15, %v307_v17  ;;  %v340_v22 = vmax.f32 %v267_v16, %v308_v18 }
  0xf5   :  { %414 = vmatmul.f32.gmra.mxu2 %v339_v21  ;;  %531 = vmatmul.f32.gmra.mxu3 %v340_v22 }
  0xf6   :  { %v204_v23 = vpop.f32.mrf.mxu0  ;;  %v269_v24 = vpop.f32.mrf.mxu1 }
  0xf7   :  { %v205_v25 = vadd.f32 %v204_v23, %v1558_v19  ;;  %v270_v26 = vadd.f32 %v269_v24, %v1560_v20 }
  0xf9   :  { %v309_v27 = vmul.f32 0.01, %v205_v25  ;;  %v310_v28 = vmul.f32 0.01, %v270_v26 }
  0xfb   :  { %v341_v29 = vmax.f32 %v205_v25, %v309_v27  ;;  %v342_v30 = vmax.f32 %v270_v26, %v310_v28  ;;  %v1597_v27 = vld [vmem:[%s2229_s4] ss:$0 sm:$0xff] }
  0xfc   :  { %v1602_v28 = vld [vmem:[%s2231_s6] ss:$0 sm:$0xff]  ;;  %s1470_s6 = smov [#allocation13]  }
  0xfd   :  { %417 = vmatmul.f32.gmra.mxu2 %v341_v29  ;;  %534 = vmatmul.f32.gmra.mxu3 %v342_v30 }
  0xfe   :  { %v207_v31 = vpop.f32.mrf.mxu0  ;;  %v272_v32 = vpop.f32.mrf.mxu1 }
  0xff   :  { %v208_v33 = vadd.f32 %v207_v31, %v1558_v19  ;;  %v273_v34 = vadd.f32 %v272_v32, %v1560_v20  ;;  %v1609_v31 = vld [vmem:[%s2234_s9] ss:$0 sm:$0xff] }
 0x101   :  { %v311_v35 = vmul.f32 0.01, %v208_v33  ;;  %v312_v36 = vmul.f32 0.01, %v273_v34 }
 0x103   :  { %v343_v37 = vmax.f32 %v208_v33, %v311_v35  ;;  %v344_v38 = vmax.f32 %v273_v34, %v312_v36  ;;  %v1614_v34 = vld [vmem:[%s2232_s7] ss:$0 sm:$0xff]  ;;  %s1191_s7 = sshll.u32 %s1470_s6, 4  ;;  %s1192_s7 = int_to_ptr.vmem [resolvable:$true] %s1191_s7 }
 0x105   :  { %420 = vmatmul.f32.gmra.mxu2 %v343_v37  ;;  %537 = vmatmul.f32.gmra.mxu3 %v344_v38 }
 0x106   :  { %v210_v39 = vpop.f32.mrf.mxu0  ;;  %v275_v40 = vpop.f32.mrf.mxu1 }
 0x107   :  { %v211_v42 = vadd.f32 %v210_v39, %v1558_v19  ;;  %v276_v43 = vadd.f32 %v275_v40, %v1560_v20 }
 0x109   :  { %v313_v44 = vmul.f32 0.01, %v211_v42  ;;  %v314_v45 = vmul.f32 0.01, %v276_v43 }
 0x10b   :  { %v345_v47 = vmax.f32 %v211_v42, %v313_v44  ;;  %v346_v48 = vmax.f32 %v276_v43, %v314_v45 }
 0x10d   :  { %423 = vmatmul.f32.gmra.mxu2 %v345_v47  ;;  %540 = vmatmul.f32.gmra.mxu3 %v346_v48 }
 0x10e   :  { %v213_v49 = vpop.f32.mrf.mxu0  ;;  %v278_v50 = vpop.f32.mrf.mxu1 }
 0x10f   :  { %v214_v51 = vadd.f32 %v213_v49, %v1558_v19  ;;  %v279_v52 = vadd.f32 %v278_v50, %v1560_v20 }
 0x111   :  { %v315_v53 = vmul.f32 0.01, %v214_v51  ;;  %v316_v54 = vmul.f32 0.01, %v279_v52 }
 0x113   :  { %v347_v55 = vmax.f32 %v214_v51, %v315_v53  ;;  %v348_v56 = vmax.f32 %v279_v52, %v316_v54 }
 0x115   :  { %426 = vmatmul.f32.gmra.mxu2 %v347_v55  ;;  %543 = vmatmul.f32.gmra.mxu3 %v348_v56 }
 0x116   :  { %v216_v57 = vpop.f32.mrf.mxu0  ;;  %v281_v58 = vpop.f32.mrf.mxu1 }
 0x117   :  { %v217_v59 = vadd.f32 %v216_v57, %v1558_v19  ;;  %v282_v60 = vadd.f32 %v281_v58, %v1560_v20 }
 0x119   :  { %v317_v61 = vmul.f32 0.01, %v217_v59  ;;  %v318_v62 = vmul.f32 0.01, %v282_v60 }
 0x11b   :  { %v349_v63 = vmax.f32 %v217_v59, %v317_v61  ;;  %v350_v0 = vmax.f32 %v282_v60, %v318_v62 }
 0x11d   :  { %429 = vmatmul.f32.gmra.mxu2 %v349_v63  ;;  %546 = vmatmul.f32.gmra.mxu3 %v350_v0 }
 0x11e   :  { %v219_v1 = vpop.f32.mrf.mxu0  ;;  %v284_v2 = vpop.f32.mrf.mxu1 }
 0x11f   :  { %v220_v3 = vadd.f32 %v219_v1, %v1558_v19  ;;  %v285_v4 = vadd.f32 %v284_v2, %v1560_v20 }
 0x121   :  { %v319_v5 = vmul.f32 0.01, %v220_v3  ;;  %v320_v6 = vmul.f32 0.01, %v285_v4 }
 0x123   :  { %v351_v7 = vmax.f32 %v220_v3, %v319_v5  ;;  %v352_v8 = vmax.f32 %v285_v4, %v320_v6 }
 0x125   :  { %432 = vmatmul.f32.gmra.mxu2 %v351_v7  ;;  %549 = vmatmul.f32.gmra.mxu3 %v352_v8 }
 0x126   :  { %v222_v9 = vpop.f32.mrf.mxu0  ;;  %v287_v10 = vpop.f32.mrf.mxu1 }
 0x127   :  { %v223_v11 = vadd.f32 %v222_v9, %v1558_v19  ;;  %v288_v12 = vadd.f32 %v287_v10, %v1560_v20 }
 0x129   :  { %v321_v13 = vmul.f32 0.01, %v223_v11  ;;  %v322_v14 = vmul.f32 0.01, %v288_v12 }
 0x12b   :  { %v353_v15 = vmax.f32 %v223_v11, %v321_v13  ;;  %v354_v16 = vmax.f32 %v288_v12, %v322_v14 }
 0x12d   :  { %435 = vmatmul.f32.gmra.mxu2 %v353_v15  ;;  %552 = vmatmul.f32.gmra.mxu3 %v354_v16 }
 0x12e   :  { %v290_v17 = vpop.f32.mrf.mxu1  ;;  %v225_v18 = vpop.f32.mrf.mxu0 }
 0x12f   :  { %v291_v21 = vadd.f32 %v290_v17, %v1560_v20  ;;  %v226_v22 = vadd.f32 %v225_v18, %v1558_v19 }
 0x131   :  { %v324_v23 = vmul.f32 0.01, %v291_v21  ;;  %v323_v24 = vmul.f32 0.01, %v226_v22 }
 0x133   :  { %v356_v25 = vmax.f32 %v291_v21, %v324_v23  ;;  %v355_v26 = vmax.f32 %v226_v22, %v323_v24 }
 0x135   :  { %555 = vmatmul.f32.gmra.mxu3 %v356_v25  ;;  %438 = vmatmul.f32.gmra.mxu2 %v355_v26 }
 0x140   :  { %v394_v29 = vpop.f32.mrf.mxu2  ;;  %v511_v20 = vpop.f32.mrf.mxu3 }
 0x141   :  { %v395_v19 = vadd.f32 %v1597_v27, %v394_v29  ;;  %v512_v30 = vadd.f32 %v1602_v28, %v511_v20 }
 0x143   :  { %v442_v32 = vmul.f32 0.01, %v395_v19  ;;  %v559_v33 = vmul.f32 0.01, %v512_v30 }
 0x145   :  { %v575_v35 = vmax.f32 %v512_v30, %v559_v33  ;;  %v458_v36 = vmax.f32 %v395_v19, %v442_v32 }
 0x147   :  { %v670_v37 = vmul.f32 %v1609_v31, %v575_v35  ;;  %v595_v38 = vmul.f32 %v1614_v34, %v458_v36 }
 0x148   :  { %v397_v39 = vpop.f32.mrf.mxu2  ;;  %v514_v40 = vpop.f32.mrf.mxu3 }
 0x149   :  { %v398_v41 = vadd.f32 %v1597_v27, %v397_v39  ;;  %686 = vadd.xlane.f32.xlu2 %v670_v37  ;;  %611 = vadd.xlane.f32.xlu0 %v595_v38  ;;  %v515_v42 = vadd.f32 %v1602_v28, %v514_v40 }
 0x14b   :  { %v443_v43 = vmul.f32 0.01, %v398_v41  ;;  %v560_v45 = vmul.f32 0.01, %v515_v42 }
 0x14d   :  { %v459_v44 = vmax.f32 %v398_v41, %v443_v43  ;;  %v576_v51 = vmax.f32 %v515_v42, %v560_v45 }
 0x14f   :  { %v596_v46 = vmul.f32 %v1614_v34, %v459_v44  ;;  %v671_v56 = vmul.f32 %v1609_v31, %v576_v51 }
 0x150   :  { %v400_v47 = vpop.f32.mrf.mxu2  ;;  %v517_v48 = vpop.f32.mrf.mxu3 }
 0x151   :  { %v401_v49 = vadd.f32 %v1597_v27, %v400_v47  ;;  %v518_v50 = vadd.f32 %v1602_v28, %v517_v48  ;;  %613 = vadd.xlane.f32.xlu0 %v596_v46 }
 0x153   :  { %v444_v52 = vmul.f32 0.01, %v401_v49  ;;  %v561_v53 = vmul.f32 0.01, %v518_v50 }
 0x155   :  { %v460_v54 = vmax.f32 %v401_v49, %v444_v52  ;;  %v577_v55 = vmax.f32 %v518_v50, %v561_v53 }
 0x157   :  { %v672_v57 = vmul.f32 %v1609_v31, %v577_v55  ;;  %v597_v58 = vmul.f32 %v1614_v34, %v460_v54 }
 0x158   :  { %v403_v59 = vpop.f32.mrf.mxu2  ;;  %v520_v60 = vpop.f32.mrf.mxu3 }
 0x159   :  { %v404_v61 = vadd.f32 %v1597_v27, %v403_v59  ;;  %v521_v62 = vadd.f32 %v1602_v28, %v520_v60  ;;  %690 = vadd.xlane.f32.xlu2 %v672_v57  ;;  %615 = vadd.xlane.f32.xlu1 %v597_v58 }
 0x15a   :  { %688 = vadd.xlane.f32.xlu0 %v671_v56 }
 0x15b   :  { %v445_v63 = vmul.f32 0.01, %v404_v61  ;;  %v562_v0 = vmul.f32 0.01, %v521_v62 }
 0x15d   :  { %v461_v1 = vmax.f32 %v404_v61, %v445_v63  ;;  %v578_v2 = vmax.f32 %v521_v62, %v562_v0 }
 0x15f   :  { %v598_v3 = vmul.f32 %v1614_v34, %v461_v1  ;;  %v673_v4 = vmul.f32 %v1609_v31, %v578_v2 }
 0x160   :  { %v406_v5 = vpop.f32.mrf.mxu2  ;;  %v523_v6 = vpop.f32.mrf.mxu3 }
 0x161   :  { %v407_v7 = vadd.f32 %v1597_v27, %v406_v5  ;;  %v524_v8 = vadd.f32 %v1602_v28, %v523_v6  ;;  %617 = vadd.xlane.f32.xlu1 %v598_v3 }
 0x162   :  { %692 = vadd.xlane.f32.xlu0 %v673_v4 }
 0x163   :  { %v446_v9 = vmul.f32 0.01, %v407_v7  ;;  %v563_v11 = vmul.f32 0.01, %v524_v8 }
 0x165   :  { %v462_v10 = vmax.f32 %v407_v7, %v446_v9  ;;  %v579_v15 = vmax.f32 %v524_v8, %v563_v11 }
 0x167   :  { %v599_v12 = vmul.f32 %v1614_v34, %v462_v10  ;;  %v674_v22 = vmul.f32 %v1609_v31, %v579_v15 }
 0x168   :  { %v409_v13 = vpop.f32.mrf.mxu2  ;;  %v526_v14 = vpop.f32.mrf.mxu3 }
 0x169   :  { %v527_v16 = vadd.f32 %v1602_v28, %v526_v14  ;;  %619 = vadd.xlane.f32.xlu2 %v599_v12  ;;  %v410_v17 = vadd.f32 %v1597_v27, %v409_v13 }
 0x16b   :  { %v564_v18 = vmul.f32 0.01, %v527_v16  ;;  %v447_v23 = vmul.f32 0.01, %v410_v17 }
 0x16d   :  { %v580_v21 = vmax.f32 %v527_v16, %v564_v18  ;;  %v463_v19 = vmax.f32 %v410_v17, %v447_v23 }
 0x16f   :  { %v675_v24 = vmul.f32 %v1609_v31, %v580_v21  ;;  %v600_v35 = vmul.f32 %v1614_v34, %v463_v19 }
 0x170   :  { %v412_v25 = vpop.f32.mrf.mxu2  ;;  %v529_v26 = vpop.f32.mrf.mxu3 }
 0x171   :  { %v413_v29 = vadd.f32 %v1597_v27, %v412_v25  ;;  %694 = vadd.xlane.f32.xlu2 %v674_v22  ;;  %696 = vadd.xlane.f32.xlu0 %v675_v24  ;;  %v530_v20 = vadd.f32 %v1602_v28, %v529_v26 }
 0x173   :  { %v448_v30 = vmul.f32 0.01, %v413_v29  ;;  %v565_v33 = vmul.f32 0.01, %v530_v20 }
 0x175   :  { %v464_v32 = vmax.f32 %v413_v29, %v448_v30  ;;  %v581_v40 = vmax.f32 %v530_v20, %v565_v33 }
 0x177   :  { %v601_v36 = vmul.f32 %v1614_v34, %v464_v32  ;;  %v676_v43 = vmul.f32 %v1609_v31, %v581_v40 }
 0x178   :  { %v415_v37 = vpop.f32.mrf.mxu2  ;;  %v532_v38 = vpop.f32.mrf.mxu3 }
 0x179   :  { %v416_v39 = vadd.f32 %v1597_v27, %v415_v37  ;;  %621 = vadd.xlane.f32.xlu2 %v600_v35  ;;  %623 = vadd.xlane.f32.xlu0 %v601_v36  ;;  %v533_v25 = vadd.f32 %v1602_v28, %v532_v38 }
 0x17b   :  { %v449_v41 = vmul.f32 0.01, %v416_v39  ;;  %v566_v33 = vmul.f32 0.01, %v533_v25 }
 0x17d   :  { %v465_v42 = vmax.f32 %v416_v39, %v449_v41 }
 0x17f   :  { %v602_v44 = vmul.f32 %v1614_v34, %v465_v42 }
 0x180   :  { %v418_v45 = vpop.f32.mrf.mxu2  ;;  %v535_v46 = vpop.f32.mrf.mxu3 }
 0x181   :  { %v419_v47 = vadd.f32 %v1597_v27, %v418_v45  ;;  %698 = vadd.xlane.f32.xlu2 %v676_v43  ;;  %625 = vadd.xlane.f32.xlu1 %v602_v44  ;;  %v536_v13 = vadd.f32 %v1602_v28, %v535_v46  ;;  %v582_v43 = vmax.f32 %v533_v25, %v566_v33 }
 0x183   :  { %v450_v48 = vmul.f32 0.01, %v419_v47  ;;  %v567_v18 = vmul.f32 0.01, %v536_v13 }
 0x185   :  { %v466_v49 = vmax.f32 %v419_v47, %v450_v48  ;;  %v583_v20 = vmax.f32 %v536_v13, %v567_v18  ;;  %v722_v48 = vpop.permute.xlu1 %721 }
 0x187   :  { %v603_v50 = vmul.f32 %v1614_v34, %v466_v49  ;;  %v678_v39 = vmul.f32 %v1609_v31, %v583_v20  ;;  %v677_v49 = vmul.f32 %v1609_v31, %v582_v43  ;;  %v757_v20 = vlaneseq }
 0x188   :  { %v421_v51 = vpop.f32.mrf.mxu2  ;;  %v538_v52 = vpop.f32.mrf.mxu3 }
 0x189   :  { %v422_v53 = vadd.f32 %v1597_v27, %v421_v51  ;;  %627 = vadd.xlane.f32.xlu2 %v603_v50  ;;  %v539_v2 = vadd.f32 %v1602_v28, %v538_v52 }
 0x18b   :  { %v451_v54 = vmul.f32 0.01, %v422_v53  ;;  %v568_v5 = vmul.f32 0.01, %v539_v2 }
 0x18d   :  { %v467_v55 = vmax.f32 %v422_v53, %v451_v54  ;;  %v584_v10 = vmax.f32 %v539_v2, %v568_v5  ;;  %v1670_v54 = vperm.slane %v722_v48, 0 }
 0x18f   :  { %v604_v56 = vmul.f32 %v1614_v34, %v467_v55  ;;  %v679_v16 = vmul.f32 %v1609_v31, %v584_v10 }
 0x190   :  { %v424_v57 = vpop.f32.mrf.mxu2  ;;  %v541_v58 = vpop.f32.mrf.mxu3 }
 0x191   :  { %v425_v59 = vadd.f32 %v1597_v27, %v424_v57  ;;  %629 = vadd.xlane.f32.xlu0 %v604_v56  ;;  %v542_v19 = vadd.f32 %v1602_v28, %v541_v58 }
 0x193   :  { %v452_v60 = vmul.f32 0.01, %v425_v59  ;;  %v569_v37 = vmul.f32 0.01, %v542_v19 }
 0x195   :  { %v468_v61 = vmax.f32 %v425_v59, %v452_v60  ;;  %v585_v44 = vmax.f32 %v542_v19, %v569_v37 }
 0x197   :  { %v605_v62 = vmul.f32 %v1614_v34, %v468_v61  ;;  %v680_v51 = vmul.f32 %v1609_v31, %v585_v44 }
 0x198   :  { %v427_v63 = vpop.f32.mrf.mxu2  ;;  %v544_v0 = vpop.f32.mrf.mxu3 }
 0x199   :  { %v428_v1 = vadd.f32 %v1597_v27, %v427_v63  ;;  %631 = vadd.xlane.f32.xlu1 %v605_v62  ;;  %v545_v12 = vadd.f32 %v1602_v28, %v544_v0 }
 0x19b   :  { %v453_v3 = vmul.f32 0.01, %v428_v1  ;;  %v570_v15 = vmul.f32 0.01, %v545_v12 }
 0x19d   :  { %v469_v4 = vmax.f32 %v428_v1, %v453_v3  ;;  %v586_v26 = vmax.f32 %v545_v12, %v570_v15 }
 0x19f   :  { %v606_v6 = vmul.f32 %v1614_v34, %v469_v4  ;;  %v681_v35 = vmul.f32 %v1609_v31, %v586_v26 }
 0x1a0   :  { %v430_v7 = vpop.f32.mrf.mxu2  ;;  %v547_v8 = vpop.f32.mrf.mxu3 }
 0x1a1   :  { %v431_v9 = vadd.f32 %v1597_v27, %v430_v7  ;;  %633 = vadd.xlane.f32.xlu2 %v606_v6  ;;  %v548_v45 = vadd.f32 %v1602_v28, %v547_v8 }
 0x1a3   :  { %v454_v11 = vmul.f32 0.01, %v431_v9  ;;  %v571_v50 = vmul.f32 0.01, %v548_v45 }
 0x1a5   :  { %v470_v14 = vmax.f32 %v431_v9, %v454_v11  ;;  %v587_v56 = vmax.f32 %v548_v45, %v571_v50 }
 0x1a7   :  { %v607_v17 = vmul.f32 %v1614_v34, %v470_v14  ;;  %v682_v1 = vmul.f32 %v1609_v31, %v587_v56 }
 0x1a8   :  { %v433_v21 = vpop.f32.mrf.mxu2  ;;  %v550_v22 = vpop.f32.mrf.mxu3 }
 0x1a9   :  { %v434_v23 = vadd.f32 %v1597_v27, %v433_v21  ;;  %704 = vadd.xlane.f32.xlu2 %v679_v16  ;;  %635 = vadd.xlane.f32.xlu0 %v607_v17  ;;  %v551_v24 = vadd.f32 %v1602_v28, %v550_v22 }
 0x1ab   :  { %v455_v29 = vmul.f32 0.01, %v434_v23  ;;  %v572_v32 = vmul.f32 0.01, %v551_v24 }
 0x1ad   :  { %v471_v30 = vmax.f32 %v434_v23, %v455_v29  ;;  %v588_v42 = vmax.f32 %v551_v24, %v572_v32 }
 0x1af   :  { %v608_v36 = vmul.f32 %v1614_v34, %v471_v30  ;;  %v683_v47 = vmul.f32 %v1609_v31, %v588_v42  ;;  %v1691_v42 = vand.u32 127, %v757_v20 }
 0x1b0   :  { %v436_v40 = vpop.f32.mrf.mxu2  ;;  %v553_v41 = vpop.f32.mrf.mxu3 }
 0x1b1   :  { %708 = vadd.xlane.f32.xlu2 %v681_v35  ;;  %637 = vadd.xlane.f32.xlu1 %v608_v36  ;;  %v437_v38 = vadd.f32 %v1597_v27, %v436_v40  ;;  %v554_v57 = vadd.f32 %v1602_v28, %v553_v41  ;;  %v643_v41 = vld [vmem:[#allocation2] sm:$0x1]  ;;  %v1709_v56 = vadd.s32 4294967288, %v1691_v42 }
 0x1b2   :  { %702 = vadd.xlane.f32.xlu0 %v678_v39 }
 0x1b3   :  { %v456_v46 = vmul.f32 0.01, %v437_v38  ;;  %v573_v0 = vmul.f32 0.01, %v554_v57 }
 0x1b5   :  { %v472_v53 = vmax.f32 %v437_v38, %v456_v46  ;;  %v589_v4 = vmax.f32 %v554_v57, %v573_v0 }
 0x1b7   :  { %v609_v62 = vmul.f32 %v1614_v34, %v472_v53  ;;  %v684_v10 = vmul.f32 %v1609_v31, %v589_v4  ;;  %v1706_v53 = vadd.s32 4294967280, %v1691_v42 }
 0x1b8   :  { %v556_v52 = vpop.f32.mrf.mxu3  ;;  %v439_v3 = vpop.f32.mrf.mxu2 }
 0x1b9   :  { %712 = vadd.xlane.f32.xlu2 %v683_v47  ;;  %700 = vadd.xlane.f32.xlu1 %v677_v49  ;;  %v557_v55 = vadd.f32 %v1602_v28, %v556_v52  ;;  %v440_v28 = vadd.f32 %v1597_v27, %v439_v3 }
 0x1ba   :  { %706 = vadd.xlane.f32.xlu0 %v680_v51 }
 0x1bb   :  { %v574_v61 = vmul.f32 0.01, %v557_v55  ;;  %v457_v9 = vmul.f32 0.01, %v440_v28 }
 0x1bc   :  { %v687_v58 = vpop.xlane.xlu2 %686  ;;  %v1674_v59 = vpop.xlane.xlu0 %611 }
 0x1bd   :  { %v725_v60 = vadd.f32 %v1670_v54, %v687_v58  ;;  %v590_v2 = vmax.f32 %v557_v55, %v574_v61  ;;  %v473_v11 = vmax.f32 %v440_v28, %v457_v9 }
 0x1bf   :  { %v1210_v63 = vmul.f32 -1.442695, %v725_v60  ;;  %v685_v6 = vmul.f32 %v1609_v31, %v590_v2  ;;  %v610_v17 = vmul.f32 %v1614_v34, %v473_v11 }
 0x1c1   :  { %1243 = vpow2.f32 %v1210_v63  ;;  %639 = vadd.xlane.f32.xlu2 %v609_v62 }
 0x1c2   :  { %710 = vadd.xlane.f32.xlu0 %v682_v1 }
 0x1c4   :  { %v1680_v5 = vpop.xlane.xlu0 %613 }
 0x1c7   :  { %v1244_v7 = vpop.eup %1243 }
 0x1c8   :  { %v870_v8 = vadd.f32 1.0, %v1244_v7 }
 0x1c9   :  { %716 = vadd.xlane.f32.xlu2 %v685_v6 }
 0x1ca   :  { %714 = vadd.xlane.f32.xlu0 %v684_v10  ;;  %1245 = vrcp.f32 %v870_v8  ;;  %vm891_vm0 = vweird.f32 %v870_v8  ;;  %v895_v19 = vand.u32 2147483647, %v870_v8  ;;  %v897_v32 = vand.u32 2147483648, %v870_v8 }
 0x1cc   :  { %v691_v12 = vpop.xlane.xlu2 %690  ;;  %vm1693_vm5 = vcmp.eq.f32.partialorder %v895_v19, 8.507059e+37  ;;  %v898_v46 = vor.u32 1.1754944e-38, %v897_v32  ;;  %v1725_v10 = vpop.xlane.xlu1 %615 }
 0x1cd   :  { %v727_v13 = vadd.f32 %v1670_v54, %v691_v12  ;;  %v689_v14 = vpop.xlane.xlu0 %688 }
 0x1ce   :  { %v726_v15 = vadd.f32 %v1670_v54, %v689_v14 }
 0x1cf   :  { %v1212_v27 = vmul.f32 -1.442695, %v727_v13 }
 0x1d0   :  { %v1211_v16 = vmul.f32 -1.442695, %v726_v15  ;;  %v1246_v18 = vpop.eup %1245 }
 0x1d1   :  { %1247 = vpow2.f32 %v1212_v27  ;;  %v887_v21 = vmul.f32 %v1246_v18, %v870_v8  ;;  %vm892_vm1 = vweird.f32 %v1246_v18 }
 0x1d2   :  { %1249 = vpow2.f32 %v1211_v16  ;;  %641 = vadd.xlane.f32.xlu0 %v610_v17  ;;  %vm1687_vm2 = vmor %vm891_vm0, %vm892_vm1 }
 0x1d3   :  { %v888_v24 = vsub.f32 1.0, %v887_v21 }
 0x1d4   :  { %v1730_v21 = vpop.xlane.xlu1 %617 }
 0x1d5   :  { %v889_v26 = vmul.f32 %v1246_v18, %v888_v24  ;;  %v693_v8 = vpop.xlane.xlu0 %692 }
 0x1d6   :  { %v728_v9 = vadd.f32 %v1670_v54, %v693_v8 }
 0x1d7   :  { %v1248_v31 = vpop.eup %1247  ;;  %v890_v34 = vadd.f32 %v1246_v18, %v889_v26 }
 0x1d8   :  { %v1250_v22 = vpop.eup %1249  ;;  %v872_v23 = vadd.f32 1.0, %v1248_v31  ;;  %v1213_v11 = vmul.f32 -1.442695, %v728_v9  ;;  %v1780_v9 = vadd.s32 4294967272, %v1691_v42 }
 0x1d9   :  { %v871_v25 = vadd.f32 1.0, %v1250_v22  ;;  %v894_v45 = vsel %vm1687_vm2, %v1246_v18, %v890_v34 }
 0x1da   :  { %1251 = vrcp.f32 %v872_v23  ;;  %v927_v36 = vand.u32 2147483648, %v872_v23  ;;  %vm921_vm3 = vweird.f32 %v872_v23  ;;  %v925_v40 = vand.u32 2147483647, %v872_v23 }
 0x1db   :  { %1253 = vrcp.f32 %v871_v25  ;;  %v912_v48 = vand.u32 2147483648, %v871_v25  ;;  %v910_v52 = vand.u32 2147483647, %v871_v25  ;;  %vm906_vm9 = vweird.f32 %v871_v25 }
 0x1dc   :  { %v1697_v44 = vpop.xlane.xlu2 %619  ;;  %v928_v50 = vor.u32 1.1754944e-38, %v927_v36  ;;  %vm926_vm8 = vcmp.eq.f32.partialorder %v925_v40, 8.507059e+37  ;;  %v899_v58 = vsel %vm1693_vm5, %v898_v46, %v894_v45  ;;  %1255 = vpow2.f32 %v1213_v11 }
 0x1dd   :  { %v913_v61 = vor.u32 1.1754944e-38, %v912_v48  ;;  %vm911_vm11 = vcmp.eq.f32.partialorder %v910_v52, 8.507059e+37  ;;  %v1142_v2 = vperm.slane %v899_v58, %v1691_v42 }
 0x1e0   :  { %v1252_v29 = vpop.eup %1251 }
 0x1e1   :  { %v1254_v30 = vpop.eup %1253  ;;  %v917_v33 = vmul.f32 %v1252_v29, %v872_v23  ;;  %vm922_vm4 = vweird.f32 %v1252_v29 }
 0x1e2   :  { %v902_v37 = vmul.f32 %v1254_v30, %v871_v25  ;;  %vm1701_vm6 = vmor %vm921_vm3, %vm922_vm4  ;;  %vm907_vm7 = vweird.f32 %v1254_v30  ;;  %v1256_v31 = vpop.eup %1255 }
 0x1e3   :  { %v918_v39 = vsub.f32 1.0, %v917_v33  ;;  %vm908_vm10 = vmor %vm906_vm9, %vm907_vm7  ;;  %v873_v24 = vadd.f32 1.0, %v1256_v31 }
 0x1e4   :  { %v903_v43 = vsub.f32 1.0, %v902_v37  ;;  %v695_v28 = vpop.xlane.xlu2 %694  ;;  %v697_v13 = vpop.xlane.xlu0 %696 }
 0x1e5   :  { %v919_v47 = vmul.f32 %v1252_v29, %v918_v39  ;;  %v729_v12 = vadd.f32 %v1670_v54, %v695_v28  ;;  %v730_v15 = vadd.f32 %v1670_v54, %v697_v13  ;;  %v940_v58 = vand.u32 2147483647, %v873_v24 }
 0x1e6   :  { %v904_v51 = vmul.f32 %v1254_v30, %v903_v43  ;;  %646 = vperm.xlu0 %1238, %v643_v41   ;;  %vm936_vm14 = vweird.f32 %v873_v24  ;;  %v1791_v13 = vadd.s32 4294967264, %v1691_v42 }
 0x1e7   :  { %v920_v55 = vadd.f32 %v1252_v29, %v919_v47  ;;  %v1214_v27 = vmul.f32 -1.442695, %v729_v12  ;;  %v1215_v17 = vmul.f32 -1.442695, %v730_v15  ;;  %vm1786_vm1 = vcmp.eq.f32.partialorder %v940_v58, 8.507059e+37 }
 0x1e8   :  { %v905_v57 = vadd.f32 %v1254_v30, %v904_v51 }
 0x1e9   :  { %v924_v60 = vsel %vm1701_vm6, %v1252_v29, %v920_v55  ;;  %1257 = vpow2.f32 %v1214_v27 }
 0x1ea   :  { %v929_v62 = vsel %vm926_vm8, %v928_v50, %v924_v60  ;;  %v909_v63 = vsel %vm908_vm10, %v1254_v30, %v905_v57  ;;  %1259 = vpow2.f32 %v1215_v17 }
 0x1eb   :  { %v1145_v0 = vperm.slane %v929_v62, %v1706_v53  ;;  %v914_v1 = vsel %vm911_vm11, %v913_v61, %v909_v63  ;;  %v942_v62 = vand.u32 2147483648, %v873_v24 }
 0x1ec   :  { %v1143_v3 = vperm.slane %v914_v1, %v1709_v56  ;;  %v1722_v7 = vpop.xlane.xlu2 %621  ;;  %v1732_v22 = vpop.xlane.xlu0 %623 }
 0x1ee   :  { %v1144_v4 = vsel %vm762_vm12, %v1143_v3, %v1142_v2 }
 0x1ef   :  { %v1720_v6 = vsel %vm766_vm13, %v1145_v0, %v1144_v4  ;;  %v1258_v25 = vpop.eup %1257 }
 0x1f0   :  { %v1260_v26 = vpop.eup %1259  ;;  %v1736_v29 = vadd.f32 1.0, %v1258_v25 }
 0x1f1   :  { %v1744_v32 = vadd.f32 1.0, %v1260_v26 }
 0x1f2   :  { %vm951_vm2 = vweird.f32 %v1736_v29  ;;  %v955_v27 = vand.u32 2147483647, %v1736_v29 }
 0x1f3   :  { %vm966_vm4 = vweird.f32 %v1744_v32 }
 0x1f4   :  { %v699_v14 = vpop.xlane.xlu2 %698  ;;  %v1738_v20 = vpop.xlane.xlu1 %625  ;;  %vm956_vm9 = vcmp.eq.f32.partialorder %v955_v27, 8.507059e+37 }
 0x1f5   :  { %v731_v16 = vadd.f32 %v1670_v54, %v699_v14  ;;  %v943_v14 = vor.u32 1.1754944e-38, %v942_v62 }
 0x1f7   :  { %v1216_v18 = vmul.f32 -1.442695, %v731_v16  ;;  %v957_v16 = vand.u32 2147483648, %v1736_v29 }
 0x1f9   :  { %1261 = vpow2.f32 %v1216_v18  ;;  %v958_v62 = vor.u32 1.1754944e-38, %v957_v16 }
 0x1fa   :  { %1263 = vrcp.f32 %v873_v24 }
 0x1fb   :  { %1265 = vrcp.f32 %v1736_v29 }
 0x1fc   :  { %v1734_v23 = vpop.xlane.xlu2 %627  ;;  %1267 = vrcp.f32 %v1744_v32 }
 0x1ff   :  { %v1262_v19 = vpop.eup %1261 }
 0x200   :  { %v1747_v33 = vadd.f32 1.0, %v1262_v19  ;;  %v1749_v35 = vpop.eup %1263 }
 0x201   :  { %v932_v37 = vmul.f32 %v1749_v35, %v873_v24  ;;  %v1758_v41 = vpop.eup %1265  ;;  %vm937_vm15 = vweird.f32 %v1749_v35 }
 0x202   :  { %1269 = vrcp.f32 %v1747_v33  ;;  %v1761_v45 = vpop.eup %1267  ;;  %v947_v47 = vmul.f32 %v1758_v41, %v1736_v29  ;;  %vm1782_vm0 = vmor %vm936_vm14, %vm937_vm15  ;;  %vm952_vm3 = vweird.f32 %v1758_v41  ;;  %vm981_vm11 = vweird.f32 %v1747_v33 }
 0x203   :  { %v933_v46 = vsub.f32 1.0, %v932_v37  ;;  %v962_v49 = vmul.f32 %v1761_v45, %v1744_v32  ;;  %vm967_vm5 = vweird.f32 %v1761_v45  ;;  %vm1817_vm6 = vmor %vm951_vm2, %vm952_vm3  ;;  %vm2241_vm15 = vcmask 261312  }
 0x204   :  { %v1740_v30 = vpop.xlane.xlu0 %629  ;;  %v948_v51 = vsub.f32 1.0, %v947_v47  ;;  %vm1829_vm7 = vmor %vm966_vm4, %vm967_vm5  ;;  %vm2239_vm2 = vcmask 392512   ;;  %vm2238_vm3 = vcmask 458112  }
 0x205   :  { %v934_v50 = vmul.f32 %v1749_v35, %v933_v46  ;;  %v963_v1 = vsub.f32 1.0, %v962_v49 }
 0x206   :  { %v949_v4 = vmul.f32 %v1758_v41, %v948_v51 }
 0x207   :  { %v935_v3 = vadd.f32 %v1749_v35, %v934_v50  ;;  %v964_v17 = vmul.f32 %v1761_v45, %v963_v1 }
 0x208   :  { %v1765_v48 = vpop.eup %1269  ;;  %v950_v31 = vadd.f32 %v1758_v41, %v949_v4 }
 0x209   :  { %v977_v52 = vmul.f32 %v1765_v48, %v1747_v33  ;;  %v939_v18 = vsel %vm1782_vm0, %v1749_v35, %v935_v3  ;;  %v972_v35 = vand.u32 2147483648, %v1744_v32  ;;  %v965_v49 = vadd.f32 %v1761_v45, %v964_v17 }
 0x20a   :  { %v944_v46 = vsel %vm1786_vm1, %v943_v14, %v939_v18  ;;  %vm982_vm8 = vweird.f32 %v1765_v48  ;;  %vm2240_vm1 = vcmask 326912  }
 0x20b   :  { %v978_v28 = vsub.f32 1.0, %v977_v52  ;;  %vm1845_vm14 = vmor %vm981_vm11, %vm982_vm8  ;;  %v1147_v11 = vperm.slane %v944_v46, %v1780_v9  ;;  %vm786_vm11 = vcmask 523712  }
 0x20c   :  { %v1753_v36 = vpop.xlane.xlu1 %631 }
 0x20d   :  { %v979_v24 = vmul.f32 %v1765_v48, %v978_v28 }
 0x20f   :  { %v980_v29 = vadd.f32 %v1765_v48, %v979_v24 }
 0x214   :  { %v1742_v34 = vpop.xlane.xlu2 %633 }
 0x21c   :  { %v705_v39 = vpop.xlane.xlu2 %704  ;;  %v1756_v40 = vpop.xlane.xlu0 %635 }
 0x21d   :  { %v734_v38 = vadd.f32 %v1670_v54, %v705_v39 }
 0x21f   :  { %v1219_v43 = vmul.f32 -1.442695, %v734_v38  ;;  %v970_v38 = vand.u32 2147483647, %v1744_v32  ;;  %v973_v32 = vor.u32 1.1754944e-38, %v972_v35 }
 0x221   :  { %1271 = vpow2.f32 %v1219_v43  ;;  %vm1836_vm10 = vcmp.eq.f32.partialorder %v970_v38, 8.507059e+37 }
 0x224   :  { %v709_v55 = vpop.xlane.xlu2 %708  ;;  %v1772_v57 = vpop.xlane.xlu1 %637 }
 0x225   :  { %v736_v60 = vadd.f32 %v1670_v54, %v709_v55  ;;  %v703_v61 = vpop.xlane.xlu0 %702  ;;  %v954_v55 = vsel %vm1817_vm6, %v1758_v41, %v950_v31  ;;  %v1909_v41 = vadd.s32 4294967240, %v1691_v42 }
 0x226   :  { %v733_v63 = vadd.f32 %v1670_v54, %v703_v61  ;;  %v959_v1 = vsel %vm956_vm9, %v958_v62, %v954_v55 }
 0x227   :  { %v1272_v0 = vpop.eup %1271  ;;  %v1221_v2 = vmul.f32 -1.442695, %v736_v60  ;;  %v1149_v16 = vperm.slane %v959_v1, %v1791_v13 }
 0x228   :  { %v1218_v8 = vmul.f32 -1.442695, %v733_v63  ;;  %v1794_v15 = vadd.f32 1.0, %v1272_v0  ;;  %v987_v63 = vand.u32 2147483648, %v1747_v33  ;;  %v985_v0 = vand.u32 2147483647, %v1747_v33 }
 0x229   :  { %1273 = vpow2.f32 %v1221_v2  ;;  %v969_v2 = vsel %vm1829_vm7, %v1761_v45, %v965_v49  ;;  %v1860_v45 = vadd.s32 4294967256, %v1691_v42 }
 0x22a   :  { %1275 = vpow2.f32 %v1218_v8  ;;  %v984_v8 = vsel %vm1845_vm14, %v1765_v48, %v980_v29  ;;  %v988_v12 = vor.u32 1.1754944e-38, %v987_v63  ;;  %v974_v17 = vsel %vm1836_vm10, %v973_v32, %v969_v2 }
 0x22b   :  { %1277 = vrcp.f32 %v1794_v15  ;;  %v1869_v48 = vadd.s32 4294967248, %v1691_v42  ;;  %vm986_vm0 = vcmp.eq.f32.partialorder %v985_v0, 8.507059e+37  ;;  %v1906_v63 = vadd.s32 4294967232, %v1691_v42 }
 0x22c   :  { %v713_v25 = vpop.xlane.xlu2 %712  ;;  %v701_v26 = vpop.xlane.xlu1 %700  ;;  %v989_v31 = vsel %vm986_vm0, %v988_v12, %v984_v8  ;;  %v1912_v0 = vadd.s32 4294967208, %v1691_v42  ;;  %vm1026_vm4 = vweird.f32 %v1794_v15 }
 0x22d   :  { %v738_v19 = vadd.f32 %v1670_v54, %v713_v25  ;;  %v732_v37 = vadd.f32 %v1670_v54, %v701_v26  ;;  %v707_v39 = vpop.xlane.xlu0 %706 }
 0x22e   :  { %v735_v43 = vadd.f32 %v1670_v54, %v707_v39  ;;  %v1151_v39 = vperm.slane %v974_v17, %v1860_v45 }
 0x22f   :  { %v1223_v50 = vmul.f32 -1.442695, %v738_v19  ;;  %v1217_v51 = vmul.f32 -1.442695, %v732_v37  ;;  %v1274_v52 = vpop.eup %1273  ;;  %v1148_v37 = vsel %vm2241_vm15, %v1147_v11, %v1720_v6 }
 0x230   :  { %v1220_v60 = vmul.f32 -1.442695, %v735_v43  ;;  %v1276_v61 = vpop.eup %1275  ;;  %v1856_v33 = vadd.f32 1.0, %v1274_v52  ;;  %v1150_v35 = vsel %vm2240_vm1, %v1149_v16, %v1148_v37  ;;  %v1153_v43 = vperm.slane %v989_v31, %v1869_v48 }
 0x231   :  { %1279 = vpow2.f32 %v1223_v50  ;;  %v1849_v4 = vadd.f32 1.0, %v1276_v61  ;;  %v1851_v28 = vpop.eup %1277  ;;  %v1032_v50 = vand.u32 2147483648, %v1794_v15  ;;  %v1152_v52 = vsel %vm2239_vm2, %v1151_v39, %v1150_v35 }
 0x232   :  { %1281 = vpow2.f32 %v1217_v51  ;;  %v1022_v24 = vmul.f32 %v1851_v28, %v1794_v15  ;;  %v1897_v29 = vsel %vm2238_vm3, %v1153_v43, %v1152_v52  ;;  %v1030_v61 = vand.u32 2147483647, %v1794_v15 }
 0x233   :  { %1283 = vpow2.f32 %v1220_v60  ;;  %v1900_v60 = vadd.s32 4294967224, %v1691_v42  ;;  %v1033_v2 = vor.u32 1.1754944e-38, %v1032_v50  ;;  %v1062_v3 = vand.u32 2147483648, %v1856_v33 }
 0x234   :  { %1285 = vrcp.f32 %v1849_v4  ;;  %v1863_v14 = vpop.xlane.xlu2 %639  ;;  %v1023_v47 = vsub.f32 1.0, %v1022_v24  ;;  %v1922_v16 = vadd.s32 4294967216, %v1691_v42  ;;  %vm1027_vm5 = vweird.f32 %v1851_v28 }
 0x235   :  { %v711_v27 = vpop.xlane.xlu0 %710  ;;  %1287 = vrcp.f32 %v1856_v33  ;;  %vm1925_vm6 = vcmp.eq.f32.partialorder %v1030_v61, 8.507059e+37  ;;  %v1933_v24 = vadd.s32 4294967192, %v1691_v42  ;;  %v1060_v37 = vand.u32 2147483647, %v1856_v33  ;;  %vm1952_vm8 = vmor %vm1026_vm4, %vm1027_vm5 }
 0x236   :  { %v737_v26 = vadd.f32 %v1670_v54, %v711_v27  ;;  %v1024_v62 = vmul.f32 %v1851_v28, %v1023_v47  ;;  %v1017_v27 = vand.u32 2147483648, %v1849_v4  ;;  %v1015_v39 = vand.u32 2147483647, %v1849_v4 }
 0x237   :  { %v1280_v18 = vpop.eup %1279  ;;  %v1941_v43 = vor.u32 1.1754944e-38, %v1062_v3  ;;  %vm1011_vm7 = vweird.f32 %v1849_v4  ;;  %vm1056_vm9 = vweird.f32 %v1856_v33  ;;  %vm1979_vm3 = vcmp.eq.f32.partialorder %v1060_v37, 8.507059e+37 }
 0x238   :  { %v1874_v25 = vadd.f32 1.0, %v1280_v18  ;;  %v1282_v19 = vpop.eup %1281  ;;  %v1222_v6 = vmul.f32 -1.442695, %v737_v26  ;;  %vm1960_vm10 = vcmp.eq.f32.partialorder %v1015_v39, 8.507059e+37 }
 0x239   :  { %v1284_v38 = vpop.eup %1283  ;;  %v1885_v49 = vadd.f32 1.0, %v1282_v19  ;;  %v1025_v19 = vadd.f32 %v1851_v28, %v1024_v62 }
 0x23a   :  { %1289 = vrcp.f32 %v1874_v25  ;;  %v1883_v46 = vpop.eup %1285  ;;  %v1888_v51 = vadd.f32 1.0, %v1284_v38 }
 0x23b   :  { %v1007_v55 = vmul.f32 %v1883_v46, %v1849_v4  ;;  %1291 = vrcp.f32 %v1885_v49  ;;  %v1894_v58 = vpop.eup %1287  ;;  %v1002_v15 = vand.u32 2147483648, %v1885_v49  ;;  %vm1012_vm0 = vweird.f32 %v1883_v46 }
 0x23c   :  { %1293 = vrcp.f32 %v1888_v51  ;;  %v717_v32 = vpop.xlane.xlu2 %716  ;;  %v1052_v11 = vmul.f32 %v1894_v58, %v1856_v33  ;;  %vm1057_vm4 = vweird.f32 %v1894_v58  ;;  %vm996_vm5 = vweird.f32 %v1885_v49  ;;  %vm1989_vm1 = vmor %vm1011_vm7, %vm1012_vm0 }
 0x23d   :  { %1295 = vpow2.f32 %v1222_v6  ;;  %v715_v8 = vpop.xlane.xlu0 %714  ;;  %v1008_v12 = vsub.f32 1.0, %v1007_v55  ;;  %v740_v31 = vadd.f32 %v1670_v54, %v717_v32  ;;  %v1018_v55 = vor.u32 1.1754944e-38, %v1017_v27 }
 0x23e   :  { %v739_v38 = vadd.f32 %v1670_v54, %v715_v8  ;;  %v1053_v6 = vsub.f32 1.0, %v1052_v11  ;;  %v1029_v11 = vsel %vm1952_vm8, %v1851_v28, %v1025_v19  ;;  %vm790_vm8 = vcmask 589312  }
 0x23f   :  { %v1225_v50 = vmul.f32 -1.442695, %v740_v31  ;;  %v1009_v52 = vmul.f32 %v1883_v46, %v1008_v12 }
 0x240   :  { %v1914_v1 = vpop.eup %1289  ;;  %v1224_v8 = vmul.f32 -1.442695, %v739_v38  ;;  %v1000_v38 = vand.u32 2147483647, %v1885_v49 }
 0x241   :  { %v1082_v18 = vmul.f32 %v1914_v1, %v1874_v25  ;;  %v1292_v26 = vpop.eup %1291  ;;  %1297 = vpow2.f32 %v1225_v50  ;;  %v1010_v28 = vadd.f32 %v1883_v46, %v1009_v52  ;;  %v1977_v50 = vsel %vm1925_vm6, %v1033_v2, %v1029_v11 }
 0x242   :  { %v1939_v35 = vpop.eup %1293  ;;  %v992_v47 = vmul.f32 %v1292_v26, %v1885_v49  ;;  %vm997_vm14 = vweird.f32 %v1292_v26  ;;  %1299 = vpow2.f32 %v1224_v8  ;;  %v1003_v52 = vor.u32 1.1754944e-38, %v1002_v15 }
 0x243   :  { %v1037_v61 = vmul.f32 %v1939_v35, %v1888_v51  ;;  %v1296_v62 = vpop.eup %1295  ;;  %v1083_v32 = vsub.f32 1.0, %v1082_v18  ;;  %vm998_vm2 = vmor %vm996_vm5, %vm997_vm14  ;;  %vm1086_vm6 = vweird.f32 %v1874_v25  ;;  %v1090_v2 = vand.u32 2147483647, %v1874_v25 }
 0x244   :  { %v993_v3 = vsub.f32 1.0, %v992_v47  ;;  %v1965_v31 = vadd.f32 1.0, %v1296_v62  ;;  %v1054_v47 = vmul.f32 %v1894_v58, %v1053_v6  ;;  %v1985_v62 = vadd.s32 4294967200, %v1691_v42 }
 0x245   :  { %v1038_v27 = vsub.f32 1.0, %v1037_v61  ;;  %v1084_v19 = vmul.f32 %v1914_v1, %v1083_v32  ;;  %vm1001_vm15 = vcmp.eq.f32.partialorder %v1000_v38, 8.507059e+37  ;;  %v1014_v32 = vsel %vm1989_vm1, %v1883_v46, %v1010_v28 }
 0x246   :  { %v994_v18 = vmul.f32 %v1292_v26, %v993_v3  ;;  %1301 = vrcp.f32 %v1965_v31  ;;  %v1055_v37 = vadd.f32 %v1894_v58, %v1054_v47  ;;  %vm794_vm14 = vcmask 654912  }
 0x247   :  { %v1039_v61 = vmul.f32 %v1939_v35, %v1038_v27  ;;  %v1298_v54 = vpop.eup %1297  ;;  %v1085_v11 = vadd.f32 %v1914_v1, %v1084_v19  ;;  %vm1087_vm7 = vweird.f32 %v1914_v1  ;;  %v1092_v15 = vand.u32 2147483648, %v1874_v25 }
 0x248   :  { %v995_v39 = vadd.f32 %v1292_v26, %v994_v18  ;;  %v1999_v8 = vadd.f32 1.0, %v1298_v54  ;;  %v1300_v4 = vpop.eup %1299  ;;  %v1159_v38 = vperm.slane %v1977_v50, %v1900_v60  ;;  %v1019_v28 = vsel %vm1960_vm10, %v1018_v55, %v1014_v32 }
 0x249   :  { %v1040_v18 = vadd.f32 %v1939_v35, %v1039_v61  ;;  %v2010_v46 = vadd.f32 1.0, %v1300_v4  ;;  %v1047_v19 = vand.u32 2147483648, %v1888_v51  ;;  %vm2242_vm1 = vcmask 720512  }
 0x24a   :  { %v999_v17 = vsel %vm998_vm2, %v1292_v26, %v995_v39  ;;  %vm1042_vm2 = vweird.f32 %v1939_v35  ;;  %1303 = vrcp.f32 %v1999_v8  ;;  %vm1041_vm10 = vweird.f32 %v1888_v51 }
 0x24b   :  { %v1004_v3 = vsel %vm1001_vm15, %v1003_v52, %v999_v17  ;;  %vm2018_vm15 = vmor %vm1056_vm9, %vm1057_vm4  ;;  %v2027_v52 = vpop.xlane.xlu0 %641  ;;  %v1045_v55 = vand.u32 2147483647, %v1888_v51  ;;  %1305 = vrcp.f32 %v2010_v46  ;;  %vm2043_vm0 = vcmp.eq.f32.partialorder %v1090_v2, 8.507059e+37 }
 0x24c   :  { %v1155_v26 = vperm.slane %v1004_v3, %v1909_v41  ;;  %v2005_v27 = vpop.eup %1301  ;;  %v1059_v50 = vsel %vm2018_vm15, %v1894_v58, %v1055_v37  ;;  %vm2036_vm9 = vmor %vm1086_vm6, %vm1087_vm7  ;;  %v1157_v54 = vperm.slane %v1019_v28, %v1906_v63  ;;  %v1093_v49 = vor.u32 1.1754944e-38, %v1092_v15 }
 0x24d   :  { %v1067_v39 = vmul.f32 %v2005_v27, %v1965_v31  ;;  %vm2049_vm4 = vmor %vm1041_vm10, %vm1042_vm2  ;;  %v1089_v61 = vsel %vm2036_vm9, %v1914_v1, %v1085_v11  ;;  %v1075_v17 = vand.u32 2147483647, %v1965_v31  ;;  %vm2243_vm5 = vcmask 786112  }
 0x24e   :  { %v1156_v51 = vsel %vm786_vm11, %v1155_v26, %v1897_v29  ;;  %v1044_v2 = vsel %vm2049_vm4, %v1939_v35, %v1040_v18  ;;  %v1064_v37 = vsel %vm1979_vm3, %v1941_v43, %v1059_v50  ;;  %v1048_v32 = vor.u32 1.1754944e-38, %v1047_v19 }
 0x24f   :  { %v1068_v25 = vsub.f32 1.0, %v1067_v39  ;;  %v1077_v3 = vand.u32 2147483648, %v1965_v31  ;;  %vm1046_vm6 = vcmp.eq.f32.partialorder %v1045_v55, 8.507059e+37  ;;  %v2071_v4 = vadd.s32 4294967184, %v1691_v42 }
 0x250   :  { %v2068_v29 = vpop.eup %1303  ;;  %v2075_v35 = vsel %vm2043_vm0, %v1093_v49, %v1089_v61  ;;  %v1158_v11 = vsel %vm790_vm8, %v1157_v54, %v1156_v51  ;;  %v1049_v15 = vsel %vm1046_vm6, %v1048_v32, %v1044_v2  ;;  %vm1072_vm3 = vweird.f32 %v2005_v27 }
 0x251   :  { %v1069_v1 = vmul.f32 %v2005_v27, %v1068_v25  ;;  %v1112_v6 = vmul.f32 %v2068_v29, %v1999_v8  ;;  %v2082_v26 = vpop.eup %1305  ;;  %vm1071_vm7 = vweird.f32 %v1965_v31  ;;  %vm2085_vm2 = vcmp.eq.f32.partialorder %v1075_v17, 8.507059e+37 }
 0x252   :  { %v2090_v47 = vadd.s32 4294967176, %v1691_v42  ;;  %v1163_v28 = vperm.slane %v1064_v37, %v1912_v0  ;;  %v1078_v19 = vor.u32 1.1754944e-38, %v1077_v3  ;;  %v1097_v39 = vmul.f32 %v2082_v26, %v2010_v46  ;;  %vm2098_vm15 = vmor %vm1071_vm7, %vm1072_vm3 }
 0x253   :  { %v1070_v43 = vadd.f32 %v2005_v27, %v1069_v1  ;;  %v1122_v33 = vand.u32 2147483648, %v1999_v8  ;;  %v1160_v55 = vsel %vm794_vm14, %v1159_v38, %v1158_v11  ;;  %v1161_v31 = vperm.slane %v1049_v15, %v1922_v16 }
 0x254   :  { %v1107_v58 = vand.u32 2147483648, %v2010_v46  ;;  %v1167_v61 = vperm.slane %v2075_v35, %v1933_v24  ;;  %v1113_v51 = vsub.f32 1.0, %v1112_v6  ;;  %v1105_v38 = vand.u32 2147483647, %v2010_v46 }
 0x255   :  { %v1074_v54 = vsel %vm2098_vm15, %v2005_v27, %v1070_v43  ;;  %v1120_v49 = vand.u32 2147483647, %v1999_v8  ;;  %vm806_vm9 = vcmask 851712   ;;  %v1162_v32 = vsel %vm2242_vm1, %v1161_v31, %v1160_v55 }
 0x256   :  { %v1098_v1 = vsub.f32 1.0, %v1097_v39  ;;  %vm1101_vm10 = vweird.f32 %v2010_v46  ;;  %vm1116_vm0 = vweird.f32 %v1999_v8  ;;  %v1123_v27 = vor.u32 1.1754944e-38, %v1122_v33 }
 0x257   :  { %v1108_v3 = vor.u32 1.1754944e-38, %v1107_v58  ;;  %vm1117_vm4 = vweird.f32 %v2068_v29  ;;  %vm810_vm6 = vcmask 917312   ;;  %vm1102_vm3 = vweird.f32 %v2082_v26 }
 0x258   :  { %v647_v50 = vpop.permute.xlu0 %646  ;;  %vm2130_vm7 = vcmp.eq.f32.partialorder %v1105_v38, 8.507059e+37  ;;  %vm2134_vm15 = vcmp.eq.f32.partialorder %v1120_v49, 8.507059e+37  ;;  %v1099_v39 = vmul.f32 %v2082_v26, %v1098_v1  ;;  %vm2288_vm1 = vcmask 261312  }
 0x259   :  { %v2103_v25 = vperm.slane %v647_v50, 0 }
 0x25b   :  { %v650_v2 = vadd.f32 %v2103_v25, %v1674_v59  ;;  %v651_v17 = vadd.f32 %v2103_v25, %v1680_v5  ;;  %v652_v37 = vadd.f32 %v2103_v25, %v1725_v10  ;;  %v653_v11 = vadd.f32 %v2103_v25, %v1730_v21 }
 0x25c   :  { %v1079_v59 = vsel %vm2085_vm2, %v1078_v19, %v1074_v54  ;;  %v1114_v5 = vmul.f32 %v2068_v29, %v1113_v51  ;;  %v654_v10 = vadd.f32 %v2103_v25, %v1697_v44  ;;  %v1164_v21 = vsel %vm2243_vm5, %v1163_v28, %v1162_v32 }
 0x25d   :  { %v655_v6 = vadd.f32 %v2103_v25, %v1722_v7  ;;  %v759_v18 = vperm.slane %v650_v2, %v1691_v42  ;;  %v761_v44 = vperm.slane %v651_v17, %v1709_v56  ;;  %v765_v19 = vperm.slane %v652_v37, %v1706_v53 }
 0x25e   :  { %vm814_vm2 = vcmask 982912   ;;  %v656_v50 = vadd.f32 %v2103_v25, %v1732_v22  ;;  %v657_v33 = vadd.f32 %v2103_v25, %v1738_v20  ;;  %v1165_v28 = vperm.slane %v1079_v59, %v1985_v62 }
 0x25f   :  { %v658_v7 = vadd.f32 %v2103_v25, %v1734_v23  ;;  %v659_v42 = vadd.f32 %v2103_v25, %v1740_v30  ;;  %v763_v53 = vsel %vm762_vm12, %v761_v44, %v759_v18  ;;  %v769_v56 = vperm.slane %v653_v11, %v1780_v9 }
 0x260   :  { %v660_v55 = vadd.f32 %v2103_v25, %v1753_v36  ;;  %v661_v22 = vadd.f32 %v2103_v25, %v1742_v34  ;;  %v767_v20 = vsel %vm766_vm13, %v765_v19, %v763_v53  ;;  %v773_v31 = vperm.slane %v654_v10, %v1791_v13  ;;  %vm1118_vm13 = vmor %vm1116_vm0, %vm1117_vm4 }
 0x261   :  { %v662_v23 = vadd.f32 %v2103_v25, %v1756_v40  ;;  %v663_v30 = vadd.f32 %v2103_v25, %v1772_v57  ;;  %v771_v12 = vsel %vm2288_vm1, %v769_v56, %v767_v20  ;;  %v777_v9 = vperm.slane %v655_v6, %v1860_v45  ;;  %vm1103_vm1 = vmor %vm1101_vm10, %vm1102_vm3 }
 0x262   :  { %vm2289_vm12 = vcmask 326912   ;;  %v781_v36 = vperm.slane %v656_v50, %v1869_v48  ;;  %v1100_v34 = vadd.f32 %v2082_v26, %v1099_v39  ;;  %v1115_v51 = vadd.f32 %v2068_v29, %v1114_v5 }
 0x263   :  { %v775_v58 = vsel %vm2289_vm12, %v773_v31, %v771_v12  ;;  %v664_v40 = vadd.f32 %v2103_v25, %v1863_v14  ;;  %vm2290_vm5 = vcmask 392512   ;;  %v785_v13 = vperm.slane %v657_v33, %v1909_v41 }
 0x264   :  { %v779_v57 = vsel %vm2290_vm5, %v777_v9, %v775_v58  ;;  %v789_v45 = vperm.slane %v658_v7, %v1906_v63  ;;  %vm2291_vm12 = vcmask 458112   ;;  %v1104_v54 = vsel %vm1103_vm1, %v2082_v26, %v1100_v34 }
 0x265   :  { %v783_v48 = vsel %vm2291_vm12, %v781_v36, %v779_v57  ;;  %v1119_v8 = vsel %vm1118_vm13, %v2068_v29, %v1115_v51  ;;  %v1166_v38 = vsel %vm806_vm9, %v1165_v28, %v1164_v21  ;;  %v793_v49 = vperm.slane %v659_v42, %v1900_v60 }
 0x266   :  { %v787_v14 = vsel %vm786_vm11, %v785_v13, %v783_v48  ;;  %v1109_v63 = vsel %vm2130_vm7, %v1108_v3, %v1104_v54  ;;  %v1124_v41 = vsel %vm2134_vm15, %v1123_v27, %v1119_v8  ;;  %v797_v29 = vperm.slane %v660_v55, %v1922_v16 }
 0x267   :  { %v791_v46 = vsel %vm790_vm8, %v789_v45, %v787_v14  ;;  %v1169_v26 = vperm.slane %v1109_v63, %v2071_v4  ;;  %v1171_v60 = vperm.slane %v1124_v41, %v2090_v47  ;;  %v665_v2 = vadd.f32 %v2103_v25, %v2027_v52 }
 0x268   :  { %v795_v17 = vsel %vm794_vm14, %v793_v49, %v791_v46  ;;  %v801_v37 = vperm.slane %v661_v22, %v1912_v0  ;;  %v1168_v32 = vsel %vm810_vm6, %v1167_v61, %v1166_v38  ;;  %vm2292_vm11 = vcmask 720512  }
 0x269   :  { %v799_v1 = vsel %vm2292_vm11, %v797_v29, %v795_v17  ;;  %v805_v16 = vperm.slane %v662_v23, %v1985_v62  ;;  %v1170_v27 = vsel %vm814_vm2, %v1169_v26, %v1168_v32  ;;  %vm2293_vm8 = vcmask 786112  }
 0x26a   :  { %v803_v3 = vsel %vm2293_vm8, %v801_v37, %v799_v1  ;;  %v809_v52 = vperm.slane %v663_v30, %v1933_v24  ;;  %vm2294_vm14 = vcmask 1048512   ;;  %v813_v62 = vperm.slane %v664_v40, %v2071_v4 }
 0x26b   :  { %v1172_v0 = vsel %vm2294_vm14, %v1171_v60, %v1170_v27  ;;  %v807_v35 = vsel %vm806_vm9, %v805_v16, %v803_v3  ;;  %v817_v61 = vperm.slane %v665_v2, %v2090_v47  ;;  %vm2295_vm5 = vmmov %vm2294_vm14 }
 0x26c   :  { %1174 = vst [vmem:[#allocation13] sm:$0x1] %v1172_v0  ;;  %v811_v25 = vsel %vm810_vm6, %v809_v52, %v807_v35 }
 0x26d   :  { %1196 = dma.vmem_to_hbm [thread:$0]  %s1192_s7, 16, %s1194_s14, [#allocation14]   ;;  %v815_v24 = vsel %vm814_vm2, %v813_v62, %v811_v25 }
 0x26e   :  { %v819_v11 = vsel %vm2295_vm5, %v817_v61, %v815_v24 }
 0x26f   :  { %821 = vst [vmem:[#allocation12] sm:$0x1] %v819_v11 }
 0x270   :  { %1185 = dma.vmem_to_hbm [thread:$0]  %s1181_s15, 16, %s1183_s18, [#allocation6]  }
 0x271   :  { %1457 = dma.done.wait [#allocation6], 16  }
 0x272   :  { %1458 = vsyncadd [#allocation6], 4294967280 }
 0x273   :  { %1459 = dma.done.wait [#allocation14], 16  }
 0x274   :  { %1460 = vsyncadd [#allocation14], 4294967280 }
 0x275   :  { %1205 = vsyncpa [#allocation5], 1 }
 0x276   :  { %1206 = vsyncpa [#allocation8], 1 }
 0x277   :  { %1207 = vsyncpa [#allocation11], 1 }
 0x278   :  { %1208 = vsyncpa [#allocation6], 1 }
 0x279   :  { %1209 = vsyncpa [#allocation14], 1 }

</bundles_post_ra>
